<compile_context>
chip_gen: v5e
topology: v5e:2x2
jax: 0.10.0
libtpu: 0.0.40
codegen_flags: <defaults>
</compile_context>

<pallas_src>
from functools import partial

import jax
import jax.numpy as jnp
from jax.experimental import pallas as pl
from jax.experimental.pallas import tpu as pltpu


# ------------------------------------ kernel ------------------------------------
def _ffn_kernel(x_ref, scale_ref, upw_ref, dw_ref, o_ref, xn_ref, acc_ref,
                *, eps, th):
    """One (batch, seq-tile, hidden-tile) grid step of the SwiGLU FFN.

    x_ref     : (1, tq, D)   input tile in its native dtype (also the residual)
    scale_ref : (1, 1,  D)   f32   precomputed AdaRMSNorm scale (cond @ W.T + 1)
    upw_ref   : (D, 2*th)    bf16  fused up weights: [:, :th]="x" half, [:, th:]="gate"
    dw_ref    : (th, D)      bf16  down-projection weight tile
    o_ref     : (1, tq, D)   output tile, written once at the last hidden step
    xn_ref    : (tq, D)      bf16  VMEM scratch: cached normed activations
    acc_ref   : (tq, D)      f32   VMEM scratch: residual + down-proj accumulator
    """
    h = pl.program_id(2)
    nh = pl.num_programs(2)

    # First hidden tile for this (batch, seq-tile): compute the RMS-norm once,
    # cache it (bf16) for all hidden tiles, initialize the accumulator with the
    # residual.  Relies on the hidden axis being innermost + "arbitrary".
    @pl.when(h == 0)
    def _():
        x = x_ref[0].astype(jnp.float32)                   # (tq, D)
        scale = scale_ref[0].astype(jnp.float32)           # (1, D)
        mean_sq = jnp.mean(x * x, axis=-1, keepdims=True)  # f32 VPU (D untiled)
        xn = x * (scale * jax.lax.rsqrt(mean_sq + eps))    # EUP rsqrt
        xn_ref[...] = xn.astype(jnp.bfloat16)
        acc_ref[...] = x                                   # residual init

    xn = xn_ref[...]                                       # (tq, D) bf16
    # Fused up+gate matmul: one DMA stream / one MXU weight push, N = 2*th.
    ug = jnp.dot(xn, upw_ref[...], preferred_element_type=jnp.float32)  # (tq, 2*th)
    u = ug[:, :th]                                         # lane-aligned slices
    g = ug[:, th:]
    act = u * (g * jax.nn.sigmoid(g))                      # SwiGLU, f32 VPU/EUP
    acc_ref[...] += jnp.dot(act.astype(jnp.bfloat16), dw_ref[...],
                            preferred_element_type=jnp.float32)

    # Single output write-back after the full hidden reduction.
    @pl.when(h == nh - 1)
    def _():
        o_ref[0] = acc_ref[...].astype(o_ref.dtype)


# --------------------------- one-time parameter prep ---------------------------
def prepare_params(params, *, hidden_dim, th=512):
    """Convert PyTorch-layout params to MXU-friendly layout ONCE (not per call).

    params["norm_w"] : (dim, 256)        AdaRMSNorm linear weight
    params["up_w"]   : (2*hidden, dim)   LinearSwiGLU weight ("x" rows then "gate")
    params["down_w"] : (dim, hidden)     down-projection weight
    """
    H = hidden_dim
    up_w = params["up_w"]
    D = up_w.shape[1]
    th = min(th, H)
    assert H % th == 0, "hidden_dim must be divisible by the hidden tile"
    nt = H // th

    ux = up_w[:H].T.astype(jnp.bfloat16)     # (D, H) "x" half
    ug = up_w[H:].T.astype(jnp.bfloat16)     # (D, H) "gate" half
    # Per-tile interleave so block h = [x cols of tile h | gate cols of tile h].
    up_fused = jnp.concatenate(
        [ux.reshape(D, nt, th), ug.reshape(D, nt, th)], axis=-1
    ).reshape(D, 2 * H)                       # (D, nt * 2*th)

    return {
        "norm_w": params["norm_w"].astype(jnp.float32),     # (D, C)
        "up_w_fused": up_fused,                             # (D, 2H) bf16, interleaved
        "down_w_t": params["down_w"].T.astype(jnp.bfloat16),  # (H, D) bf16
        "th": th,
    }


# ------------------------------------ wrapper ------------------------------------
def feedforward_forward(x, cond, prepared, *, eps=1e-6, tq=256, out_dtype=None):
    """Pallas FeedForward: x + down(swiglu(up(ada_rms_norm(x, cond))))."""
    B, S, D = x.shape
    dw = prepared["down_w_t"]
    H = dw.shape[0]
    th = prepared["th"]
    tq = min(tq, S)
    assert S % tq == 0, "seq must be divisible by the seq tile"
    assert tq % 8 == 0, "seq tile must be a multiple of 8"
    out_dtype = out_dtype or x.dtype

    # Hoisted cond -> scale matmul (tiny; efficient as a batched XLA matmul).
    scale = (jnp.dot(cond.astype(jnp.float32), prepared["norm_w"].T,
                     precision=jax.lax.Precision.HIGHEST) + 1.0)[:, None, :]  # (B,1,D)

    kernel = partial(_ffn_kernel, eps=eps, th=th)
    grid = (B, S // tq, H // th)

    return pl.pallas_call(
        kernel,
        out_shape=jax.ShapeDtypeStruct((B, S, D), out_dtype),
        grid_spec=pltpu.PrefetchScalarGridSpec(
            num_scalar_prefetch=0,
            grid=grid,
            in_specs=[
                pl.BlockSpec((1, tq, D), lambda b, i, h: (b, i, 0)),    # x tile
                pl.BlockSpec((1, 1, D), lambda b, i, h: (b, 0, 0)),     # scale row
                pl.BlockSpec((D, 2 * th), lambda b, i, h: (0, h)),      # fused up/gate
                pl.BlockSpec((th, D), lambda b, i, h: (h, 0)),          # down rows
            ],
            out_specs=pl.BlockSpec((1, tq, D), lambda b, i, h: (b, i, 0)),
            scratch_shapes=[
                pltpu.VMEM((tq, D), jnp.bfloat16),   # cached normed activations
                pltpu.VMEM((tq, D), jnp.float32),    # residual + output accumulator
            ],
        ),
        compiler_params=pltpu.CompilerParams(
            dimension_semantics=("parallel", "parallel", "arbitrary"),
            vmem_limit_bytes=64 * 1024 * 1024,
        ),
    )(x, scale, prepared["up_w_fused"], dw)


# ------------------------------ pure-JAX reference ------------------------------
def feedforward_reference(x, cond, params, *, eps=1e-6):
    dot = partial(jnp.dot, precision=jax.lax.Precision.HIGHEST)
    H = params["down_w"].shape[1]

    scale = dot(cond, params["norm_w"].T)[:, None, :] + 1.0
    mean_sq = jnp.mean(x * x, axis=-1, keepdims=True)
    xn = x * (scale * jax.lax.rsqrt(mean_sq + eps))

    up = dot(xn, params["up_w"].T)
    u, g = up[..., :H], up[..., H:]
    act = u * (g * jax.nn.sigmoid(g))
    return dot(act, params["down_w"].T) + x


# ------------------------------------ main ------------------------------------
if __name__ == "__main__":
    # Small shapes consistent with the module (cond_features fixed to 256).
    # S=256 / hidden=1024 so both the seq-tile and hidden-tile grid axes are
    # exercised (grid = (2, 2, 2) with tq=128, th=512); D=128 keeps output
    # stores lane-dense.
    B, S = 2, 256
    dim, hidden_dim, cond_dim = 128, 1024, 256

    key = jax.random.PRNGKey(0)
    ks = jax.random.split(key, 5)
    x = jax.random.normal(ks[0], (B, S, dim), dtype=jnp.float32)
    cond = jax.random.normal(ks[1], (B, cond_dim), dtype=jnp.float32)

    # NOTE: the PyTorch module zero-inits norm.linear and down; small random
    # values are used here so the kernel's compute path is actually exercised.
    params = {
        "norm_w": 0.02 * jax.random.normal(ks[2], (dim, cond_dim), dtype=jnp.float32),
        "up_w":   0.10 * jax.random.normal(ks[3], (2 * hidden_dim, dim), dtype=jnp.float32),
        "down_w": 0.10 * jax.random.normal(ks[4], (dim, hidden_dim), dtype=jnp.float32),
    }

    # One-time layout/dtype prep (outside the hot path).
    prepared = prepare_params(params, hidden_dim=hidden_dim, th=512)

    out = jax.block_until_ready(feedforward_forward(x, cond, prepared, tq=128))
    ref = jax.block_until_ready(feedforward_reference(x, cond, params))

    assert out.shape == (B, S, dim)
    max_err = float(jnp.max(jnp.abs(out - ref)))
    assert bool(jnp.allclose(out, ref, atol=5e-2, rtol=5e-2)), (
        f"mismatch vs reference, max abs err {max_err}")

    print("KERNEL_OK")
</pallas_src>

<mosaic_0001>
module attributes {stable_mosaic.version = 11 : i64} {
  func.func @_ffn_kernel(%arg0: i32, %arg1: i32, %arg2: i32, %arg3: memref<1x128x128xf32, #tpu.memory_space<vmem>>, %arg4: memref<1x1x128xf32, #tpu.memory_space<vmem>>, %arg5: memref<128x1024xbf16, #tpu.memory_space<vmem>>, %arg6: memref<512x128xbf16, #tpu.memory_space<vmem>>, %arg7: memref<1x128x128xf32, #tpu.memory_space<vmem>>, %arg8: memref<128x128xbf16, #tpu.memory_space<vmem>>, %arg9: memref<128x128xf32, #tpu.memory_space<vmem>>) attributes {dimension_semantics = [#tpu.dimension_semantics<parallel>, #tpu.dimension_semantics<parallel>, #tpu.dimension_semantics<arbitrary>], iteration_bounds = array<i64: 2, 2, 2>, scalar_prefetch = 0 : i64, scratch_operands = 2 : i64, tpu.core_type = #tpu.core_type<tc>, window_params = [{transform_indices = @transform_0, window_bounds = array<i64: 1, 128, 128>}, {transform_indices = @transform_1, window_bounds = array<i64: 1, 1, 128>}, {transform_indices = @transform_2, window_bounds = array<i64: 128, 1024>}, {transform_indices = @transform_3, window_bounds = array<i64: 512, 128>}, {transform_indices = @transform_4, window_bounds = array<i64: 1, 128, 128>}]} {
    %c0_i32 = arith.constant 0 : i32
    %0 = arith.cmpi eq, %arg2, %c0_i32 : i32
    %1 = arith.extui %0 : i1 to i32
    %c0_i32_0 = arith.constant 0 : i32
    %2 = arith.cmpi ne, %1, %c0_i32_0 : i32
    scf.if %2 {
      %c0_13 = arith.constant 0 : index
      %c0_14 = arith.constant 0 : index
      %c0_15 = arith.constant 0 : index
      %24 = vector.load %arg3[%c0_13, %c0_14, %c0_15] : memref<1x128x128xf32, #tpu.memory_space<vmem>>, vector<1x128x128xf32>
      %25 = vector.shape_cast %24 : vector<1x128x128xf32> to vector<128x128xf32>
      %c0_16 = arith.constant 0 : index
      %c0_17 = arith.constant 0 : index
      %c0_18 = arith.constant 0 : index
      %26 = vector.load %arg4[%c0_16, %c0_17, %c0_18] : memref<1x1x128xf32, #tpu.memory_space<vmem>>, vector<1x1x128xf32>
      %27 = vector.shape_cast %26 : vector<1x1x128xf32> to vector<1x128xf32>
      %28 = arith.mulf %25, %25 : vector<128x128xf32>
      %cst_19 = arith.constant dense<0.000000e+00> : vector<128xf32>
      %29 = vector.multi_reduction <add>, %28, %cst_19 [1] : vector<128x128xf32> to vector<128xf32>
      %30 = vector.shape_cast %29 : vector<128xf32> to vector<128x1xf32>
      %cst_20 = arith.constant 1.280000e+02 : f32
      %31 = vector.broadcast %cst_20 : f32 to vector<128x1xf32>
      %32 = arith.divf %30, %31 : vector<128x1xf32>
      %cst_21 = arith.constant 9.99999997E-7 : f32
      %33 = vector.broadcast %cst_21 : f32 to vector<128x1xf32>
      %34 = arith.addf %32, %33 : vector<128x1xf32>
      %35 = math.rsqrt %34 : vector<128x1xf32>
      %36 = vector.broadcast %27 : vector<1x128xf32> to vector<128x128xf32>
      %37 = vector.broadcast %35 : vector<128x1xf32> to vector<128x128xf32>
      %38 = arith.mulf %36, %37 : vector<128x128xf32>
      %39 = arith.mulf %25, %38 : vector<128x128xf32>
      %40 = arith.truncf %39 : vector<128x128xf32> to vector<128x128xbf16>
      %c0_22 = arith.constant 0 : index
      %c0_23 = arith.constant 0 : index
      %41 = vector.load %arg8[%c0_22, %c0_23] : memref<128x128xbf16, #tpu.memory_space<vmem>>, vector<128x128xbf16>
      tpu.vector_store %arg8[%c0_22, %c0_23], %40 {strides = array<i32>} : memref<128x128xbf16, #tpu.memory_space<vmem>>, vector<128x128xbf16>,
      %c0_24 = arith.constant 0 : index
      %c0_25 = arith.constant 0 : index
      %42 = vector.load %arg9[%c0_24, %c0_25] : memref<128x128xf32, #tpu.memory_space<vmem>>, vector<128x128xf32>
      tpu.vector_store %arg9[%c0_24, %c0_25], %25 {strides = array<i32>} : memref<128x128xf32, #tpu.memory_space<vmem>>, vector<128x128xf32>,
    } else {
    }
    %c0 = arith.constant 0 : index
    %c0_1 = arith.constant 0 : index
    %3 = vector.load %arg8[%c0, %c0_1] : memref<128x128xbf16, #tpu.memory_space<vmem>>, vector<128x128xbf16>
    %c0_2 = arith.constant 0 : index
    %c0_3 = arith.constant 0 : index
    %4 = vector.load %arg5[%c0_2, %c0_3] : memref<128x1024xbf16, #tpu.memory_space<vmem>>, vector<128x1024xbf16>
    %cst = arith.constant dense<0.000000e+00> : vector<128x1024xf32>
    %5 = tpu.matmul %3, %4, %cst {dimension_numbers = #tpu.dot_dimension_numbers<[1], [0], [0], [1], [0, 0, 1, 1], [], []>} : vector<128x128xbf16>, vector<128x1024xbf16>, vector<128x1024xf32> -> vector<128x1024xf32>
    %6 = vector.extract_strided_slice %5 {offsets = [0, 0], sizes = [128, 512], strides = [1, 1]} : vector<128x1024xf32> to vector<128x512xf32>
    %7 = vector.extract_strided_slice %5 {offsets = [0, 512], sizes = [128, 512], strides = [1, 1]} : vector<128x1024xf32> to vector<128x512xf32>
    %8 = arith.negf %7 : vector<128x512xf32>
    %9 = math.exp %8 : vector<128x512xf32>
    %cst_4 = arith.constant 1.000000e+00 : f32
    %10 = vector.broadcast %cst_4 : f32 to vector<128x512xf32>
    %11 = arith.addf %10, %9 : vector<128x512xf32>
    %12 = arith.divf %10, %11 : vector<128x512xf32>
    %13 = arith.mulf %7, %12 : vector<128x512xf32>
    %14 = arith.mulf %6, %13 : vector<128x512xf32>
    %c0_5 = arith.constant 0 : index
    %c0_6 = arith.constant 0 : index
    %15 = vector.load %arg9[%c0_5, %c0_6] : memref<128x128xf32, #tpu.memory_space<vmem>>, vector<128x128xf32>
    %16 = arith.truncf %14 : vector<128x512xf32> to vector<128x512xbf16>
    %c0_7 = arith.constant 0 : index
    %c0_8 = arith.constant 0 : index
    %17 = vector.load %arg6[%c0_7, %c0_8] : memref<512x128xbf16, #tpu.memory_space<vmem>>, vector<512x128xbf16>
    %cst_9 = arith.constant dense<0.000000e+00> : vector<128x128xf32>
    %18 = tpu.matmul %16, %17, %cst_9 {dimension_numbers = #tpu.dot_dimension_numbers<[1], [0], [0], [1], [0, 0, 1, 1], [], []>} : vector<128x512xbf16>, vector<512x128xbf16>, vector<128x128xf32> -> vector<128x128xf32>
    %19 = arith.addf %15, %18 : vector<128x128xf32>
    %c0_10 = arith.constant 0 : index
    %c0_11 = arith.constant 0 : index
    %20 = vector.load %arg9[%c0_10, %c0_11] : memref<128x128xf32, #tpu.memory_space<vmem>>, vector<128x128xf32>
    tpu.vector_store %arg9[%c0_10, %c0_11], %19 {strides = array<i32>} : memref<128x128xf32, #tpu.memory_space<vmem>>, vector<128x128xf32>,
    %c1_i32 = arith.constant 1 : i32
    %21 = arith.cmpi eq, %arg2, %c1_i32 : i32
    %22 = arith.extui %21 : i1 to i32
    %c0_i32_12 = arith.constant 0 : i32
    %23 = arith.cmpi ne, %22, %c0_i32_12 : i32
    scf.if %23 {
      %c0_13 = arith.constant 0 : index
      %c0_14 = arith.constant 0 : index
      %24 = vector.load %arg9[%c0_13, %c0_14] : memref<128x128xf32, #tpu.memory_space<vmem>>, vector<128x128xf32>
      %c0_15 = arith.constant 0 : index
      %c0_16 = arith.constant 0 : index
      %c0_17 = arith.constant 0 : index
      %25 = vector.load %arg7[%c0_15, %c0_16, %c0_17] : memref<1x128x128xf32, #tpu.memory_space<vmem>>, vector<1x128x128xf32>
      %26 = vector.shape_cast %25 : vector<1x128x128xf32> to vector<128x128xf32>
      %27 = vector.shape_cast %24 : vector<128x128xf32> to vector<1x128x128xf32>
      tpu.vector_store %arg7[%c0_15, %c0_16, %c0_17], %27 {strides = array<i32>} : memref<1x128x128xf32, #tpu.memory_space<vmem>>, vector<1x128x128xf32>,
    } else {
    }
    return
  }
  func.func @transform_0(%arg0: i32, %arg1: i32, %arg2: i32) -> (i32, i32, i32) {
    %c0_i32 = arith.constant 0 : i32
    %c0_i32_0 = arith.constant 0 : i32
    return %arg0, %arg1, %c0_i32 : i32, i32, i32
  }
  func.func @transform_1(%arg0: i32, %arg1: i32, %arg2: i32) -> (i32, i32, i32) {
    %c0_i32 = arith.constant 0 : i32
    %c0_i32_0 = arith.constant 0 : i32
    %c0_i32_1 = arith.constant 0 : i32
    return %arg0, %c0_i32, %c0_i32_0 : i32, i32, i32
  }
  func.func @transform_2(%arg0: i32, %arg1: i32, %arg2: i32) -> (i32, i32) {
    %c0_i32 = arith.constant 0 : i32
    %c0_i32_0 = arith.constant 0 : i32
    return %c0_i32, %arg2 : i32, i32
  }
  func.func @transform_3(%arg0: i32, %arg1: i32, %arg2: i32) -> (i32, i32) {
    %c0_i32 = arith.constant 0 : i32
    %c0_i32_0 = arith.constant 0 : i32
    return %arg2, %c0_i32 : i32, i32
  }
  func.func @transform_4(%arg0: i32, %arg1: i32, %arg2: i32) -> (i32, i32, i32) {
    %c0_i32 = arith.constant 0 : i32
    %c0_i32_0 = arith.constant 0 : i32
    return %arg0, %arg1, %c0_i32 : i32, i32, i32
  }
}

</mosaic_0001>

<bundles_post_ra>
// kernel: tpu_custom_call.1
= control target key start
LH: loop header
LB: loop body
LE: loop exit
PB: predicated region body
PF: predicated region fallthrough
CT: control target
= control target key end

     0   :  { %s8322_s0 = inlined_call_operand.hbm [shape: f32[2,256,128], index: 0, kind: input, shape index: {}]   ;;  %s8323_s1 = inlined_call_operand.hbm [shape: f32[2,1,128], index: 1, kind: input, shape index: {}]   ;;  %s8324_s2 = inlined_call_operand.hbm [shape: bf16[128,2048], index: 2, kind: input, shape index: {}]   ;;  %s8325_s3 = inlined_call_operand.hbm [shape: bf16[1024,128], index: 3, kind: input, shape index: {}]   ;;  %s8326_s4 = inlined_call_operand.hbm [shape: f32[2,256,128], index: 4, kind: output, shape index: {}]  }
   0x1   :  { %8344 = sst [smem:[#allocation80_spill]] %s8322_s0 }
   0x2   :  { %8345 = sst [smem:[#allocation81_spill]] %s8323_s1 }
   0x3   :  { %8346 = sst [smem:[#allocation82_spill]] %s8326_s4 }
   0x4   :  { %9 = vsyncpa [#allocation5], 0 }
   0x5   :  { %11 = vsyncpa [#allocation5 + $0x1], 0 }
   0x6   :  { %12 = vsyncpa [#allocation8], 0 }
   0x7   :  { %14 = vsyncpa [#allocation8 + $0x1], 0 }
   0x8   :  { %15 = vsyncpa [#allocation11], 0 }
   0x9   :  { %17 = vsyncpa [#allocation11 + $0x1], 0 }
   0xa   :  { %18 = vsyncpa [#allocation6], 0 }
   0xb   :  { %20 = vsyncpa [#allocation6 + $0x1], 0  ;;  %s5091_s15 = smov 0   ;;  %s5093_s16 = smov 0  }
   0xc   :  { %s5095_s17 = smov 0   ;;  %s5097_s18 = smov 0  }
   0xd   :  { %s5099_s19 = smov 0   ;;  %s5101_s20 = smov 0  }
   0xe   :  { %s5103_s21 = smov 0   ;;  %s5105_s22 = smov 0  }
   0xf   :  { %s5107_s23 = smov 0   ;;  %s5109_s24 = smov 0  }
  0x10   :  { %s5111_s25 = smov 0   ;;  %s5113_s26 = smov 0  }
  0x11   :  { %s5115_s27 = smov 0   ;;  %s5117_s28 = smov 0  }
  0x12   :  { %s5119_s29 = smov 0   ;;  %s5121_s30 = smov 0  }
  0x13 LB: > { %8347 = sst [smem:[#allocation18_spill]] %s4998_s16  ;;  %s5172_s5 = sadd.s32 4294967295, %s5054_s30   ;;  %s5054_s30 = sphi %s5121_s30, %s26_s30   ;;  %s5050_s29 = sphi %s5119_s29, %s8702_s29   ;;  %s5046_s28 = sphi %s5117_s28, %s8712_s28   ;;  %s5042_s27 = sphi %s5115_s27, %s8711_s27   ;;  %s5038_s26 = sphi %s5113_s26, %s8710_s26   ;;  %s5034_s25 = sphi %s5111_s25, %s8698_s25   ;;  %s5030_s24 = sphi %s5109_s24, %s8709_s24   ;;  %s5026_s23 = sphi %s5107_s23, %s8697_s23   ;;  %s5022_s22 = sphi %s5105_s22, %s8708_s22   ;;  %s5018_s21 = sphi %s5103_s21, %s8707_s21   ;;  %s5014_s20 = sphi %s5101_s20, %s8695_s20   ;;  %s5010_s19 = sphi %s5099_s19, %s8706_s19   ;;  %s5006_s18 = sphi %s5097_s18, %s8705_s18   ;;  %s5002_s17 = sphi %s5095_s17, %s8704_s17   ;;  %s4998_s16 = sphi %s5093_s16, %s8703_s16   ;;  %s4994_s15 = sphi %s5091_s15, %s8692_s15  }
  0x14   : > { %8348 = sst [smem:[#allocation19_spill]] %s5014_s20  ;;  %s38_s6 = sadd.s32 1, %s5042_s27 }
  0x15   : > { %8349 = sst [smem:[#allocation20_spill]] %s5018_s21  ;;  %p39_p0 = scmp.ge.s32.totalorder %s38_s6, 2 }
  0x16   : > { %8350 = sst [smem:[#allocation21_spill]] %s5026_s23  ;;  %s41_s7 = sadd.s32 1, %s5046_s28 }
  0x17   : > { %8351 = sst [smem:[#allocation22_spill]] %s5030_s24  ;;  %s45_s8 = sadd.s32 1, %s5050_s29 }
  0x18   : > { %8352 = sst [smem:[#allocation23_spill]] %s5034_s25  ;;  %p62_p1 = scmp.eq.s32.totalorder %s5054_s30, 0 }
  0x19   : > { %8353 = sst [smem:[#allocation24_spill]] %s5038_s26  ;;  %s8714_s6 = smov (%p39_p0, %s38_s6), 0 }
  0x1a   : > { %8354 = sst [smem:[#allocation25_spill]] %s5046_s28  ;;  %s8716_s7 = smov (!%p39_p0, %s41_s7), %s5046_s28 }
  0x1b   : > { %8355 = sst [smem:[#allocation26_spill]] %s5050_s29  ;;  %p8332_p2 = scmp.eq.s32.totalorder %s5172_s5, 0 }
  0x1c   : > { %8356 = sst [smem:[#allocation27_spill]] %s8714_s6  ;;  %s80_s9 = sadd.s32 1, %s5014_s20 }
  0x1d   : > { %p43_p3 = scmp.ge.s32.totalorder %s8716_s7, 2  ;;  %p87_p4 = scmp.ne.s32.totalorder %s5014_s20, %s5010_s19 }
  0x1e   : > { %p93_p5 = scmp.ne.s32.totalorder %s5010_s19, %s5006_s18  ;;  %s103_s10 = ssub.s32 %s5042_s27, %s8714_s6 }
  0x1f   : > { %s8718_s7 = smov (%p43_p3, %s8716_s7), 0  ;;  %s8720_s8 = smov (!%p43_p3, %s45_s8), %s5050_s29 }
  0x20   : > { %8357 = sst [smem:[#allocation28_spill]] %s8718_s7  ;;  %s50_s11 = ssub.s32 %s5046_s28, %s8718_s7 }
  0x21   : > { %p5196_p6 = por %p87_p4, %p62_p1  ;;  %p47_p7 = scmp.ge.s32.totalorder %s8720_s8, 2 }
  0x22   : > { %p5202_p8 = por %p93_p5, %p8332_p2  ;;  %p104_p9 = scmp.eq.s32.totalorder %s103_s10, 0 }
  0x23   : > { %s106_s14 = sadd.s32 1, %s5002_s17  ;;  %s8722_s8 = smov (%p47_p7, %s8720_s8), 0 }
  0x24   : > { %8360 = sst [smem:[#allocation29_spill]] %s8722_s8  ;;  %s49_s7 = ssub.s32 %s5050_s29, %s8722_s8 }
  0x25   : > { %s5210_s18 = scalar_select %p104_p9, %s5002_s17, %s106_s14  }
  0x26   : > { %p113_p10 = scmp.ne.s32.totalorder %s5002_s17, %s4998_s16  ;;  %s51_s6 = sor.u32 %s50_s11, %s49_s7 }
  0x27   : > { %8361 = sst [smem:[#allocation30_spill]] %s5210_s18  ;;  %p78_p11 = scmp.eq.s32.totalorder %s49_s7, 0 }
  0x28   : > { %p52_p12 = scmp.eq.s32.totalorder %s51_s6, 0  ;;  %p5218_p13 = por %p113_p10, %p62_p1 }
  0x29   : > { %s5223_s10 = scalar_select %p78_p11, %s5014_s20, %s80_s9  }
  0x2a   : > { %p119_p0 = scmp.ne.s32.totalorder %s4998_s16, %s4994_s15  ;;  %p8331_p3 = scmp.lt.s32.totalorder %s5054_s30, 8 }
  0x2b   : > { %8363 = sst [smem:[#allocation31_spill]] %s5223_s10  ;;  %s221_s14 = sand.u32 1, %s5054_s30  }
  0x2c   : > { %p5231_p4 = por %p119_p0, %p8332_p2  ;;  %s223_s7 = sand.u32 1, %s5014_s20  }
  0x2d   : > { %s8366_s1 = sld [smem:[#allocation81_spill]]  ;;  %s224_s15 = scalar_lea.vmem [#allocation7], %s223_s7 }
  0x2e   : > { %s8364_s11 = scalar_select %p5231_p4, 1, 0 }
  0x2f   : > { %s231_s10 = sshll.u32 %s224_s15, 4  ;;  %p4316_p5 = pnand %p8331_p3, %p5196_p6  ;;  %s232_s10 = int_to_ptr.vmem [resolvable:$true] %s231_s10 }
  0x30   : > { %8365 = sst [smem:[#allocation32_spill]] %s8364_s11  ;;  %p5248_p7 = pnand %p8331_p3, %p5218_p13 }
  0x31   : > { %p3656_p9 = scmp.ge.s32.totalorder %s5054_s30, 1  ;;  %p280_p10 = scmp.lt.s32.totalorder %s5054_s30, 9 }
  0x32   : > { %s3643_s18 = sadd.s32 4294967294, %s5054_s30   ;;  %s54_s4 = sadd.s32 1, %s5026_s23 }
  0x33   : > { %s227_s26 = scalar_lea.hbm %s8366_s1, %s5050_s29  ;;  %p5257_p11 = pnand %p3656_p9, %p280_p10 }
  0x34   : > { %s229_s9 = sshll.u32 %s227_s26, 4  ;;  %s5254_s26 = scalar_lea.sflag [#allocation8], %s221_s14  ;;  %s230_s9 = int_to_ptr.hbm [resolvable:$true] %s229_s9 }
  0x35   : > { %4318 = dma.hbm_to_vmem [thread:$0]  (!%p4316_p5), %s230_s9, 16, %s232_s10, %s5254_s26  }
  0x36   : > { %s5265_s7 = scalar_select %p52_p12, %s5026_s23, %s54_s4  }
  0x37   : > { %p61_p6 = scmp.ne.s32.totalorder %s5026_s23, %s5022_s22  ;;  %p67_p13 = scmp.ne.s32.totalorder %s5022_s22, %s5018_s21 }
  0x38   : > { %8369 = sst [smem:[#allocation33_spill]] %s5265_s7  ;;  %p171_p0 = scmp.eq.s32.totalorder %s5172_s5, 7 }
  0x39   : > { %p177_p3 = scmp.eq.s32.totalorder %s3643_s18, 7  ;;  %p5274_p2 = por %p62_p1, %p61_p6 }
  0x3a   : > { %p8371_p5 = scmp.eq.s32.totalorder %s5172_s5, 0  ;;  %p5284_p10 = por %p171_p0, %p61_p6 }
  0x3b   : > { %p5288_p12 = por %p177_p3, %p67_p13  ;;  %s197_s15 = sand.u32 1, %s5026_s23  }
  0x3c   : > { %p5280_p9 = por %p8371_p5, %p67_p13  ;;  %s3647_s18 = sshll.u32 %s5046_s28, 4 }
  0x3d   : > { %s8373_s6 = scalar_select %p5284_p10, 1, 0 }
  0x3e   : > { %s8375_s9 = scalar_select %p5288_p12, 1, 0 }
  0x3f   : > { %8374 = sst [smem:[#allocation34_spill]] %s8373_s6  ;;  %s3646_s4 = sshll.u32 %s197_s15, 7 }
  0x40   : > { %8376 = sst [smem:[#allocation35_spill]] %s8375_s9  ;;  %s3648_s1 = sshll.u32 %s5050_s29, 5 }
  0x41   : > { %s206_s7 = sadd.s32 %s3648_s1, %s3647_s18  ;;  %s201_s20 = scalar_lea.vmem [#allocation4], %s3646_s4 }
  0x42   : > { %s211_s21 = sshll.u32 %s201_s20, 4  ;;  %s3649_s25 = sshll.u32 %s206_s7, 3  ;;  %s212_s21 = int_to_ptr.vmem [resolvable:$true] %s211_s21 }
  0x43   : > { %s8377_s0 = sld [smem:[#allocation80_spill]]  ;;  %p8378_p1 = scmp.lt.s32.totalorder %s5054_s30, 8 }
  0x44   : > { %s5303_s9 = sand.u32 1, %s5002_s17   ;;  %s198_s29 = scalar_lea.sflag [#allocation5], %s197_s15 }
  0x45   : > { %p4313_p3 = pnand %p8378_p1, %p5274_p2  ;;  %s5056_s1 = smov 128  }
  0x46   : > { %s5057_s20 = smov 8   ;;  %s3650_s7 = sshll.u32 %s5303_s9, 9 }
  0x47   : > { %s4149_s18 = sshll.u32 %s5042_s27, 5  ;;  %s5059_s15 = smov 512  }
  0x48   : > { %s247_s11 = scalar_lea.hbm %s8324_s2, %s4149_s18  ;;  %s5060_s28 = smov 32  }
  0x49   : > { %s208_s16 = scalar_lea.hbm %s8377_s0, %s3649_s25  ;;  %s248_s14 = sshll.u32 %s247_s11, 4  ;;  %s249_s14 = int_to_ptr.hbm [resolvable:$true] %s248_s14 }
  0x4a   : > { %s209_s6 = sshll.u32 %s208_s16, 4  ;;  %s242_s16 = scalar_lea.vmem [#allocation9], %s3650_s7  ;;  %s210_s6 = int_to_ptr.hbm [resolvable:$true] %s209_s6 }
  0x4b   : > { %4315 = dma.hbm_to_vmem [thread:$0]  (!%p4313_p3), %s210_s6, 2048, %s212_s21, %s198_s29, %s5056_s1, %s5056_s1, %s5057_s20  }
  0x4c   : > { %s250_s4 = sshll.u32 %s242_s16, 4  ;;  %s5058_s0 = smov 1024   ;;  %s251_s4 = int_to_ptr.vmem [resolvable:$true] %s250_s4 }
  0x4d   : > { %4321 = dma.hbm_to_vmem [thread:$0]  (!%p5248_p7), %s249_s14, 8192, %s251_s4, %s5254_s26, %s5058_s0, %s5059_s15, %s5060_s28  }
  0x4e   : > { %s3653_s23 = sshll.u32 %s5303_s9, 8  ;;  %s4150_s21 = sshll.u32 %s5042_s27, 8 }
  0x4f   : > { %s269_s1 = scalar_lea.hbm %s8325_s3, %s4150_s21  ;;  %s264_s18 = scalar_lea.vmem [#allocation10], %s3653_s23 }
  0x50   : > { %s270_s20 = sshll.u32 %s269_s1, 4  ;;  %s272_s24 = sshll.u32 %s264_s18, 4  ;;  %s271_s20 = int_to_ptr.hbm [resolvable:$true] %s270_s20  ;;  %s273_s24 = int_to_ptr.vmem [resolvable:$true] %s272_s24 }
  0x51   : > { %s261_s7 = scalar_lea.sflag [#allocation11], %s5303_s9  ;;  %s5061_s25 = smov 64  }
  0x52   : > { %s5062_s11 = smov 4   ;;  %284 = sbr.rel (%p5257_p11) target bundleno = 1109 (0x455), region = 36 }
  0x53   : > { %4324 = dma.hbm_to_vmem [thread:$0]  (!%p5248_p7), %s271_s20, 4096, %s273_s24, %s261_s7, %s5061_s25, %s5061_s25, %s5062_s11  }
  0x57   : > { %s5324_s0 = sand.u32 1, %s5022_s22  }
  0x58   : > { %s3657_s28 = sshll.u32 %s5324_s0, 7  ;;  %s287_s26 = scalar_lea.sflag [#allocation5], %s5324_s0 }
  0x59   : > { %s5328_s23 = scalar_lea.vmem [#allocation4], %s3657_s28 }
  0x5a   : > { %4973 = dma.done.wait (%p5280_p9), %s287_s26, 2048  }
  0x5b   : > { %4975 = vsyncadd (%p5280_p9), %s287_s26, 4294965248  ;;  %s296_s8 = sand.u32 1, %s5172_s5   ;;  %s298_s12 = sand.u32 1, %s5010_s19  }
  0x5c   : > { %s297_s9 = scalar_lea.sflag [#allocation8], %s296_s8  ;;  %s5336_s14 = scalar_lea.vmem [#allocation7], %s298_s12 }
  0x5d   : > { %4977 = dma.done.wait (%p5202_p8), %s297_s9, 16  }
  0x5e   : > { %4979 = vsyncadd (%p5202_p8), %s297_s9, 4294967280  ;;  %s8379_s16 = sld [smem:[#allocation18_spill]] }
  0x64   : > { %s307_s15 = sand.u32 1, %s8379_s16  }
  0x65   : > { %s3658_s21 = sshll.u32 %s307_s15, 9 }
  0x66   : > { %s5343_s29 = scalar_lea.vmem [#allocation9], %s3658_s21 }
  0x67   : > { %4981 = dma.done.wait (%p5231_p4), %s297_s9, 8192  }
  0x68   : > { %4983 = vsyncadd (%p5231_p4), %s297_s9, 4294959104  ;;  %s3659_s5 = sshll.u32 %s307_s15, 8  ;;  %s316_s10 = scalar_lea.sflag [#allocation11], %s307_s15 }
  0x69   : > { %s5349_s6 = scalar_lea.vmem [#allocation10], %s3659_s5 }
  0x6a   : > { %4985 = dma.done.wait (%p5231_p4), %s316_s10, 4096  }
  0x6b   : > { %4987 = vsyncadd (%p5231_p4), %s316_s10, 4294963200  ;;  %s5355_s13 = scalar_lea.vmem [#allocation12], %s3657_s28  ;;  %s8381_s1 = sld [smem:[#allocation22_spill]] }
  0x71   : > { %p3661_p2 = scmp.ne.s32.totalorder %s8381_s1, 0 }
  0x73   : > { %366 = sbr.rel (%p3661_p2) target bundleno = 311 (0x137), region = 56 }
  0x78   : > { %v5359_v0 = vld [vmem:[%s5328_s23 + $0x20] sm:$0xff]  ;;  %v5362_v1 = vld [vmem:[%s5328_s23 + $0x10] sm:$0xff]  ;;  %v5377_v6 = vld [vmem:[%s5328_s23 + $0x28] sm:$0xff]  ;;  %v5063_v32 = vmov 128.0  }
  0x79   : > { %v5365_v2 = vld [vmem:[%s5328_s23] sm:$0xff]  ;;  %v388_v3 = vmul.f32 %v5359_v0, %v5359_v0  ;;  %702 = vst [vmem:[#allocation3 + $0x68] sm:$0xff] %v5359_v0  ;;  %v386_v4 = vmul.f32 %v5362_v1, %v5362_v1  ;;  %v5381_v7 = vld [vmem:[%s5328_s23 + $0x18] sm:$0xff]  ;;  %v5385_v8 = vld [vmem:[%s5328_s23 + $0x8] sm:$0xff]  ;;  %v389_v10 = vmul.f32 %v5377_v6, %v5377_v6  ;;  %4470 = vrcp.f32 %v5063_v32 }
  0x7a   : > { %v384_v5 = vmul.f32 %v5365_v2, %v5365_v2  ;;  %700 = vst [vmem:[#allocation3 + $0x50] sm:$0xff] %v5362_v1  ;;  %v5389_v9 = vld [vmem:[%s5328_s23 + $0x40] sm:$0xff]  ;;  %v387_v11 = vmul.f32 %v5381_v7, %v5381_v7  ;;  %v5397_v12 = vld [vmem:[%s5328_s23 + $0x38] sm:$0xff]  ;;  %v385_v13 = vmul.f32 %v5385_v8, %v5385_v8  ;;  %v5403_v14 = vld [vmem:[%s5328_s23 + $0x30] sm:$0xff] }
  0x7b   : > { %408 = vadd.xlane.f32.xlu2 %v388_v3  ;;  %404 = vadd.xlane.f32.xlu1 %v386_v4  ;;  %698 = vst [vmem:[#allocation3] sm:$0xff] %v5365_v2  ;;  %v5407_v15 = vld [vmem:[%s5328_s23 + $0x58] sm:$0xff]  ;;  %v5411_v16 = vld [vmem:[%s5328_s23 + $0x50] sm:$0xff]  ;;  %v5415_v17 = vld [vmem:[%s5328_s23 + $0x48] sm:$0xff]  ;;  %v392_v21 = vmul.f32 %v5389_v9, %v5389_v9  ;;  %v391_v22 = vmul.f32 %v5397_v12, %v5397_v12 }
  0x7c   : > { %400 = vadd.xlane.f32.xlu0 %v384_v5  ;;  %703 = vst [vmem:[#allocation3 + $0x20] sm:$0xff] %v5377_v6  ;;  %v5419_v18 = vld [vmem:[%s5328_s23 + $0x70] sm:$0xff]  ;;  %v5423_v19 = vld [vmem:[%s5328_s23 + $0x68] sm:$0xff]  ;;  %v5427_v20 = vld [vmem:[%s5328_s23 + $0x60] sm:$0xff]  ;;  %v390_v24 = vmul.f32 %v5403_v14, %v5403_v14  ;;  %v395_v25 = vmul.f32 %v5407_v15, %v5407_v15  ;;  %v394_v26 = vmul.f32 %v5411_v16, %v5411_v16 }
  0x7d   : > { %701 = vst [vmem:[#allocation3 + $0x60] sm:$0xff] %v5381_v7  ;;  %v5435_v23 = vld [vmem:[%s5328_s23 + $0x78] sm:$0xff]  ;;  %v393_v27 = vmul.f32 %v5415_v17, %v5415_v17  ;;  %v398_v28 = vmul.f32 %v5419_v18, %v5419_v18  ;;  %v397_v29 = vmul.f32 %v5423_v19, %v5423_v19  ;;  %v396_v30 = vmul.f32 %v5427_v20, %v5427_v20 }
  0x7e   : > { %699 = vst [vmem:[#allocation3 + $0x18] sm:$0xff] %v5385_v8  ;;  %v399_v31 = vmul.f32 %v5435_v23, %v5435_v23 }
  0x7f   : > { %706 = vst [vmem:[#allocation3 + $0x28] sm:$0xff] %v5389_v9  ;;  %v4471_v33 = vpop.eup %4470 }
  0x80   : > { %705 = vst [vmem:[#allocation3 + $0x10] sm:$0xff] %v5397_v12  ;;  %v433_v34 = vmul.f32 128.0, %v4471_v33  ;;  %vm437_vm0 = vweird.f32 %v4471_v33 }
  0x81   : > { %704 = vst [vmem:[#allocation3 + $0x70] sm:$0xff] %v5403_v14 }
  0x82   : > { %709 = vst [vmem:[#allocation3 + $0x8] sm:$0xff] %v5407_v15  ;;  %v434_v35 = vsub.f32 1.0, %v433_v34 }
  0x83   : > { %410 = vadd.xlane.f32.xlu2 %v389_v10  ;;  %406 = vadd.xlane.f32.xlu1 %v387_v11  ;;  %708 = vst [vmem:[#allocation3 + $0x38] sm:$0xff] %v5411_v16 }
  0x84   : > { %402 = vadd.xlane.f32.xlu0 %v385_v13  ;;  %707 = vst [vmem:[#allocation3 + $0x40] sm:$0xff] %v5415_v17  ;;  %v435_v36 = vmul.f32 %v4471_v33, %v434_v35 }
  0x85   : > { %712 = vst [vmem:[#allocation3 + $0x78] sm:$0xff] %v5419_v18 }
  0x86   : > { %711 = vst [vmem:[#allocation3 + $0x48] sm:$0xff] %v5423_v19  ;;  %v436_v37 = vadd.f32 %v4471_v33, %v435_v36 }
  0x87   : > { %710 = vst [vmem:[#allocation3 + $0x58] sm:$0xff] %v5427_v20 }
  0x88   : > { %713 = vst [vmem:[#allocation3 + $0x30] sm:$0xff] %v5435_v23  ;;  %v5454_v38 = vsel %vm437_vm0, %v4471_v33, %v436_v37 }
  0x8b   : > { %416 = vadd.xlane.f32.xlu2 %v392_v21  ;;  %414 = vadd.xlane.f32.xlu1 %v391_v22 }
  0x8c   : > { %412 = vadd.xlane.f32.xlu0 %v390_v24 }
  0x93   : > { %422 = vadd.xlane.f32.xlu2 %v395_v25  ;;  %420 = vadd.xlane.f32.xlu1 %v394_v26 }
  0x94   : > { %418 = vadd.xlane.f32.xlu0 %v393_v27 }
  0x9b   : > { %428 = vadd.xlane.f32.xlu2 %v398_v28  ;;  %426 = vadd.xlane.f32.xlu1 %v397_v29 }
  0x9c   : > { %424 = vadd.xlane.f32.xlu0 %v396_v30 }
  0xa4   : > { %430 = vadd.xlane.f32.xlu0 %v399_v31 }
  0xee   : > { %v409_v39 = vpop.xlane.xlu2 %408  ;;  %v405_v40 = vpop.xlane.xlu1 %404 }
  0xef   : > { %v443_v41 = vmul.f32 %v5454_v38, %v409_v39  ;;  %v441_v42 = vmul.f32 %v5454_v38, %v405_v40  ;;  %v401_v43 = vpop.xlane.xlu0 %400 }
  0xf0   : > { %v439_v44 = vmul.f32 %v5454_v38, %v401_v43 }
  0xf1   : > { %v459_v45 = vadd.f32 1e-06, %v443_v41  ;;  %v5459_v46 = vadd.f32 1e-06, %v441_v42  ;;  %v5519_v41 = vld [vmem:[%s5336_s14] ss:$0 sm:$0xff] }
  0xf2   : > { %v5461_v47 = vadd.f32 1e-06, %v439_v44 }
  0xf3   : > { %4472 = vrsqrt.f32 %v459_v45  ;;  %vm517_vm1 = vweird.f32 %v459_v45  ;;  %vm497_vm2 = vweird.f32 %v5459_v46 }
  0xf4   : > { %4474 = vrsqrt.f32 %v5459_v46  ;;  %vm477_vm3 = vweird.f32 %v5461_v47 }
  0xf5   : > { %4476 = vrsqrt.f32 %v5461_v47 }
  0xf6   : > { %v411_v48 = vpop.xlane.xlu2 %410  ;;  %v407_v49 = vpop.xlane.xlu1 %406 }
  0xf7   : > { %v444_v50 = vmul.f32 %v5454_v38, %v411_v48  ;;  %v442_v51 = vmul.f32 %v5454_v38, %v407_v49  ;;  %v403_v52 = vpop.xlane.xlu0 %402 }
  0xf8   : > { %v440_v53 = vmul.f32 %v5454_v38, %v403_v52 }
  0xf9   : > { %v5468_v54 = vpop.eup %4472  ;;  %v5470_v55 = vadd.f32 1e-06, %v444_v50  ;;  %v5472_v56 = vadd.f32 1e-06, %v442_v51 }
  0xfa   : > { %v5474_v57 = vpop.eup %4474  ;;  %v512_v58 = vmul.f32 %v5468_v54, %v459_v45  ;;  %v5477_v59 = vadd.f32 1e-06, %v440_v53  ;;  %vm518_vm4 = vweird.f32 %v5468_v54 }
  0xfb   : > { %v5479_v60 = vpop.eup %4476  ;;  %v492_v61 = vmul.f32 %v5474_v57, %v5459_v46  ;;  %4478 = vrsqrt.f32 %v5470_v55  ;;  %vm498_vm5 = vweird.f32 %v5474_v57  ;;  %vm527_vm6 = vweird.f32 %v5470_v55  ;;  %vm5522_vm7 = vmor %vm517_vm1, %vm518_vm4 }
  0xfc   : > { %v513_v62 = vmul.f32 %v5468_v54, %v512_v58  ;;  %v472_v63 = vmul.f32 %v5479_v60, %v5461_v47  ;;  %4480 = vrsqrt.f32 %v5472_v56  ;;  %vm478_vm8 = vweird.f32 %v5479_v60  ;;  %vm5539_vm10 = vmor %vm497_vm2, %vm498_vm5 }
  0xfd   : > { %v493_v3 = vmul.f32 %v5474_v57, %v492_v61  ;;  %4482 = vrsqrt.f32 %v5477_v59  ;;  %vm507_vm9 = vweird.f32 %v5472_v56  ;;  %vm487_vm13 = vweird.f32 %v5477_v59  ;;  %vm5553_vm14 = vmor %vm477_vm3, %vm478_vm8 }
  0xfe   : > { %v514_v4 = vmul.f32 0.5, %v513_v62  ;;  %v473_v5 = vmul.f32 %v5479_v60, %v472_v63  ;;  %v417_v10 = vpop.xlane.xlu2 %416  ;;  %v415_v11 = vpop.xlane.xlu1 %414 }
  0xff   : > { %v494_v13 = vmul.f32 0.5, %v493_v3  ;;  %v447_v21 = vmul.f32 %v5454_v38, %v417_v10  ;;  %v413_v22 = vpop.xlane.xlu0 %412  ;;  %v446_v26 = vmul.f32 %v5454_v38, %v415_v11 }
 0x100   : > { %v515_v24 = vsub.f32 1.5, %v514_v4  ;;  %v474_v25 = vmul.f32 0.5, %v473_v5  ;;  %v445_v48 = vmul.f32 %v5454_v38, %v413_v22 }
 0x101   : > { %v5493_v27 = vpop.eup %4478  ;;  %v495_v28 = vsub.f32 1.5, %v494_v13  ;;  %v5497_v29 = vadd.f32 1e-06, %v447_v21  ;;  %v5516_v40 = vadd.f32 1e-06, %v446_v26 }
 0x102   : > { %v5499_v30 = vpop.eup %4480  ;;  %v516_v31 = vmul.f32 %v5468_v54, %v515_v24  ;;  %v475_v32 = vsub.f32 1.5, %v474_v25  ;;  %v522_v33 = vmul.f32 %v5493_v27, %v5470_v55  ;;  %vm528_vm11 = vweird.f32 %v5493_v27 }
 0x103   : > { %v5505_v34 = vpop.eup %4482  ;;  %v502_v35 = vmul.f32 %v5499_v30, %v5472_v56  ;;  %4484 = vrsqrt.f32 %v5497_v29  ;;  %v496_v36 = vmul.f32 %v5474_v57, %v495_v28  ;;  %vm508_vm12 = vweird.f32 %v5499_v30  ;;  %vm529_vm0 = vmor %vm527_vm6, %vm528_vm11 }
 0x104   : > { %v523_v37 = vmul.f32 %v5493_v27, %v522_v33  ;;  %v482_v39 = vmul.f32 %v5505_v34, %v5477_v59  ;;  %v476_v43 = vmul.f32 %v5479_v60, %v475_v32  ;;  %v520_v49 = vsel %vm5522_vm7, %v5468_v54, %v516_v31  ;;  %vm509_vm1 = vmor %vm507_vm9, %vm508_vm12 }
 0x105   : > { %v503_v44 = vmul.f32 %v5499_v30, %v502_v35  ;;  %v500_v61 = vsel %vm5539_vm10, %v5474_v57, %v496_v36  ;;  %4486 = vrsqrt.f32 %v5516_v40  ;;  %v638_v4 = vmul.f32 %v5519_v41, %v520_v49 }
 0x106   : > { %v524_v50 = vmul.f32 0.5, %v523_v37  ;;  %v483_v45 = vmul.f32 %v5505_v34, %v482_v39  ;;  %v423_v51 = vpop.xlane.xlu2 %422  ;;  %v421_v54 = vpop.xlane.xlu1 %420  ;;  %v480_v57 = vsel %vm5553_vm14, %v5479_v60, %v476_v43  ;;  %v5564_v10 = vadd.f32 1e-06, %v445_v48 }
 0x107   : > { %v504_v53 = vmul.f32 0.5, %v503_v44  ;;  %v419_v58 = vpop.xlane.xlu0 %418  ;;  %vm488_vm15 = vweird.f32 %v5505_v34  ;;  %v636_v21 = vmul.f32 %v5519_v41, %v500_v61  ;;  %v450_v22 = vmul.f32 %v5454_v38, %v423_v51 }
 0x108   : > { %v525_v62 = vsub.f32 1.5, %v524_v50  ;;  %v484_v63 = vmul.f32 0.5, %v483_v45  ;;  %4488 = vrsqrt.f32 %v5564_v10  ;;  %v634_v24 = vmul.f32 %v5519_v41, %v480_v57  ;;  %vm489_vm2 = vmor %vm487_vm13, %vm488_vm15 }
 0x109   : > { %v5558_v3 = vpop.eup %4484  ;;  %v505_v5 = vsub.f32 1.5, %v504_v53  ;;  %v449_v55 = vmul.f32 %v5454_v38, %v421_v54  ;;  %v654_v28 = vmul.f32 %v638_v4, %v5359_v0  ;;  %v448_v59 = vmul.f32 %v5454_v38, %v419_v58 }
 0x10a   : > { %v526_v47 = vmul.f32 %v5493_v27, %v525_v62  ;;  %v485_v11 = vsub.f32 1.5, %v484_v63  ;;  %v552_v13 = vmul.f32 %v5558_v3, %v5497_v29  ;;  %v652_v43 = vmul.f32 %v636_v21, %v5362_v1 }
 0x10b   : > { %v506_v60 = vmul.f32 %v5499_v30, %v505_v5  ;;  %v4487_v33 = vpop.eup %4486  ;;  %v5598_v37 = vadd.f32 1e-06, %v449_v55  ;;  %v650_v44 = vmul.f32 %v634_v24, %v5365_v2  ;;  %vm557_vm3 = vweird.f32 %v5497_v29 }
 0x10c   : > { %v530_v25 = vsel %vm529_vm0, %v5493_v27, %v526_v47  ;;  %v486_v26 = vmul.f32 %v5505_v34, %v485_v11  ;;  %v5593_v27 = vadd.f32 1e-06, %v450_v22  ;;  %v553_v36 = vmul.f32 %v5558_v3, %v552_v13 }
 0x10d   : > { %v639_v31 = vmul.f32 %v5519_v41, %v530_v25  ;;  %v510_v32 = vsel %vm509_vm1, %v5499_v30, %v506_v60  ;;  %v542_v39 = vmul.f32 %v4487_v33, %v5516_v40  ;;  %vm547_vm4 = vweird.f32 %v5516_v40 }
 0x10e   : > { %v637_v56 = vmul.f32 %v5519_v41, %v510_v32  ;;  %v490_v35 = vsel %vm489_vm2, %v5505_v34, %v486_v26  ;;  %4490 = vrsqrt.f32 %v5593_v27  ;;  %v4489_v34 = vpop.eup %4488  ;;  %v429_v45 = vpop.xlane.xlu2 %428  ;;  %v554_v53 = vmul.f32 0.5, %v553_v36 }
 0x10f   : > { %v655_v0 = vmul.f32 %v639_v31, %v5377_v6  ;;  %v635_v30 = vmul.f32 %v5519_v41, %v490_v35  ;;  %v425_v42 = vpop.xlane.xlu0 %424  ;;  %v543_v6 = vmul.f32 %v4487_v33, %v542_v39  ;;  %4492 = vrsqrt.f32 %v5598_v37  ;;  %v427_v51 = vpop.xlane.xlu1 %426 }
 0x110   : > { %v653_v48 = vmul.f32 %v637_v56, %v5381_v7  ;;  %v532_v54 = vmul.f32 %v4489_v34, %v5564_v10  ;;  %v5612_v7 = vadd.f32 1e-06, %v448_v59  ;;  %v453_v58 = vmul.f32 %v5454_v38, %v429_v45 }
 0x111   : > { %v4268_v49 = vpack.c.bf16 %v655_v0, %v654_v28  ;;  %v651_v50 = vmul.f32 %v635_v30, %v5385_v8  ;;  %v544_v2 = vmul.f32 0.5, %v543_v6  ;;  %v452_v61 = vmul.f32 %v5454_v38, %v427_v51 }
 0x112   : > { %v4263_v52 = vpack.c.bf16 %v653_v48, %v652_v43  ;;  %v533_v8 = vmul.f32 %v4489_v34, %v532_v54  ;;  %vm558_vm5 = vweird.f32 %v5558_v3  ;;  %vm548_vm6 = vweird.f32 %v4487_v33 }
 0x113   : > { %4296 = vst [vmem:[#allocation2 + $0x18] sm:$0xff] %v4268_v49   ;;  %v4258_v1 = vpack.c.bf16 %v651_v50, %v650_v44  ;;  %v545_v46 = vsub.f32 1.5, %v544_v2  ;;  %4494 = vrsqrt.f32 %v5612_v7  ;;  %v555_v63 = vsub.f32 1.5, %v554_v53  ;;  %vm549_vm8 = vmor %vm547_vm4, %vm548_vm6 }
 0x114   : > { %4295 = vst [vmem:[#allocation2] sm:$0xff] %v4263_v52   ;;  %v4491_v62 = vpop.eup %4490  ;;  %v534_v4 = vmul.f32 0.5, %v533_v8  ;;  %v5619_v57 = vadd.f32 1e-06, %v453_v58  ;;  %v5621_v5 = vadd.f32 1e-06, %v452_v61  ;;  %vm537_vm7 = vweird.f32 %v5564_v10  ;;  %vm5650_vm14 = vmor %vm557_vm3, %vm558_vm5 }
 0x115   : > { %4259 = vst [vmem:[#allocation2 + $0x30] sm:$0xff] %v4258_v1   ;;  %v4493_v47 = vpop.eup %4492  ;;  %v546_v11 = vmul.f32 %v4487_v33, %v545_v46  ;;  %v582_v13 = vmul.f32 %v4491_v62, %v5593_v27  ;;  %v451_v21 = vmul.f32 %v5454_v38, %v425_v42  ;;  %vm538_vm9 = vweird.f32 %v4489_v34 }
 0x116   : > { %v535_v60 = vsub.f32 1.5, %v534_v4  ;;  %v572_v22 = vmul.f32 %v4493_v47, %v5598_v37  ;;  %4496 = vrsqrt.f32 %v5619_v57  ;;  %vm587_vm10 = vweird.f32 %v5593_v27  ;;  %vm539_vm11 = vmor %vm537_vm7, %vm538_vm9 }
 0x117   : > { %v431_v24 = vpop.xlane.xlu0 %430  ;;  %v550_v25 = vsel %vm549_vm8, %v4487_v33, %v546_v11  ;;  %v583_v26 = vmul.f32 %v4491_v62, %v582_v13  ;;  %4498 = vrsqrt.f32 %v5621_v5  ;;  %v556_v55 = vmul.f32 %v5558_v3, %v555_v63 }
 0x118   : > { %v641_v28 = vmul.f32 %v5519_v41, %v550_v25  ;;  %v536_v31 = vmul.f32 %v4489_v34, %v535_v60  ;;  %v573_v40 = vmul.f32 %v4493_v47, %v572_v22  ;;  %vm577_vm12 = vweird.f32 %v5598_v37 }
 0x119   : > { %v4495_v32 = vpop.eup %4494  ;;  %v584_v56 = vmul.f32 0.5, %v583_v26  ;;  %v5637_v35 = vadd.f32 1e-06, %v451_v21  ;;  %v454_v33 = vmul.f32 %v5454_v38, %v431_v24  ;;  %vm588_vm13 = vweird.f32 %v4491_v62 }
 0x11a   : > { %v540_v36 = vsel %vm539_vm11, %v4489_v34, %v536_v31  ;;  %v574_v0 = vmul.f32 0.5, %v573_v40  ;;  %v562_v30 = vmul.f32 %v4495_v32, %v5612_v7  ;;  %v657_v39 = vmul.f32 %v641_v28, %v5397_v12  ;;  %vm589_vm0 = vmor %vm587_vm10, %vm588_vm13 }
 0x11b   : > { %v640_v59 = vmul.f32 %v5519_v41, %v540_v36  ;;  %v585_v42 = vsub.f32 1.5, %v584_v56  ;;  %4500 = vrsqrt.f32 %v5637_v35  ;;  %vm578_vm15 = vweird.f32 %v4493_v47 }
 0x11c   : > { %v5644_v10 = vpop.eup %4496  ;;  %v575_v43 = vsub.f32 1.5, %v574_v0  ;;  %v563_v44 = vmul.f32 %v4495_v32, %v562_v30  ;;  %v5654_v48 = vadd.f32 1e-06, %v454_v33  ;;  %v560_v34 = vsel %vm5650_vm14, %v5558_v3, %v556_v55  ;;  %vm579_vm2 = vmor %vm577_vm12, %vm578_vm15 }
 0x11d   : > { %v4499_v12 = vpop.eup %4498  ;;  %v656_v49 = vmul.f32 %v640_v59, %v5403_v14  ;;  %v586_v50 = vmul.f32 %v4491_v62, %v585_v42  ;;  %v612_v29 = vmul.f32 %v5644_v10, %v5619_v57  ;;  %vm568_vm1 = vweird.f32 %v4495_v32 }
 0x11e   : > { %v576_v6 = vmul.f32 %v4493_v47, %v575_v43  ;;  %v564_v45 = vmul.f32 0.5, %v563_v44  ;;  %v602_v51 = vmul.f32 %v4499_v12, %v5621_v5  ;;  %4502 = vrsqrt.f32 %v5654_v48 }
 0x11f   : > { %v4273_v52 = vpack.c.bf16 %v657_v39, %v656_v49  ;;  %v590_v53 = vsel %vm589_vm0, %v4491_v62, %v586_v50  ;;  %v613_v14 = vmul.f32 %v5644_v10, %v612_v29  ;;  %v642_v8 = vmul.f32 %v5519_v41, %v560_v34 }
 0x120   : > { %v645_v3 = vmul.f32 %v5519_v41, %v590_v53  ;;  %v580_v54 = vsel %vm579_vm2, %v4493_v47, %v576_v6  ;;  %v565_v27 = vsub.f32 1.5, %v564_v45  ;;  %v603_v1 = vmul.f32 %v4499_v12, %v602_v51 }
 0x121   : > { %v4501_v2 = vpop.eup %4500  ;;  %4297 = vst [vmem:[#allocation2 + $0x10] sm:$0xff] %v4273_v52   ;;  %v644_v58 = vmul.f32 %v5519_v41, %v580_v54  ;;  %vm567_vm3 = vweird.f32 %v5612_v7  ;;  %v614_v61 = vmul.f32 0.5, %v613_v14  ;;  %vm607_vm5 = vweird.f32 %v5621_v5 }
 0x122   : > { %v661_v37 = vmul.f32 %v645_v3, %v5407_v15  ;;  %v566_v46 = vmul.f32 %v4495_v32, %v565_v27  ;;  %v604_v62 = vmul.f32 0.5, %v603_v1  ;;  %v592_v63 = vmul.f32 %v4501_v2, %v5637_v35  ;;  %vm569_vm4 = vmor %vm567_vm3, %vm568_vm1 }
 0x123   : > { %v660_v4 = vmul.f32 %v644_v58, %v5411_v16  ;;  %vm608_vm6 = vweird.f32 %v4499_v12  ;;  %v615_v11 = vsub.f32 1.5, %v614_v61  ;;  %v658_v15 = vmul.f32 %v642_v8, %v5389_v9 }
 0x124   : > { %v570_v47 = vsel %vm569_vm4, %v4495_v32, %v566_v46  ;;  %v605_v13 = vsub.f32 1.5, %v604_v62  ;;  %v593_v21 = vmul.f32 %v4501_v2, %v592_v63  ;;  %v4503_v60 = vpop.eup %4502  ;;  %vm617_vm7 = vweird.f32 %v5619_v57  ;;  %vm609_vm9 = vmor %vm607_vm5, %vm608_vm6 }
 0x125   : > { %v4283_v7 = vpack.c.bf16 %v661_v37, %v660_v4  ;;  %v643_v22 = vmul.f32 %v5519_v41, %v570_v47  ;;  %v622_v26 = vmul.f32 %v4503_v60, %v5654_v48  ;;  %vm618_vm8 = vweird.f32 %v5644_v10 }
 0x126   : > { %v606_v24 = vmul.f32 %v4499_v12, %v605_v13  ;;  %v594_v25 = vmul.f32 0.5, %v593_v21  ;;  %vm598_vm10 = vweird.f32 %v4501_v2  ;;  %v616_v55 = vmul.f32 %v5644_v10, %v615_v11  ;;  %vm619_vm11 = vmor %vm617_vm7, %vm618_vm8 }
 0x127   : > { %4299 = vst [vmem:[#allocation2 + $0x20] sm:$0xff] %v4283_v7   ;;  %v659_v16 = vmul.f32 %v643_v22, %v5415_v17  ;;  %v623_v31 = vmul.f32 %v4503_v60, %v622_v26  ;;  %vm597_vm12 = vweird.f32 %v5637_v35  ;;  %vm628_vm14 = vweird.f32 %v4503_v60 }
 0x128   : > { %v610_v28 = vsel %vm609_vm9, %v4499_v12, %v606_v24  ;;  %v595_v9 = vsub.f32 1.5, %v594_v25  ;;  %vm599_vm13 = vmor %vm597_vm12, %vm598_vm10  ;;  %v620_v57 = vsel %vm619_vm11, %v5644_v10, %v616_v55  ;;  %vm627_vm15 = vweird.f32 %v5654_v48 }
 0x129   : > { %v4278_v40 = vpack.c.bf16 %v659_v16, %v658_v15  ;;  %v647_v32 = vmul.f32 %v5519_v41, %v610_v28  ;;  %v624_v17 = vmul.f32 0.5, %v623_v31  ;;  %v648_v39 = vmul.f32 %v5519_v41, %v620_v57  ;;  %vm629_vm0 = vmor %vm627_vm15, %vm628_vm14 }
 0x12a   : > { %v596_v56 = vmul.f32 %v4501_v2, %v595_v9 }
 0x12b   : > { %4298 = vst [vmem:[#allocation2 + $0x8] sm:$0xff] %v4278_v40   ;;  %v625_v33 = vsub.f32 1.5, %v624_v17  ;;  %v663_v36 = vmul.f32 %v647_v32, %v5423_v19  ;;  %v664_v10 = vmul.f32 %v648_v39, %v5419_v18 }
 0x12c   : > { %v600_v5 = vsel %vm599_vm13, %v4501_v2, %v596_v56 }
 0x12d   : > { %v646_v0 = vmul.f32 %v5519_v41, %v600_v5  ;;  %v626_v30 = vmul.f32 %v4503_v60, %v625_v33 }
 0x12f   : > { %v662_v59 = vmul.f32 %v646_v0, %v5427_v20  ;;  %v630_v35 = vsel %vm629_vm0, %v4503_v60, %v626_v30 }
 0x130   : > { %v649_v38 = vmul.f32 %v5519_v41, %v630_v35 }
 0x131   : > { %v4288_v42 = vpack.c.bf16 %v663_v36, %v662_v59 }
 0x132   : > { %v665_v43 = vmul.f32 %v649_v38, %v5435_v23 }
 0x133   : > { %4300 = vst [vmem:[#allocation2 + $0x28] sm:$0xff] %v4288_v42  }
 0x134   : > { %v4293_v19 = vpack.c.bf16 %v665_v43, %v664_v10 }
 0x136   : > { %4301 = vst [vmem:[#allocation2 + $0x38] sm:$0xff] %v4293_v19  }
 0x137 PF: > { %v3920_v20 = vld [vmem:[%s5343_s29 + $0x1c0] sm:$0xf]  ;;  %v4215_v41 = vld [vmem:[%s5343_s29 + $0x1c4] sm:$0xf]  ;;  %v3928_v48 = vld [vmem:[%s5343_s29 + $0x1c8] sm:$0xf] }
 0x138   : > { %v4219_v18 = vld [vmem:[%s5343_s29 + $0x1dc] sm:$0xf0]  ;;  %v3922_v23 = vld [vmem:[%s5343_s29 + $0x1e0] sm:$0xf0]  ;;  %v4220_v12 = vld [vmem:[%s5343_s29 + $0x1e4] sm:$0xf0] }
 0x139   : > { %v3921_v44 = vor.u32 %v4219_v18, %v3920_v20  ;;  %v3925_v34 = vor.u32 %v4215_v41, %v3922_v23  ;;  %v3929_v49 = vor.u32 %v4220_v12, %v3928_v48  ;;  %v4216_v50 = vld [vmem:[%s5343_s29 + $0x1cc] sm:$0xf]  ;;  %v3888_v6 = vld [vmem:[%s5343_s29 + $0x180] sm:$0xf]  ;;  %v4207_v52 = vld [vmem:[%s5343_s29 + $0x184] sm:$0xf] }
 0x13a   : > { %v3930_v29 = vld [vmem:[%s5343_s29 + $0x1e8] sm:$0xf0]  ;;  %v4211_v51 = vld [vmem:[%s5343_s29 + $0x19c] sm:$0xf0]  ;;  %v3890_v53 = vld [vmem:[%s5343_s29 + $0x1a0] sm:$0xf0] }
 0x13b   : > { %1162 = vmatpush.bf16.msra.mxu0 %v3921_v44  ;;  %v3933_v45 = vor.u32 %v4216_v50, %v3930_v29  ;;  %1211 = vmatpush.bf16.msra.mxu1 %v3925_v34  ;;  %v3889_v14 = vor.u32 %v4211_v51, %v3888_v6  ;;  %v3893_v3 = vor.u32 %v4207_v52, %v3890_v53  ;;  %v3896_v54 = vld [vmem:[%s5343_s29 + $0x188] sm:$0xf]  ;;  %v4208_v1 = vld [vmem:[%s5343_s29 + $0x18c] sm:$0xf]  ;;  %v3856_v58 = vld [vmem:[%s5343_s29 + $0x140] sm:$0xf] }
 0x13c   : > { %1260 = vmatpush.bf16.msra.mxu2 %v3929_v49  ;;  %v4212_v27 = vld [vmem:[%s5343_s29 + $0x1a4] sm:$0xf0]  ;;  %v3898_v8 = vld [vmem:[%s5343_s29 + $0x1a8] sm:$0xf0]  ;;  %v4203_v61 = vld [vmem:[%s5343_s29 + $0x15c] sm:$0xf0] }
 0x13d   : > { %1309 = vmatpush.bf16.msra.mxu3 %v3933_v45  ;;  %v3897_v2 = vor.u32 %v4212_v27, %v3896_v54  ;;  %v3901_v37 = vor.u32 %v4208_v1, %v3898_v8  ;;  %v4199_v46 = vld [vmem:[%s5343_s29 + $0x144] sm:$0xf]  ;;  %v3864_v63 = vld [vmem:[%s5343_s29 + $0x148] sm:$0xf]  ;;  %v3857_v4 = vor.u32 %v4203_v61, %v3856_v58  ;;  %v4200_v11 = vld [vmem:[%s5343_s29 + $0x14c] sm:$0xf] }
 0x13e   : > { %v3858_v62 = vld [vmem:[%s5343_s29 + $0x160] sm:$0xf0]  ;;  %v4204_v47 = vld [vmem:[%s5343_s29 + $0x164] sm:$0xf0]  ;;  %v3866_v13 = vld [vmem:[%s5343_s29 + $0x168] sm:$0xf0] }
 0x13f   : > { %1163 = vmatpush.bf16.msra.mxu0 %v3889_v14  ;;  %1212 = vmatpush.bf16.msra.mxu1 %v3893_v3  ;;  %v3861_v21 = vor.u32 %v4199_v46, %v3858_v62  ;;  %v3865_v60 = vor.u32 %v4204_v47, %v3864_v63  ;;  %v3824_v7 = vld [vmem:[%s5343_s29 + $0x100] sm:$0xf]  ;;  %v4191_v15 = vld [vmem:[%s5343_s29 + $0x104] sm:$0xf]  ;;  %v3869_v24 = vor.u32 %v4200_v11, %v3866_v13  ;;  %v3832_v26 = vld [vmem:[%s5343_s29 + $0x108] sm:$0xf] }
 0x140   : > { %1261 = vmatpush.bf16.msra.mxu2 %v3897_v2  ;;  %v4195_v22 = vld [vmem:[%s5343_s29 + $0x11c] sm:$0xf0]  ;;  %v3826_v25 = vld [vmem:[%s5343_s29 + $0x120] sm:$0xf0]  ;;  %v4196_v16 = vld [vmem:[%s5343_s29 + $0x124] sm:$0xf0] }
 0x141   : > { %1310 = vmatpush.bf16.msra.mxu3 %v3901_v37  ;;  %v4192_v55 = vld [vmem:[%s5343_s29 + $0x10c] sm:$0xf]  ;;  %v3825_v9 = vor.u32 %v4195_v22, %v3824_v7  ;;  %v3829_v31 = vor.u32 %v4191_v15, %v3826_v25  ;;  %v3833_v40 = vor.u32 %v4196_v16, %v3832_v26  ;;  %v3792_v32 = vld [vmem:[%s5343_s29 + $0xc0] sm:$0xf]  ;;  %v4183_v17 = vld [vmem:[%s5343_s29 + $0xc4] sm:$0xf] }
 0x142   : > { %v3834_v28 = vld [vmem:[%s5343_s29 + $0x128] sm:$0xf0]  ;;  %v4187_v56 = vld [vmem:[%s5343_s29 + $0xdc] sm:$0xf0]  ;;  %v3794_v5 = vld [vmem:[%s5343_s29 + $0xe0] sm:$0xf0] }
 0x143   : > { %1164 = vmatpush.bf16.msra.mxu0 %v3857_v4  ;;  %1213 = vmatpush.bf16.msra.mxu1 %v3861_v21  ;;  %v3837_v57 = vor.u32 %v4192_v55, %v3834_v28  ;;  %v3800_v33 = vld [vmem:[%s5343_s29 + $0xc8] sm:$0xf]  ;;  %v4184_v0 = vld [vmem:[%s5343_s29 + $0xcc] sm:$0xf]  ;;  %v3793_v39 = vor.u32 %v4187_v56, %v3792_v32  ;;  %v3797_v59 = vor.u32 %v4183_v17, %v3794_v5  ;;  %v3760_v42 = vld [vmem:[%s5343_s29 + $0x80] sm:$0xf] }
 0x144   : > { %1262 = vmatpush.bf16.msra.mxu2 %v3865_v60  ;;  %v4188_v36 = vld [vmem:[%s5343_s29 + $0xe4] sm:$0xf0]  ;;  %v3802_v30 = vld [vmem:[%s5343_s29 + $0xe8] sm:$0xf0]  ;;  %v4179_v38 = vld [vmem:[%s5343_s29 + $0x9c] sm:$0xf0] }
 0x145   : > { %1311 = vmatpush.bf16.msra.mxu3 %v3869_v24  ;;  %v3801_v35 = vor.u32 %v4188_v36, %v3800_v33  ;;  %v4175_v10 = vld [vmem:[%s5343_s29 + $0x84] sm:$0xf]  ;;  %v3805_v43 = vor.u32 %v4184_v0, %v3802_v30  ;;  %v3768_v20 = vld [vmem:[%s5343_s29 + $0x88] sm:$0xf]  ;;  %v4176_v41 = vld [vmem:[%s5343_s29 + $0x8c] sm:$0xf]  ;;  %v3761_v23 = vor.u32 %v4179_v38, %v3760_v42 }
 0x146   : > { %v3762_v19 = vld [vmem:[%s5343_s29 + $0xa0] sm:$0xf0]  ;;  %v4180_v18 = vld [vmem:[%s5343_s29 + $0xa4] sm:$0xf0]  ;;  %v3770_v44 = vld [vmem:[%s5343_s29 + $0xa8] sm:$0xf0] }
 0x147   : > { %1165 = vmatpush.bf16.msra.mxu0 %v3825_v9  ;;  %1214 = vmatpush.bf16.msra.mxu1 %v3829_v31  ;;  %v3765_v48 = vor.u32 %v4175_v10, %v3762_v19  ;;  %v3769_v12 = vor.u32 %v4180_v18, %v3768_v20  ;;  %v3728_v34 = vld [vmem:[%s5343_s29 + $0x40] sm:$0xf]  ;;  %v4167_v50 = vld [vmem:[%s5343_s29 + $0x44] sm:$0xf]  ;;  %v3773_v29 = vor.u32 %v4176_v41, %v3770_v44  ;;  %v3736_v45 = vld [vmem:[%s5343_s29 + $0x48] sm:$0xf] }
 0x148   : > { %1263 = vmatpush.bf16.msra.mxu2 %v3833_v40  ;;  %v4171_v49 = vld [vmem:[%s5343_s29 + $0x5c] sm:$0xf0]  ;;  %v3730_v6 = vld [vmem:[%s5343_s29 + $0x60] sm:$0xf0]  ;;  %v4172_v51 = vld [vmem:[%s5343_s29 + $0x64] sm:$0xf0] }
 0x149   : > { %1312 = vmatpush.bf16.msra.mxu3 %v3837_v57  ;;  %v4168_v52 = vld [vmem:[%s5343_s29 + $0x4c] sm:$0xf]  ;;  %v3729_v14 = vor.u32 %v4171_v49, %v3728_v34  ;;  %v3696_v3 = vld [vmem:[%s5343_s29] sm:$0xf]  ;;  %v3733_v54 = vor.u32 %v4167_v50, %v3730_v6  ;;  %v3737_v27 = vor.u32 %v4172_v51, %v3736_v45  ;;  %v4159_v2 = vld [vmem:[%s5343_s29 + $0x4] sm:$0xf] }
 0x14a   : > { %v3738_v53 = vld [vmem:[%s5343_s29 + $0x68] sm:$0xf0]  ;;  %v4163_v1 = vld [vmem:[%s5343_s29 + $0x1c] sm:$0xf0]  ;;  %v3698_v8 = vld [vmem:[%s5343_s29 + $0x20] sm:$0xf0] }
 0x14b   : > { %1166 = vmatpush.bf16.msra.mxu0 %v3793_v39  ;;  %1215 = vmatpush.bf16.msra.mxu1 %v3797_v59  ;;  %v3741_v58 = vor.u32 %v4168_v52, %v3738_v53  ;;  %v3704_v61 = vld [vmem:[%s5343_s29 + $0x8] sm:$0xf]  ;;  %v4160_v46 = vld [vmem:[%s5343_s29 + $0xc] sm:$0xf]  ;;  %v3944_v63 = vld [vmem:[%s5343_s29 + $0x1d8] sm:$0xf]  ;;  %v3697_v47 = vor.u32 %v4163_v1, %v3696_v3  ;;  %v3701_v21 = vor.u32 %v4159_v2, %v3698_v8 }
 0x14c   : > { %1264 = vmatpush.bf16.msra.mxu2 %v3801_v35  ;;  %v4164_v37 = vld [vmem:[%s5343_s29 + $0x24] sm:$0xf0]  ;;  %v3706_v62 = vld [vmem:[%s5343_s29 + $0x28] sm:$0xf0]  ;;  %v4222_v4 = vld [vmem:[%s5343_s29 + $0x1f4] sm:$0xf0] }
 0x14d   : > { %1313 = vmatpush.bf16.msra.mxu3 %v3805_v43  ;;  %v4218_v11 = vld [vmem:[%s5343_s29 + $0x1dc] sm:$0xf]  ;;  %v3705_v60 = vor.u32 %v4164_v37, %v3704_v61  ;;  %v5769_v7 = vld [vmem:[#allocation2 + $0x30] sm:$0xff]  ;;  %v3709_v22 = vor.u32 %v4160_v46, %v3706_v62  ;;  %v3945_v15 = vor.u32 %v4222_v4, %v3944_v63  ;;  %v3912_v28 = vld [vmem:[%s5343_s29 + $0x198] sm:$0xf]  ;;  %s8684_s20 = sld [smem:[#allocation22_spill]] }
 0x14e   : > { %v3946_v13 = vld [vmem:[%s5343_s29 + $0x1f8] sm:$0xf0]  ;;  %v3936_v24 = vld [vmem:[%s5343_s29 + $0x1d0] sm:$0xf]  ;;  %v4217_v26 = vld [vmem:[%s5343_s29 + $0x1d4] sm:$0xf] }
 0x14f   : > { %1167 = vmatpush.bf16.msra.mxu0 %v3761_v23  ;;  %1216 = vmatpush.bf16.msra.mxu1 %v3765_v48  ;;  %v4221_v25 = vld [vmem:[%s5343_s29 + $0x1ec] sm:$0xf0]  ;;  %v3949_v16 = vor.u32 %v4218_v11, %v3946_v13  ;;  %v3938_v55 = vld [vmem:[%s5343_s29 + $0x1f0] sm:$0xf0]  ;;  %v4214_v9 = vld [vmem:[%s5343_s29 + $0x1b4] sm:$0xf0] }
 0x150   : > { %1265 = vmatpush.bf16.msra.mxu2 %v3769_v12  ;;  %v4210_v31 = vld [vmem:[%s5343_s29 + $0x19c] sm:$0xf]  ;;  %v3937_v32 = vor.u32 %v4221_v25, %v3936_v24  ;;  %v3941_v56 = vor.u32 %v4217_v26, %v3938_v55  ;;  %v3913_v17 = vor.u32 %v4214_v9, %v3912_v28  ;;  %v3904_v57 = vld [vmem:[%s5343_s29 + $0x190] sm:$0xf]  ;;  %v4209_v36 = vld [vmem:[%s5343_s29 + $0x194] sm:$0xf] }
 0x151   : > { %1314 = vmatpush.bf16.msra.mxu3 %v3773_v29  ;;  %v3914_v40 = vld [vmem:[%s5343_s29 + $0x1b8] sm:$0xf0]  ;;  %v4213_v5 = vld [vmem:[%s5343_s29 + $0x1ac] sm:$0xf0]  ;;  %v3906_v0 = vld [vmem:[%s5343_s29 + $0x1b0] sm:$0xf0] }
 0x152   : > { %v3917_v33 = vor.u32 %v4210_v31, %v3914_v40  ;;  %v3905_v30 = vor.u32 %v4213_v5, %v3904_v57  ;;  %v3880_v39 = vld [vmem:[%s5343_s29 + $0x158] sm:$0xf]  ;;  %v4202_v35 = vld [vmem:[%s5343_s29 + $0x15c] sm:$0xf]  ;;  %v3909_v42 = vor.u32 %v4209_v36, %v3906_v0  ;;  %v3872_v43 = vld [vmem:[%s5343_s29 + $0x150] sm:$0xf] }
 0x153   : > { %1168 = vmatpush.bf16.msra.mxu0 %v3729_v14  ;;  %1217 = vmatpush.bf16.msra.mxu1 %v3733_v54  ;;  %v4206_v59 = vld [vmem:[%s5343_s29 + $0x174] sm:$0xf0]  ;;  %v3882_v10 = vld [vmem:[%s5343_s29 + $0x178] sm:$0xf0]  ;;  %v4205_v19 = vld [vmem:[%s5343_s29 + $0x16c] sm:$0xf0] }
 0x154   : > { %1266 = vmatpush.bf16.msra.mxu2 %v3737_v27  ;;  %v3881_v38 = vor.u32 %v4206_v59, %v3880_v39  ;;  %v3885_v20 = vor.u32 %v4202_v35, %v3882_v10  ;;  %v4201_v18 = vld [vmem:[%s5343_s29 + $0x154] sm:$0xf]  ;;  %v3873_v44 = vor.u32 %v4205_v19, %v3872_v43  ;;  %v5795_v48 = vld [vmem:[#allocation2] sm:$0xff]  ;;  %v3848_v12 = vld [vmem:[%s5343_s29 + $0x118] sm:$0xf]  ;;  %p4142_p8 = scmp.ne.s32.totalorder %s8684_s20, 1 }
 0x155   : > { %1315 = vmatpush.bf16.msra.mxu3 %v3741_v58  ;;  %v3874_v41 = vld [vmem:[%s5343_s29 + $0x170] sm:$0xf0]  ;;  %v4198_v34 = vld [vmem:[%s5343_s29 + $0x134] sm:$0xf0]  ;;  %v4194_v49 = vld [vmem:[%s5343_s29 + $0x11c] sm:$0xf] }
 0x156   : > { %v3877_v23 = vor.u32 %v4201_v18, %v3874_v41  ;;  %v3849_v50 = vor.u32 %v4198_v34, %v3848_v12  ;;  %v3850_v29 = vld [vmem:[%s5343_s29 + $0x138] sm:$0xf0]  ;;  %v3840_v6 = vld [vmem:[%s5343_s29 + $0x110] sm:$0xf]  ;;  %v4193_v53 = vld [vmem:[%s5343_s29 + $0x114] sm:$0xf] }
 0x157   : > { %1169 = vmatpush.bf16.msra.mxu0 %v3697_v47  ;;  %1218 = vmatpush.bf16.msra.mxu1 %v3701_v21  ;;  %v4197_v45 = vld [vmem:[%s5343_s29 + $0x12c] sm:$0xf0]  ;;  %v3853_v51 = vor.u32 %v4194_v49, %v3850_v29  ;;  %v3842_v14 = vld [vmem:[%s5343_s29 + $0x130] sm:$0xf0]  ;;  %v3816_v27 = vld [vmem:[%s5343_s29 + $0xd8] sm:$0xf] }
 0x158   : > { %1267 = vmatpush.bf16.msra.mxu2 %v3705_v60  ;;  %v3841_v52 = vor.u32 %v4197_v45, %v3840_v6  ;;  %v3845_v3 = vor.u32 %v4193_v53, %v3842_v14  ;;  %v5809_v54 = vld [vmem:[#allocation2 + $0x18] sm:$0xff]  ;;  %v3808_v61 = vld [vmem:[%s5343_s29 + $0xd0] sm:$0xf]  ;;  %v5837_v31 = vld [vmem:[#allocation2 + $0x8] sm:$0xff] }
 0x159   : > { %1316 = vmatpush.bf16.msra.mxu3 %v3709_v22  ;;  %v4190_v1 = vld [vmem:[%s5343_s29 + $0xf4] sm:$0xf0]  ;;  %v4186_v2 = vld [vmem:[%s5343_s29 + $0xdc] sm:$0xf]  ;;  %v4189_v37 = vld [vmem:[%s5343_s29 + $0xec] sm:$0xf0] }
 0x15a   : > { %1170 = vmatmul.bf16.vlgmr.msra.gmra.mxu0 %v5769_v7  ;;  %1219 = vmatmul.bf16.vlgmr.msra.gmra.mxu1 %v5769_v7  ;;  %v3817_v8 = vor.u32 %v4190_v1, %v3816_v27  ;;  %v3818_v58 = vld [vmem:[%s5343_s29 + $0xf8] sm:$0xf0]  ;;  %v3809_v62 = vor.u32 %v4189_v37, %v3808_v61  ;;  %v4185_v63 = vld [vmem:[%s5343_s29 + $0xd4] sm:$0xf]  ;;  %v3784_v13 = vld [vmem:[%s5343_s29 + $0x98] sm:$0xf] }
 0x15b   : > { %1268 = vmatmul.bf16.vlgmr.msra.gmra.mxu2 %v5769_v7  ;;  %1358 = vmatpush.bf16.msrb.mxu0 %v3937_v32  ;;  %v3821_v46 = vor.u32 %v4186_v2, %v3818_v58  ;;  %v3810_v4 = vld [vmem:[%s5343_s29 + $0xf0] sm:$0xf0]  ;;  %v4182_v21 = vld [vmem:[%s5343_s29 + $0xb4] sm:$0xf0]  ;;  %v4178_v60 = vld [vmem:[%s5343_s29 + $0x9c] sm:$0xf] }
 0x15c   : > { %1456 = vmatpush.bf16.msrb.mxu2 %v3945_v15  ;;  %1317 = vmatmul.bf16.vlgmr.msra.gmra.mxu3 %v5769_v7  ;;  %v3813_v47 = vor.u32 %v4185_v63, %v3810_v4  ;;  %v5823_v11 = vld [vmem:[#allocation2 + $0x10] sm:$0xff]  ;;  %v3785_v22 = vor.u32 %v4182_v21, %v3784_v13  ;;  %v3786_v15 = vld [vmem:[%s5343_s29 + $0xb8] sm:$0xf0]  ;;  %v3752_v40 = vld [vmem:[%s5343_s29 + $0x58] sm:$0xf] }
 0x15d   : > { %1505 = vmatpush.bf16.msrb.mxu3 %v3949_v16  ;;  %1407 = vmatpush.bf16.msrb.mxu1 %v3941_v56  ;;  %v3776_v24 = vld [vmem:[%s5343_s29 + $0x90] sm:$0xf]  ;;  %v3789_v26 = vor.u32 %v4178_v60, %v3786_v15  ;;  %v4177_v55 = vld [vmem:[%s5343_s29 + $0x94] sm:$0xf]  ;;  %v4174_v32 = vld [vmem:[%s5343_s29 + $0x74] sm:$0xf0] }
 0x15e   : > { %v4181_v25 = vld [vmem:[%s5343_s29 + $0xac] sm:$0xf0]  ;;  %v3778_v28 = vld [vmem:[%s5343_s29 + $0xb0] sm:$0xf0]  ;;  %v4170_v56 = vld [vmem:[%s5343_s29 + $0x5c] sm:$0xf] }
 0x15f   : > { %1359 = vmatpush.bf16.msrb.mxu0 %v3905_v30  ;;  %v3777_v16 = vor.u32 %v4181_v25, %v3776_v24  ;;  %v3781_v9 = vor.u32 %v4177_v55, %v3778_v28  ;;  %v3754_v57 = vld [vmem:[%s5343_s29 + $0x78] sm:$0xf0]  ;;  %v3744_v5 = vld [vmem:[%s5343_s29 + $0x50] sm:$0xf]  ;;  %v4169_v30 = vld [vmem:[%s5343_s29 + $0x54] sm:$0xf] }
 0x160   : > { %1457 = vmatpush.bf16.msrb.mxu2 %v3913_v17  ;;  %v3753_v17 = vor.u32 %v4174_v32, %v3752_v40  ;;  %v3757_v36 = vor.u32 %v4170_v56, %v3754_v57  ;;  %v3746_v39 = vld [vmem:[%s5343_s29 + $0x70] sm:$0xf0]  ;;  %v5851_v35 = vld [vmem:[#allocation2 + $0x20] sm:$0xff]  ;;  %v4165_v18 = vld [vmem:[%s5343_s29 + $0x2c] sm:$0xf0] }
 0x161   : > { %1506 = vmatpush.bf16.msrb.mxu3 %v3917_v33  ;;  %1408 = vmatpush.bf16.msrb.mxu1 %v3909_v42  ;;  %v4173_v33 = vld [vmem:[%s5343_s29 + $0x6c] sm:$0xf0]  ;;  %v3749_v59 = vor.u32 %v4169_v30, %v3746_v39  ;;  %v3720_v42 = vld [vmem:[%s5343_s29 + $0x18] sm:$0xf]  ;;  %v4162_v10 = vld [vmem:[%s5343_s29 + $0x1c] sm:$0xf] }
 0x162   : > { %v3745_v0 = vor.u32 %v4173_v33, %v3744_v5  ;;  %v3722_v19 = vld [vmem:[%s5343_s29 + $0x38] sm:$0xf0]  ;;  %v3714_v12 = vld [vmem:[%s5343_s29 + $0x30] sm:$0xf0]  ;;  %v5865_v49 = vld [vmem:[#allocation2 + $0x28] sm:$0xff] }
 0x163   : > { %1360 = vmatpush.bf16.msrb.mxu0 %v3873_v44  ;;  %v3725_v41 = vor.u32 %v4162_v10, %v3722_v19  ;;  %v4246_v2 = vld [vmem:[%s5349_s6 + $0xb8] sm:$0xff]  ;;  %v4245_v13 = vld [vmem:[%s5349_s6 + $0xb0] sm:$0xff]  ;;  %v4252_v40 = vld [vmem:[%s5349_s6 + $0xe8] sm:$0xff] }
 0x164   : > { %1458 = vmatpush.bf16.msrb.mxu2 %v3881_v38  ;;  %v4166_v38 = vld [vmem:[%s5343_s29 + $0x34] sm:$0xf0]  ;;  %v4253_v21 = vld [vmem:[%s5349_s6 + $0xf0] sm:$0xff]  ;;  %v4228_v32 = vld [vmem:[%s5349_s6 + $0x28] sm:$0xff] }
 0x165   : > { %1507 = vmatpush.bf16.msrb.mxu3 %v3885_v20  ;;  %1409 = vmatpush.bf16.msrb.mxu1 %v3877_v23  ;;  %v3721_v43 = vor.u32 %v4166_v38, %v3720_v42  ;;  %v3712_v20 = vld [vmem:[%s5343_s29 + $0x10] sm:$0xf]  ;;  %v4161_v23 = vld [vmem:[%s5343_s29 + $0x14] sm:$0xf]  ;;  %v4238_v58 = vld [vmem:[%s5349_s6 + $0x78] sm:$0xff] }
 0x166   : > { %v3713_v44 = vor.u32 %v4165_v18, %v3712_v20  ;;  %v3717_v34 = vor.u32 %v4161_v23, %v3714_v12  ;;  %v4229_v60 = vld [vmem:[%s5349_s6 + $0x30] sm:$0xff]  ;;  %v4236_v56 = vld [vmem:[%s5349_s6 + $0x68] sm:$0xff]  ;;  %v4243_v39 = vld [vmem:[%s5349_s6 + $0xa0] sm:$0xff] }
 0x167   : > { %1361 = vmatpush.bf16.msrb.mxu0 %v3841_v52  ;;  %v4227_v42 = vld [vmem:[%s5349_s6 + $0x20] sm:$0xff]  ;;  %v4242_v23 = vld [vmem:[%s5349_s6 + $0x98] sm:$0xff] }
 0x168   : > { %1459 = vmatpush.bf16.msrb.mxu2 %v3849_v50  ;;  %v5871_v50 = vld [vmem:[#allocation2 + $0x38] sm:$0xff]  ;;  %v4235_v38 = vld [vmem:[%s5349_s6 + $0x60] sm:$0xff] }
 0x169   : > { %1508 = vmatpush.bf16.msrb.mxu3 %v3853_v51  ;;  %1410 = vmatpush.bf16.msrb.mxu1 %v3845_v3  ;;  %v4250_v12 = vld [vmem:[%s5349_s6 + $0xd8] sm:$0xff] }
 0x16a   : > { %1175 = vmatmul.bf16.gmra.mxu0 %v5795_v48  ;;  %1224 = vmatmul.bf16.gmra.mxu1 %v5795_v48 }
 0x16b   : > { %1273 = vmatmul.bf16.gmra.mxu2 %v5795_v48  ;;  %1362 = vmatpush.bf16.msrb.mxu0 %v3809_v62 }
 0x16c   : > { %1322 = vmatmul.bf16.gmra.mxu3 %v5795_v48  ;;  %1460 = vmatpush.bf16.msrb.mxu2 %v3817_v8  ;;  %v4230_v8 = vld [vmem:[%s5349_s6 + $0x38] sm:$0xff] }
 0x16d   : > { %1509 = vmatpush.bf16.msrb.mxu3 %v3821_v46  ;;  %1411 = vmatpush.bf16.msrb.mxu1 %v3813_v47 }
 0x16f   : > { %1363 = vmatpush.bf16.msrb.mxu0 %v3777_v16 }
 0x170   : > { %1461 = vmatpush.bf16.msrb.mxu2 %v3785_v22  ;;  %v4237_v22 = vld [vmem:[%s5349_s6 + $0x70] sm:$0xff] }
 0x171   : > { %1510 = vmatpush.bf16.msrb.mxu3 %v3789_v26  ;;  %1412 = vmatpush.bf16.msrb.mxu1 %v3781_v9  ;;  %v4244_v9 = vld [vmem:[%s5349_s6 + $0xa8] sm:$0xff] }
 0x173   : > { %1364 = vmatpush.bf16.msrb.mxu0 %v3745_v0 }
 0x174   : > { %1462 = vmatpush.bf16.msrb.mxu2 %v3753_v17 }
 0x175   : > { %1511 = vmatpush.bf16.msrb.mxu3 %v3757_v36  ;;  %1413 = vmatpush.bf16.msrb.mxu1 %v3749_v59  ;;  %v4251_v59 = vld [vmem:[%s5349_s6 + $0xe0] sm:$0xff] }
 0x177   : > { %1365 = vmatpush.bf16.msrb.mxu0 %v3713_v44 }
 0x178   : > { %1463 = vmatpush.bf16.msrb.mxu2 %v3721_v43 }
 0x179   : > { %1512 = vmatpush.bf16.msrb.mxu3 %v3725_v41  ;;  %1414 = vmatpush.bf16.msrb.mxu1 %v3717_v34  ;;  %v4226_v34 = vld [vmem:[%s5349_s6 + $0x18] sm:$0xff] }
 0x17a   : > { %1180 = vmatmul.bf16.gmra.mxu0 %v5809_v54  ;;  %1229 = vmatmul.bf16.gmra.mxu1 %v5809_v54 }
 0x17b   : > { %1278 = vmatmul.bf16.gmra.mxu2 %v5809_v54  ;;  %3202 = vmatpush.bf16.msra.mxu0 %v4230_v8 }
 0x17c   : > { %1327 = vmatmul.bf16.gmra.mxu3 %v5809_v54  ;;  %3300 = vmatpush.bf16.msra.mxu2 %v4246_v2  ;;  %v4234_v2 = vld [vmem:[%s5349_s6 + $0x58] sm:$0xff] }
 0x17d   : > { %3251 = vmatpush.bf16.msra.mxu1 %v4238_v58 }
 0x17f   : > { %3203 = vmatpush.bf16.msra.mxu0 %v4229_v60 }
 0x180   : > { %3301 = vmatpush.bf16.msra.mxu2 %v4245_v13 }
 0x181   : > { %3252 = vmatpush.bf16.msra.mxu1 %v4237_v22 }
 0x183   : > { %3204 = vmatpush.bf16.msra.mxu0 %v4228_v32 }
 0x184   : > { %3302 = vmatpush.bf16.msra.mxu2 %v4244_v9 }
 0x185   : > { %3253 = vmatpush.bf16.msra.mxu1 %v4236_v56 }
 0x187   : > { %3205 = vmatpush.bf16.msra.mxu0 %v4227_v42 }
 0x188   : > { %3303 = vmatpush.bf16.msra.mxu2 %v4243_v39 }
 0x189   : > { %3254 = vmatpush.bf16.msra.mxu1 %v4235_v38 }
 0x18a   : > { %1185 = vmatmul.bf16.gmra.mxu0 %v5823_v11  ;;  %1234 = vmatmul.bf16.gmra.mxu1 %v5823_v11 }
 0x18b   : > { %1283 = vmatmul.bf16.gmra.mxu2 %v5823_v11  ;;  %3206 = vmatpush.bf16.msra.mxu0 %v4226_v34 }
 0x18c   : > { %1332 = vmatmul.bf16.gmra.mxu3 %v5823_v11  ;;  %3304 = vmatpush.bf16.msra.mxu2 %v4242_v23 }
 0x18d   : > { %3255 = vmatpush.bf16.msra.mxu1 %v4234_v2 }
 0x19a   : > { %1190 = vmatmul.bf16.gmra.mxu0 %v5837_v31  ;;  %1239 = vmatmul.bf16.gmra.mxu1 %v5837_v31 }
 0x19b   : > { %1288 = vmatmul.bf16.gmra.mxu2 %v5837_v31 }
 0x19c   : > { %1337 = vmatmul.bf16.gmra.mxu3 %v5837_v31 }
 0x1aa   : > { %1195 = vmatmul.bf16.gmra.mxu0 %v5851_v35  ;;  %1244 = vmatmul.bf16.gmra.mxu1 %v5851_v35 }
 0x1ab   : > { %1293 = vmatmul.bf16.gmra.mxu2 %v5851_v35 }
 0x1ac   : > { %1342 = vmatmul.bf16.gmra.mxu3 %v5851_v35 }
 0x1ba   : > { %1200 = vmatmul.bf16.gmra.mxu0 %v5865_v49  ;;  %1249 = vmatmul.bf16.gmra.mxu1 %v5865_v49 }
 0x1bb   : > { %1298 = vmatmul.bf16.gmra.mxu2 %v5865_v49 }
 0x1bc   : > { %1347 = vmatmul.bf16.gmra.mxu3 %v5865_v49 }
 0x1ca   : > { %1205 = vmatmul.bf16.gmra.mxu0 %v5871_v50  ;;  %1254 = vmatmul.bf16.gmra.mxu1 %v5871_v50 }
 0x1cb   : > { %1303 = vmatmul.bf16.gmra.mxu2 %v5871_v50 }
 0x1cc   : > { %1352 = vmatmul.bf16.gmra.mxu3 %v5871_v50 }
 0x1d7   : > { %v5877_v29 = vpop.f32.mrf.mxu0  ;;  %v5879_v6 = vpop.f32.mrf.mxu1 }
 0x1da   : > { %1366 = vmatmul.bf16.vlgmr.msrb.gmra.mxu0 %v5769_v7  ;;  %1415 = vmatmul.bf16.vlgmr.msrb.gmra.mxu1 %v5769_v7 }
 0x1db   : > { %1464 = vmatmul.bf16.vlgmr.msrb.gmra.mxu2 %v5769_v7 }
 0x1dc   : > { %1513 = vmatmul.bf16.vlgmr.msrb.gmra.mxu3 %v5769_v7  ;;  %v4254_v7 = vld [vmem:[%s5349_s6 + $0xf8] sm:$0xff] }
 0x1dd   : > { %3349 = vmatpush.bf16.msra.mxu3 %v4254_v7 }
 0x1de   : > { %v5885_v45 = vpop.f32.mrf.mxu2 }
 0x1df   : > { %v5887_v51 = vpop.f32.mrf.mxu3  ;;  %v5889_v52 = vpop.f32.mrf.mxu0 }
 0x1e0   : > { %v5891_v53 = vpop.f32.mrf.mxu1 }
 0x1e1   : > { %3350 = vmatpush.bf16.msra.mxu3 %v4253_v21 }
 0x1e5   : > { %3351 = vmatpush.bf16.msra.mxu3 %v4252_v40 }
 0x1e6   : > { %v5893_v14 = vpop.f32.mrf.mxu2 }
 0x1e7   : > { %v5895_v3 = vpop.f32.mrf.mxu3  ;;  %v5897_v27 = vpop.f32.mrf.mxu0 }
 0x1e8   : > { %v5899_v1 = vpop.f32.mrf.mxu1 }
 0x1e9   : > { %3352 = vmatpush.bf16.msra.mxu3 %v4251_v59 }
 0x1ea   : > { %1371 = vmatmul.bf16.gmra.mxu0 %v5795_v48  ;;  %1420 = vmatmul.bf16.gmra.mxu1 %v5795_v48 }
 0x1eb   : > { %1469 = vmatmul.bf16.gmra.mxu2 %v5795_v48 }
 0x1ec   : > { %1518 = vmatmul.bf16.gmra.mxu3 %v5795_v48 }
 0x1ed   : > { %3353 = vmatpush.bf16.msra.mxu3 %v4250_v12 }
 0x1ee   : > { %v5909_v61 = vpop.f32.mrf.mxu2 }
 0x1ef   : > { %v5911_v37 = vpop.f32.mrf.mxu3  ;;  %v5913_v46 = vpop.f32.mrf.mxu0 }
 0x1f0   : > { %v5915_v62 = vpop.f32.mrf.mxu1 }
 0x1f6   : > { %v5917_v63 = vpop.f32.mrf.mxu2 }
 0x1f7   : > { %v5919_v48 = vpop.f32.mrf.mxu3  ;;  %v5921_v4 = vpop.f32.mrf.mxu0 }
 0x1f8   : > { %v5923_v47 = vpop.f32.mrf.mxu1 }
 0x1fa   : > { %1376 = vmatmul.bf16.gmra.mxu0 %v5809_v54  ;;  %1425 = vmatmul.bf16.gmra.mxu1 %v5809_v54 }
 0x1fb   : > { %1474 = vmatmul.bf16.gmra.mxu2 %v5809_v54 }
 0x1fc   : > { %1523 = vmatmul.bf16.gmra.mxu3 %v5809_v54 }
 0x1fe   : > { %v5933_v15 = vpop.f32.mrf.mxu2 }
 0x1ff   : > { %v5935_v24 = vpop.f32.mrf.mxu3  ;;  %v5937_v25 = vpop.f32.mrf.mxu0 }
 0x200   : > { %8390 = vst [vmem:[#allocation36_spill] sm:$0xff] %v5937_v25  ;;  %v5939_v26 = vpop.f32.mrf.mxu1 }
 0x201   : > { %8391 = vst [vmem:[#allocation37_spill] sm:$0xff] %v5939_v26  ;;  %v4248_v26 = vld [vmem:[%s5349_s6 + $0xc8] sm:$0xff] }
 0x206   : > { %v5941_v16 = vpop.f32.mrf.mxu2 }
 0x207   : > { %8392 = vst [vmem:[#allocation38_spill] sm:$0xff] %v5941_v16  ;;  %v5943_v54 = vpop.f32.mrf.mxu3  ;;  %v5945_v55 = vpop.f32.mrf.mxu0  ;;  %v4240_v16 = vld [vmem:[%s5349_s6 + $0x88] sm:$0xff] }
 0x208   : > { %8393 = vst [vmem:[#allocation39_spill] sm:$0xff] %v5943_v54  ;;  %v5947_v28 = vpop.f32.mrf.mxu1 }
 0x209   : > { %8394 = vst [vmem:[#allocation40_spill] sm:$0xff] %v5945_v55 }
 0x20a   : > { %8395 = vst [vmem:[#allocation41_spill] sm:$0xff] %v5947_v28  ;;  %1381 = vmatmul.bf16.gmra.mxu0 %v5823_v11  ;;  %1430 = vmatmul.bf16.gmra.mxu1 %v5823_v11 }
 0x20b   : > { %1479 = vmatmul.bf16.gmra.mxu2 %v5823_v11 }
 0x20c   : > { %1528 = vmatmul.bf16.gmra.mxu3 %v5823_v11 }
 0x20e   : > { %v5957_v17 = vpop.f32.mrf.mxu2 }
 0x20f   : > { %8396 = vst [vmem:[#allocation42_spill] sm:$0xff] %v5957_v17  ;;  %v5959_v57 = vpop.f32.mrf.mxu3  ;;  %v5961_v5 = vpop.f32.mrf.mxu0 }
 0x210   : > { %8397 = vst [vmem:[#allocation43_spill] sm:$0xff] %v5959_v57  ;;  %v5963_v33 = vpop.f32.mrf.mxu1 }
 0x211   : > { %8398 = vst [vmem:[#allocation44_spill] sm:$0xff] %v5961_v5 }
 0x212   : > { %8399 = vst [vmem:[#allocation45_spill] sm:$0xff] %v5963_v33 }
 0x216   : > { %v5965_v36 = vpop.f32.mrf.mxu2 }
 0x217   : > { %8400 = vst [vmem:[#allocation46_spill] sm:$0xff] %v5965_v36  ;;  %v5967_v11 = vpop.f32.mrf.mxu3  ;;  %v5969_v0 = vpop.f32.mrf.mxu0 }
 0x218   : > { %8401 = vst [vmem:[#allocation47_spill] sm:$0xff] %v5967_v11  ;;  %v5971_v30 = vpop.f32.mrf.mxu1 }
 0x219   : > { %8402 = vst [vmem:[#allocation48_spill] sm:$0xff] %v5969_v0 }
 0x21a   : > { %8403 = vst [vmem:[#allocation49_spill] sm:$0xff] %v5971_v30  ;;  %1386 = vmatmul.bf16.gmra.mxu0 %v5837_v31  ;;  %1435 = vmatmul.bf16.gmra.mxu1 %v5837_v31 }
 0x21b   : > { %1484 = vmatmul.bf16.gmra.mxu2 %v5837_v31 }
 0x21c   : > { %1533 = vmatmul.bf16.gmra.mxu3 %v5837_v31 }
 0x21e   : > { %v5981_v10 = vpop.f32.mrf.mxu2 }
 0x21f   : > { %8404 = vst [vmem:[#allocation50_spill] sm:$0xff] %v5981_v10  ;;  %v5983_v43 = vpop.f32.mrf.mxu3  ;;  %v5985_v19 = vpop.f32.mrf.mxu0  ;;  %v4232_v10 = vld [vmem:[%s5349_s6 + $0x48] sm:$0xff] }
 0x220   : > { %8405 = vst [vmem:[#allocation51_spill] sm:$0xff] %v5983_v43  ;;  %v5987_v20 = vpop.f32.mrf.mxu1 }
 0x221   : > { %8406 = vst [vmem:[#allocation52_spill] sm:$0xff] %v5985_v19 }
 0x222   : > { %8407 = vst [vmem:[#allocation53_spill] sm:$0xff] %v5987_v20 }
 0x226   : > { %v5989_v18 = vpop.f32.mrf.mxu2 }
 0x227   : > { %8408 = vst [vmem:[#allocation54_spill] sm:$0xff] %v5989_v18  ;;  %v5991_v31 = vpop.f32.mrf.mxu3  ;;  %v5993_v41 = vpop.f32.mrf.mxu0 }
 0x228   : > { %8409 = vst [vmem:[#allocation55_spill] sm:$0xff] %v5991_v31  ;;  %v5995_v44 = vpop.f32.mrf.mxu1 }
 0x229   : > { %8410 = vst [vmem:[#allocation56_spill] sm:$0xff] %v5993_v41 }
 0x22a   : > { %8411 = vst [vmem:[#allocation57_spill] sm:$0xff] %v5995_v44  ;;  %1391 = vmatmul.bf16.gmra.mxu0 %v5851_v35  ;;  %1440 = vmatmul.bf16.gmra.mxu1 %v5851_v35 }
 0x22b   : > { %1489 = vmatmul.bf16.gmra.mxu2 %v5851_v35 }
 0x22c   : > { %1538 = vmatmul.bf16.gmra.mxu3 %v5851_v35 }
 0x22e   : > { %v6005_v7 = vpop.f32.mrf.mxu2 }
 0x22f   : > { %8412 = vst [vmem:[#allocation58_spill] sm:$0xff] %v6005_v7  ;;  %v6007_v8 = vpop.f32.mrf.mxu3  ;;  %v6009_v58 = vpop.f32.mrf.mxu0 }
 0x230   : > { %8413 = vst [vmem:[#allocation59_spill] sm:$0xff] %v6007_v8  ;;  %v6011_v13 = vpop.f32.mrf.mxu1 }
 0x231   : > { %8414 = vst [vmem:[#allocation60_spill] sm:$0xff] %v6009_v58 }
 0x232   : > { %8415 = vst [vmem:[#allocation61_spill] sm:$0xff] %v6011_v13 }
 0x236   : > { %v6013_v21 = vpop.f32.mrf.mxu2 }
 0x237   : > { %8416 = vst [vmem:[#allocation62_spill] sm:$0xff] %v6013_v21  ;;  %v6015_v60 = vpop.f32.mrf.mxu3  ;;  %v6017_v22 = vpop.f32.mrf.mxu0 }
 0x238   : > { %8417 = vst [vmem:[#allocation63_spill] sm:$0xff] %v6015_v60  ;;  %v6019_v35 = vpop.f32.mrf.mxu1 }
 0x239   : > { %8418 = vst [vmem:[#allocation64_spill] sm:$0xff] %v6017_v22 }
 0x23a   : > { %8419 = vst [vmem:[#allocation65_spill] sm:$0xff] %v6019_v35  ;;  %1396 = vmatmul.bf16.gmra.mxu0 %v5865_v49  ;;  %1445 = vmatmul.bf16.gmra.mxu1 %v5865_v49 }
 0x23b   : > { %1494 = vmatmul.bf16.gmra.mxu2 %v5865_v49 }
 0x23c   : > { %1543 = vmatmul.bf16.gmra.mxu3 %v5865_v49 }
 0x23e   : > { %v6025_v9 = vpop.f32.mrf.mxu2 }
 0x23f   : > { %8420 = vst [vmem:[#allocation66_spill] sm:$0xff] %v6025_v9  ;;  %v6027_v40 = vpop.f32.mrf.mxu3  ;;  %v6029_v32 = vpop.f32.mrf.mxu0 }
 0x240   : > { %8421 = vst [vmem:[#allocation67_spill] sm:$0xff] %v6027_v40  ;;  %v6031_v56 = vpop.f32.mrf.mxu1  ;;  %v4225_v40 = vld [vmem:[%s5349_s6 + $0x10] sm:$0xff] }
 0x241   : > { %8422 = vst [vmem:[#allocation68_spill] sm:$0xff] %v6029_v32  ;;  %3207 = vmatpush.bf16.msra.mxu0 %v4225_v40 }
 0x242   : > { %8423 = vst [vmem:[#allocation69_spill] sm:$0xff] %v6031_v56 }
 0x246   : > { %v6033_v39 = vpop.f32.mrf.mxu2 }
 0x247   : > { %8424 = vst [vmem:[#allocation70_spill] sm:$0xff] %v6033_v39  ;;  %v6035_v59 = vpop.f32.mrf.mxu3  ;;  %v6037_v42 = vpop.f32.mrf.mxu0  ;;  %v4249_v39 = vld [vmem:[%s5349_s6 + $0xd0] sm:$0xff] }
 0x248   : > { %8425 = vst [vmem:[#allocation71_spill] sm:$0xff] %v6035_v59  ;;  %v6039_v38 = vpop.f32.mrf.mxu1  ;;  %v4241_v59 = vld [vmem:[%s5349_s6 + $0x90] sm:$0xff]  ;;  %3354 = vmatpush.bf16.msra.mxu3 %v4249_v39 }
 0x249   : > { %8426 = vst [vmem:[#allocation72_spill] sm:$0xff] %v6037_v42  ;;  %3305 = vmatpush.bf16.msra.mxu2 %v4241_v59 }
 0x24a   : > { %8427 = vst [vmem:[#allocation73_spill] sm:$0xff] %v6039_v38  ;;  %1401 = vmatmul.bf16.gmra.mxu0 %v5871_v50  ;;  %1450 = vmatmul.bf16.gmra.mxu1 %v5871_v50 }
 0x24b   : > { %1499 = vmatmul.bf16.gmra.mxu2 %v5871_v50 }
 0x24c   : > { %1548 = vmatmul.bf16.gmra.mxu3 %v5871_v50 }
 0x24d   : > { %3306 = vmatpush.bf16.msra.mxu2 %v4240_v16  ;;  %3355 = vmatpush.bf16.msra.mxu3 %v4248_v26 }
 0x24e   : > { %v6045_v49 = vpop.f32.mrf.mxu2 }
 0x24f   : > { %8428 = vst [vmem:[#allocation74_spill] sm:$0xff] %v6045_v49  ;;  %v6047_v23 = vpop.f32.mrf.mxu3  ;;  %v6049_v12 = vpop.f32.mrf.mxu0  ;;  %v4233_v49 = vld [vmem:[%s5349_s6 + $0x50] sm:$0xff] }
 0x250   : > { %8429 = vst [vmem:[#allocation75_spill] sm:$0xff] %v6047_v23  ;;  %v6051_v34 = vpop.f32.mrf.mxu1  ;;  %3256 = vmatpush.bf16.msra.mxu1 %v4233_v49 }
 0x251   : > { %8430 = vst [vmem:[#allocation76_spill] sm:$0xff] %v6049_v12 }
 0x252   : > { %8431 = vst [vmem:[#allocation77_spill] sm:$0xff] %v6051_v34 }
 0x254   : > { %3257 = vmatpush.bf16.msra.mxu1 %v4232_v10 }
 0x256   : > { %v6053_v2 = vpop.f32.mrf.mxu2 }
 0x257   : > { %8432 = vst [vmem:[#allocation78_spill] sm:$0xff] %v6053_v2  ;;  %v6055_v38 = vpop.f32.mrf.mxu3  ;;  %v6057_v42 = vpop.f32.mrf.mxu0 }
 0x258   : > { %8433 = vst [vmem:[#allocation79_spill] sm:$0xff] %v6055_v38  ;;  %v3950_v56 = vmul.f32 -1.442695, %v6057_v42  ;;  %v6063_v50 = vpop.f32.mrf.mxu1 }
 0x259   : > { %v3951_v23 = vmul.f32 -1.442695, %v6063_v50 }
 0x25a   : > { %4504 = vpow2.f32 %v3950_v56 }
 0x25b   : > { %4506 = vpow2.f32 %v3951_v23 }
 0x25e   : > { %v6067_v2 = vpop.f32.mrf.mxu2 }
 0x25f   : > { %v3952_v38 = vmul.f32 -1.442695, %v6067_v2  ;;  %v6070_v34 = vpop.f32.mrf.mxu3  ;;  %v6072_v12 = vpop.f32.mrf.mxu0 }
 0x260   : > { %v4505_v32 = vpop.eup %4504  ;;  %v3953_v9 = vmul.f32 -1.442695, %v6070_v34  ;;  %v6075_v35 = vpop.f32.mrf.mxu1  ;;  %v3954_v40 = vmul.f32 -1.442695, %v6072_v12 }
 0x261   : > { %v4507_v22 = vpop.eup %4506  ;;  %v1746_v59 = vadd.f32 1.0, %v4505_v32  ;;  %4508 = vpow2.f32 %v3952_v38  ;;  %v3955_v39 = vmul.f32 -1.442695, %v6075_v35 }
 0x262   : > { %v6078_v56 = vadd.f32 1.0, %v4507_v22  ;;  %4510 = vpow2.f32 %v3953_v9 }
 0x263   : > { %4512 = vrcp.f32 %v1746_v59  ;;  %vm1815_vm1 = vweird.f32 %v1746_v59  ;;  %v1821_v31 = vand.u32 2147483648, %v1746_v59 }
 0x264   : > { %4514 = vrcp.f32 %v6078_v56  ;;  %vm1830_vm3 = vweird.f32 %v6078_v56 }
 0x265   : > { %4516 = vpow2.f32 %v3954_v40  ;;  %v1822_v33 = vor.u32 1.1754944e-38, %v1821_v31 }
 0x266   : > { %4518 = vpow2.f32 %v3955_v39  ;;  %v6082_v49 = vpop.f32.mrf.mxu2 }
 0x267   : > { %v4509_v23 = vpop.eup %4508  ;;  %v6086_v32 = vpop.f32.mrf.mxu3  ;;  %v3956_v9 = vmul.f32 -1.442695, %v6082_v49 }
 0x268   : > { %v4511_v60 = vpop.eup %4510  ;;  %v6084_v21 = vadd.f32 1.0, %v4509_v23  ;;  %v3957_v23 = vmul.f32 -1.442695, %v6086_v32 }
 0x269   : > { %v6088_v38 = vpop.eup %4512  ;;  %v6090_v22 = vadd.f32 1.0, %v4511_v60  ;;  %v1819_v60 = vand.u32 2147483647, %v1746_v59 }
 0x26a   : > { %v6093_v13 = vpop.eup %4514  ;;  %v1811_v58 = vmul.f32 %v6088_v38, %v1746_v59  ;;  %4520 = vrcp.f32 %v6084_v21  ;;  %vm1816_vm2 = vweird.f32 %v6088_v38  ;;  %v1849_v30 = vand.u32 2147483647, %v6084_v21 }
 0x26b   : > { %v4517_v40 = vpop.eup %4516  ;;  %v1826_v39 = vmul.f32 %v6093_v13, %v6078_v56  ;;  %4522 = vrcp.f32 %v6090_v22  ;;  %vm1831_vm4 = vweird.f32 %v6093_v13  ;;  %vm6130_vm5 = vmor %vm1815_vm1, %vm1816_vm2  ;;  %v1866_v0 = vand.u32 2147483648, %v6090_v22 }
 0x26c   : > { %v4519_v8 = vpop.eup %4518  ;;  %v1812_v7 = vsub.f32 1.0, %v1811_v58  ;;  %4524 = vpow2.f32 %v3956_v9  ;;  %v6102_v18 = vadd.f32 1.0, %v4517_v40  ;;  %v1834_v58 = vand.u32 2147483647, %v6078_v56  ;;  %vm6145_vm7 = vmor %vm1830_vm3, %vm1831_vm4 }
 0x26d   : > { %v1827_v44 = vsub.f32 1.0, %v1826_v39  ;;  %v6104_v20 = vadd.f32 1.0, %v4519_v8  ;;  %4526 = vpow2.f32 %v3957_v23  ;;  %v1836_v40 = vand.u32 2147483648, %v6078_v56  ;;  %v6121_v39 = vpop.f32.mrf.mxu1  ;;  %v4224_v23 = vld [vmem:[%s5349_s6 + $0x8] sm:$0xff] }
 0x26e   : > { %v1813_v41 = vmul.f32 %v6088_v38, %v1812_v7  ;;  %4528 = vrcp.f32 %v6102_v18  ;;  %v6115_v7 = vpop.f32.mrf.mxu0  ;;  %vm6137_vm6 = vcmp.eq.f32.partialorder %v1819_v60, 8.507059e+37  ;;  %vm6149_vm8 = vcmp.eq.f32.partialorder %v1834_v58, 8.507059e+37  ;;  %3208 = vmatpush.bf16.msra.mxu0 %v4224_v23  ;;  %v6167_v17 = vpop.f32.mrf.mxu2 }
 0x26f   : > { %v1828_v19 = vmul.f32 %v6093_v13, %v1827_v44  ;;  %4530 = vrcp.f32 %v6104_v20  ;;  %v6154_v57 = vmul.f32 -1.442695, %v6115_v7  ;;  %v6165_v58 = vmul.f32 -1.442695, %v6121_v39 }
 0x270   : > { %v6109_v43 = vpop.eup %4520  ;;  %v1814_v9 = vadd.f32 %v6088_v38, %v1813_v41  ;;  %v1837_v10 = vor.u32 1.1754944e-38, %v1836_v40  ;;  %vm1845_vm9 = vweird.f32 %v6084_v21  ;;  %v1879_v59 = vand.u32 2147483647, %v6102_v18 }
 0x271   : > { %v1829_v8 = vadd.f32 %v6093_v13, %v1828_v19  ;;  %v1841_v44 = vmul.f32 %v6109_v43, %v6084_v21  ;;  %v6125_v41 = vpop.eup %4522  ;;  %v1851_v19 = vand.u32 2147483648, %v6084_v21  ;;  %v6187_v25 = vmul.f32 -1.442695, %v6167_v17 }
 0x272   : > { %v4525_v11 = vpop.eup %4524  ;;  %v1818_v31 = vsel %vm6130_vm5, %v6088_v38, %v1814_v9  ;;  %v1856_v60 = vmul.f32 %v6125_v41, %v6090_v22  ;;  %v1864_v38 = vand.u32 2147483647, %v6090_v22  ;;  %vm1875_vm10 = vweird.f32 %v6102_v18 }
 0x273   : > { %v1833_v56 = vsel %vm6145_vm7, %v6093_v13, %v1829_v8  ;;  %v4527_v23 = vpop.eup %4526  ;;  %v1842_v28 = vsub.f32 1.0, %v1841_v44  ;;  %v6172_v13 = vor.u32 1.1754944e-38, %v1851_v19  ;;  %v6174_v8 = vor.u32 1.1754944e-38, %v1866_v0 }
 0x274   : > { %v4529_v9 = vpop.eup %4528  ;;  %v6177_v55 = vadd.f32 1.0, %v4525_v11  ;;  %v1823_v54 = vsel %vm6137_vm6, %v1822_v33, %v1818_v31  ;;  %v1838_v40 = vsel %vm6149_vm8, %v1837_v10, %v1833_v56  ;;  %v1857_v0 = vsub.f32 1.0, %v1856_v60 }
 0x275   : > { %v1871_v44 = vmul.f32 %v4529_v9, %v6102_v18  ;;  %v4531_v19 = vpop.eup %4530  ;;  %v6191_v11 = vadd.f32 1.0, %v4527_v23  ;;  %v1843_v33 = vmul.f32 %v6109_v43, %v1842_v28  ;;  %vm1846_vm11 = vweird.f32 %v6109_v43 }
 0x276   : > { %4532 = vrcp.f32 %v6177_v55  ;;  %v1886_v36 = vmul.f32 %v4531_v19, %v6104_v20  ;;  %v2770_v31 = vmul.f32 %v1823_v54, %v6057_v42  ;;  %v2771_v56 = vmul.f32 %v1838_v40, %v6063_v50  ;;  %vm6228_vm4 = vmor %vm1845_vm9, %vm1846_vm11 }
 0x277   : > { %v1872_v5 = vsub.f32 1.0, %v1871_v44  ;;  %vm1860_vm12 = vweird.f32 %v6090_v22  ;;  %vm6199_vm13 = vcmp.eq.f32.partialorder %v1879_v59, 8.507059e+37  ;;  %v1881_v23 = vand.u32 2147483648, %v6102_v18 }
 0x278   : > { %vm6204_vm14 = vcmp.eq.f32.partialorder %v1849_v30, 8.507059e+37  ;;  %vm1876_vm15 = vweird.f32 %v4529_v9  ;;  %v1887_v16 = vsub.f32 1.0, %v1886_v36  ;;  %v1894_v26 = vand.u32 2147483647, %v6104_v20 }
 0x279   : > { %v1873_v10 = vmul.f32 %v4529_v9, %v1872_v5  ;;  %v1858_v54 = vmul.f32 %v6125_v41, %v1857_v0  ;;  %vm1890_vm0 = vweird.f32 %v6104_v20  ;;  %v1896_v42 = vand.u32 2147483648, %v6104_v20  ;;  %vm1877_vm3 = vmor %vm1875_vm10, %vm1876_vm15 }
 0x27a   : > { %4534 = vrcp.f32 %v6191_v11  ;;  %v1844_v50 = vadd.f32 %v6109_v43, %v1843_v33  ;;  %v1888_v30 = vmul.f32 %v4531_v19, %v1887_v16  ;;  %vm1891_vm1 = vweird.f32 %v4531_v19 }
 0x27b   : > { %v1874_v59 = vadd.f32 %v4529_v9, %v1873_v10  ;;  %v6215_v44 = vmul.f32 %v2770_v31, %v5877_v29  ;;  %v6218_v5 = vmul.f32 %v2771_v56, %v5879_v6  ;;  %vm1861_vm2 = vweird.f32 %v6125_v41  ;;  %vm1892_vm7 = vmor %vm1890_vm0, %vm1891_vm1 }
 0x27c   : > { %v4533_v40 = vpop.eup %4532  ;;  %v1882_v0 = vor.u32 1.1754944e-38, %v1881_v23  ;;  %vm6232_vm5 = vcmp.eq.f32.partialorder %v1864_v38, 8.507059e+37  ;;  %v1889_v36 = vadd.f32 %v4531_v19, %v1888_v30  ;;  %vm1895_vm6 = vcmp.eq.f32.partialorder %v1894_v26, 8.507059e+37  ;;  %vm6254_vm9 = vmor %vm1860_vm12, %vm1861_vm2 }
 0x27d   : > { %v1878_v6 = vsel %vm1877_vm3, %v4529_v9, %v1874_v59  ;;  %v1901_v31 = vmul.f32 %v4533_v40, %v6177_v55  ;;  %v1859_v18 = vadd.f32 %v6125_v41, %v1858_v54  ;;  %v1897_v21 = vor.u32 1.1754944e-38, %v1896_v42 }
 0x27e   : > { %v1883_v56 = vsel %vm6199_vm13, %v1882_v0, %v1878_v6  ;;  %v1909_v38 = vand.u32 2147483647, %v6177_v55  ;;  %v1848_v9 = vsel %vm6228_vm4, %v6109_v43, %v1844_v50  ;;  %v1893_v23 = vsel %vm1892_vm7, %v4531_v19, %v1889_v36  ;;  %v6283_v36 = vpop.f32.mrf.mxu1 }
 0x27f   : > { %v1902_v10 = vsub.f32 1.0, %v1901_v31  ;;  %v1911_v16 = vand.u32 2147483648, %v6177_v55  ;;  %v2774_v54 = vmul.f32 %v1883_v56, %v6072_v12  ;;  %v1898_v60 = vsel %vm1895_vm6, %v1897_v21, %v1893_v23  ;;  %v6261_v12 = vpop.f32.mrf.mxu3  ;;  %v4231_v23 = vld [vmem:[%s5349_s6 + $0x40] sm:$0xff] }
 0x280   : > { %v4535_v26 = vpop.eup %4534  ;;  %vm1906_vm8 = vweird.f32 %v4533_v40  ;;  %4536 = vpow2.f32 %v6154_v57  ;;  %v2775_v43 = vmul.f32 %v1898_v60, %v6075_v35  ;;  %v1853_v57 = vsel %vm6204_vm14, %v6172_v13, %v1848_v9  ;;  %v4223_v9 = vld [vmem:[%s5349_s6] sm:$0xff]  ;;  %3258 = vmatpush.bf16.msra.mxu1 %v4231_v23 }
 0x281   : > { %v1903_v19 = vmul.f32 %v4533_v40, %v1902_v10  ;;  %v1916_v42 = vmul.f32 %v4535_v26, %v6191_v11  ;;  %4538 = vpow2.f32 %v6165_v58  ;;  %v1863_v22 = vsel %vm6254_vm9, %v6125_v41, %v1859_v18  ;;  %3209 = vmatpush.bf16.msra.mxu0 %v4223_v9 }
 0x282   : > { %vm1905_vm10 = vweird.f32 %v6177_v55  ;;  %vm6270_vm11 = vcmp.eq.f32.partialorder %v1909_v38, 8.507059e+37  ;;  %v1912_v59 = vor.u32 1.1754944e-38, %v1911_v16  ;;  %v1926_v58 = vand.u32 2147483648, %v6191_v11  ;;  %v6280_v55 = vpop.f32.mrf.mxu0 }
 0x283   : > { %v1904_v35 = vadd.f32 %v4533_v40, %v1903_v19  ;;  %v1917_v30 = vsub.f32 1.0, %v1916_v42  ;;  %v2838_v0 = vmul.f32 %v2774_v54, %v5889_v52  ;;  %v2839_v28 = vmul.f32 %v2775_v43, %v5891_v53  ;;  %vm1907_vm12 = vmor %vm1905_vm10, %vm1906_vm8  ;;  %v4239_v19 = vld [vmem:[%s5349_s6 + $0x80] sm:$0xff] }
 0x284   : > { %v1924_v13 = vand.u32 2147483647, %v6191_v11  ;;  %v3961_v41 = vmul.f32 -1.442695, %v6261_v12  ;;  %vm1921_vm13 = vweird.f32 %v4535_v26  ;;  %4540 = vpow2.f32 %v6187_v25  ;;  %v4247_v42 = vld [vmem:[%s5349_s6 + $0xc0] sm:$0xff]  ;;  %3307 = vmatpush.bf16.msra.mxu2 %v4239_v19 }
 0x285   : > { %v1908_v33 = vsel %vm1907_vm12, %v4533_v40, %v1904_v35  ;;  %v1918_v6 = vmul.f32 %v4535_v26, %v1917_v30  ;;  %v2772_v53 = vmul.f32 %v1853_v57, %v6067_v2  ;;  %v1868_v31 = vsel %vm6232_vm5, %v6174_v8, %v1863_v22  ;;  %3356 = vmatpush.bf16.msra.mxu3 %v4247_v42 }
 0x286   : > { %v4537_v52 = vpop.eup %4536  ;;  %v1913_v18 = vsel %vm6270_vm11, %v1912_v59, %v1908_v33  ;;  %vm1920_vm14 = vweird.f32 %v6191_v11  ;;  %v1927_v38 = vor.u32 1.1754944e-38, %v1926_v58  ;;  %v3962_v25 = vmul.f32 -1.442695, %v6280_v55 }
 0x287   : > { %v4539_v40 = vpop.eup %4538  ;;  %v2776_v56 = vmul.f32 %v1913_v18, %v6082_v49  ;;  %v1919_v21 = vadd.f32 %v4535_v26, %v1918_v6  ;;  %v2914_v2 = vpack.c.bf16 %v2838_v0, %v6215_v44  ;;  %v2915_v10 = vpack.c.bf16 %v2839_v28, %v6218_v5  ;;  %vm1922_vm15 = vmor %vm1920_vm14, %vm1921_vm13  ;;  %v6306_v5 = vpop.f32.mrf.mxu2 }
 0x288   : > { %4542 = vpow2.f32 %v3961_v41  ;;  %v3963_v8 = vmul.f32 -1.442695, %v6283_v36  ;;  %v2773_v11 = vmul.f32 %v1868_v31, %v6070_v34  ;;  %vm1925_vm0 = vcmp.eq.f32.partialorder %v1924_v13, 8.507059e+37  ;;  %v6319_v50 = vpop.f32.mrf.mxu3 }
 0x289   : > { %v1923_v29 = vsel %vm1922_vm15, %v4535_v26, %v1919_v21  ;;  %v6301_v49 = vadd.f32 1.0, %v4537_v52  ;;  %v2840_v16 = vmul.f32 %v2776_v56, %v5893_v14  ;;  %v6304_v54 = vadd.f32 1.0, %v4539_v40  ;;  %3210 = vmatmul.bf16.vlgmr.msra.gmra.mxu0 %v2914_v2  ;;  %3259 = vmatmul.bf16.vlgmr.msra.gmra.mxu1 %v2915_v10  ;;  %v6350_v21 = vpop.f32.mrf.mxu1 }
 0x28a   : > { %v1928_v44 = vsel %vm1925_vm0, %v1927_v38, %v1923_v29  ;;  %v4541_v60 = vpop.eup %4540  ;;  %4544 = vpow2.f32 %v3962_v25  ;;  %v2836_v34 = vmul.f32 %v2772_v53, %v5885_v45  ;;  %v2837_v26 = vmul.f32 %v2773_v11, %v5887_v51  ;;  %v6340_v52 = vpop.f32.mrf.mxu0 }
 0x28b   : > { %v2777_v20 = vmul.f32 %v1928_v44, %v6086_v32  ;;  %4546 = vpow2.f32 %v3963_v8  ;;  %v3964_v14 = vmul.f32 -1.442695, %v6306_v5  ;;  %v6317_v32 = vadd.f32 1.0, %v4541_v60 }
 0x28c   : > { %4548 = vrcp.f32 %v6301_v49  ;;  %v2916_v22 = vpack.c.bf16 %v2840_v16, %v2836_v34  ;;  %v3965_v30 = vmul.f32 -1.442695, %v6319_v50  ;;  %v3966_v38 = vmul.f32 -1.442695, %v6340_v52 }
 0x28d   : > { %v2841_v43 = vmul.f32 %v2777_v20, %v5895_v3  ;;  %4550 = vrcp.f32 %v6304_v54  ;;  %v1939_v9 = vand.u32 2147483647, %v6301_v49  ;;  %v1941_v23 = vand.u32 2147483648, %v6301_v49 }
 0x28e   : > { %v4543_v57 = vpop.eup %4542  ;;  %4552 = vpow2.f32 %v3964_v14  ;;  %3308 = vmatmul.bf16.vlgmr.msra.gmra.mxu2 %v2916_v22  ;;  %v1954_v2 = vand.u32 2147483647, %v6304_v54  ;;  %v3967_v11 = vmul.f32 -1.442695, %v6350_v21  ;;  %vm1935_vm1 = vweird.f32 %v6301_v49 }
 0x28f   : > { %v2917_v45 = vpack.c.bf16 %v2841_v43, %v2837_v26  ;;  %v6321_v35 = vadd.f32 1.0, %v4543_v57  ;;  %4554 = vrcp.f32 %v6317_v32  ;;  %vm1950_vm2 = vweird.f32 %v6304_v54 }
 0x290   : > { %v4545_v51 = vpop.eup %4544  ;;  %v1956_v60 = vand.u32 2147483648, %v6304_v54  ;;  %vm6371_vm3 = vcmp.eq.f32.partialorder %v1939_v9, 8.507059e+37  ;;  %v1942_v43 = vor.u32 1.1754944e-38, %v1941_v23  ;;  %vm6375_vm4 = vcmp.eq.f32.partialorder %v1954_v2, 8.507059e+37 }
 0x291   : > { %v4547_v3 = vpop.eup %4546  ;;  %3357 = vmatmul.bf16.vlgmr.msra.gmra.mxu3 %v2917_v45  ;;  %4556 = vrcp.f32 %v6321_v35  ;;  %v6332_v28 = vadd.f32 1.0, %v4545_v51  ;;  %v1969_v19 = vand.u32 2147483647, %v6317_v32  ;;  %v1971_v57 = vand.u32 2147483648, %v6317_v32 }
 0x292   : > { %v6324_v59 = vpop.eup %4548  ;;  %v6336_v33 = vadd.f32 1.0, %v4547_v3  ;;  %4558 = vpow2.f32 %v3965_v30  ;;  %v6388_v30 = vpop.f32.mrf.mxu2  ;;  %vm1965_vm7 = vweird.f32 %v6317_v32  ;;  %vm1980_vm10 = vweird.f32 %v6321_v35 }
 0x293   : > { %v6327_v58 = vpop.eup %4550  ;;  %v1931_v0 = vmul.f32 %v6324_v59, %v6301_v49  ;;  %4560 = vrcp.f32 %v6332_v28  ;;  %vm1936_vm5 = vweird.f32 %v6324_v59  ;;  %vm6402_vm9 = vcmp.eq.f32.partialorder %v1969_v19, 8.507059e+37 }
 0x294   : > { %v4553_v13 = vpop.eup %4552  ;;  %v1946_v41 = vmul.f32 %v6327_v58, %v6304_v54  ;;  %4562 = vrcp.f32 %v6336_v33  ;;  %vm1951_vm6 = vweird.f32 %v6327_v58  ;;  %vm6398_vm8 = vmor %vm1935_vm1, %vm1936_vm5  ;;  %v1972_v23 = vor.u32 1.1754944e-38, %v1971_v57 }
 0x295   : > { %v6338_v6 = vpop.eup %4554  ;;  %v1932_v53 = vsub.f32 1.0, %v1931_v0  ;;  %v6348_v56 = vadd.f32 1.0, %v4553_v13  ;;  %v1957_v0 = vor.u32 1.1754944e-38, %v1956_v60  ;;  %vm6416_vm11 = vmor %vm1950_vm2, %vm1951_vm6  ;;  %v3968_v54 = vmul.f32 -1.442695, %v6388_v30 }
 0x296   : > { %v1947_v18 = vsub.f32 1.0, %v1946_v41  ;;  %v1961_v40 = vmul.f32 %v6338_v6, %v6317_v32  ;;  %vm1966_vm12 = vweird.f32 %v6338_v6  ;;  %vm1995_vm13 = vweird.f32 %v6332_v28 }
 0x297   : > { %v6343_v31 = vpop.eup %4556  ;;  %v1933_v10 = vmul.f32 %v6324_v59, %v1932_v53  ;;  %4564 = vrcp.f32 %v6348_v56  ;;  %vm6451_vm14 = vmor %vm1965_vm7, %vm1966_vm12  ;;  %v2016_v49 = vand.u32 2147483648, %v6336_v33  ;;  %vm2010_vm5 = vweird.f32 %v6336_v33 }
 0x298   : > { %v4559_v25 = vpop.eup %4558  ;;  %v1976_v8 = vmul.f32 %v6343_v31, %v6321_v35  ;;  %v1948_v29 = vmul.f32 %v6327_v58, %v1947_v18  ;;  %v1962_v16 = vsub.f32 1.0, %v1961_v40  ;;  %4566 = vpow2.f32 %v3966_v38 }
 0x299   : > { %v6363_v44 = vpop.eup %4560  ;;  %v6367_v20 = vadd.f32 1.0, %v4559_v25  ;;  %v1934_v42 = vadd.f32 %v6324_v59, %v1933_v10  ;;  %v1984_v40 = vand.u32 2147483647, %v6321_v35  ;;  %v1986_v38 = vand.u32 2147483648, %v6321_v35  ;;  %v6422_v10 = vpop.f32.mrf.mxu3 }
 0x29a   : > { %v6369_v34 = vpop.eup %4562  ;;  %v1977_v22 = vsub.f32 1.0, %v1976_v8  ;;  %v1949_v45 = vadd.f32 %v6327_v58, %v1948_v29  ;;  %v1963_v51 = vmul.f32 %v6338_v6, %v1962_v16  ;;  %v1991_v3 = vmul.f32 %v6363_v44, %v6332_v28 }
 0x29b   : > { %v2006_v13 = vmul.f32 %v6369_v34, %v6336_v33  ;;  %4568 = vrcp.f32 %v6367_v20  ;;  %v1938_v9 = vsel %vm6398_vm8, %v6324_v59, %v1934_v42  ;;  %v6433_v42 = vpop.f32.mrf.mxu0  ;;  %v1987_v57 = vor.u32 1.1754944e-38, %v1986_v38 }
 0x29c   : > { %v1978_v2 = vmul.f32 %v6343_v31, %v1977_v22  ;;  %v1953_v8 = vsel %vm6416_vm11, %v6327_v58, %v1949_v45  ;;  %v1964_v59 = vadd.f32 %v6338_v6, %v1963_v51  ;;  %v1992_v29 = vsub.f32 1.0, %v1991_v3  ;;  %v6439_v51 = vpop.f32.mrf.mxu1 }
 0x29d   : > { %v6394_v41 = vpop.eup %4564  ;;  %v2007_v16 = vsub.f32 1.0, %v2006_v13  ;;  %4570 = vpow2.f32 %v3967_v11  ;;  %v1999_v22 = vand.u32 2147483647, %v6332_v28  ;;  %v2001_v58 = vand.u32 2147483648, %v6332_v28 }
 0x29e   : > { %v4567_v25 = vpop.eup %4566  ;;  %v2021_v60 = vmul.f32 %v6394_v41, %v6348_v56  ;;  %v3969_v45 = vmul.f32 -1.442695, %v6422_v10  ;;  %v1943_v13 = vsel %vm6371_vm3, %v1942_v43, %v1938_v9  ;;  %v1958_v11 = vsel %vm6375_vm4, %v1957_v0, %v1953_v8 }
 0x29f   : > { %v6431_v19 = vadd.f32 1.0, %v4567_v25  ;;  %v1979_v38 = vadd.f32 %v6343_v31, %v1978_v2  ;;  %vm1981_vm15 = vweird.f32 %v6343_v31  ;;  %vm6457_vm0 = vcmp.eq.f32.partialorder %v1984_v40, 8.507059e+37 }
 0x2a0   : > { %v1968_v26 = vsel %vm6451_vm14, %v6338_v6, %v1964_v59  ;;  %v1993_v43 = vmul.f32 %v6363_v44, %v1992_v29  ;;  %4572 = vpow2.f32 %v3968_v54  ;;  %v3970_v32 = vmul.f32 -1.442695, %v6433_v42  ;;  %v6473_v6 = vpop.f32.mrf.mxu2  ;;  %vm6483_vm1 = vmor %vm1980_vm10, %vm1981_vm15 }
 0x2a1   : > { %v6441_v3 = vpop.eup %4568  ;;  %v2008_v14 = vmul.f32 %v6369_v34, %v2007_v16  ;;  %v2022_v0 = vsub.f32 1.0, %v2021_v60  ;;  %4574 = vrcp.f32 %v6431_v19  ;;  %v3971_v9 = vmul.f32 -1.442695, %v6439_v51 }
 0x2a2   : > { %v2014_v40 = vand.u32 2147483647, %v6336_v33  ;;  %v2036_v2 = vmul.f32 %v6441_v3, %v6367_v20  ;;  %4576 = vpow2.f32 %v3969_v45  ;;  %v2778_v59 = vmul.f32 %v1943_v13, %v6115_v7 }
 0x2a3   : > { %v4571_v8 = vpop.eup %4570  ;;  %v2779_v29 = vmul.f32 %v1958_v11, %v6121_v39  ;;  %v1973_v54 = vsel %vm6402_vm9, %v1972_v23, %v1968_v26  ;;  %vm1996_vm2 = vweird.f32 %v6363_v44  ;;  %vm6488_vm3 = vcmp.eq.f32.partialorder %v1999_v22, 8.507059e+37 }
 0x2a4   : > { %v1983_v7 = vsel %vm6483_vm1, %v6343_v31, %v1979_v38  ;;  %v1994_v39 = vadd.f32 %v6363_v44, %v1993_v43  ;;  %vm2011_vm4 = vweird.f32 %v6369_v34  ;;  %4578 = vpow2.f32 %v3970_v32  ;;  %vm6515_vm6 = vmor %vm1995_vm13, %vm1996_vm2  ;;  %v6523_v43 = vpop.f32.mrf.mxu3 }
 0x2a5   : > { %v2009_v35 = vadd.f32 %v6369_v34, %v2008_v14  ;;  %v2023_v18 = vmul.f32 %v6394_v41, %v2022_v0  ;;  %4580 = vpow2.f32 %v3971_v9  ;;  %v3972_v23 = vmul.f32 -1.442695, %v6473_v6  ;;  %vm6533_vm8 = vmor %vm2010_vm5, %vm2011_vm4 }
 0x2a6   : > { %v4573_v22 = vpop.eup %4572  ;;  %v2002_v45 = vor.u32 1.1754944e-38, %v2001_v58  ;;  %v2037_v13 = vsub.f32 1.0, %v2036_v2  ;;  %v6501_v11 = vadd.f32 1.0, %v4571_v8  ;;  %v6506_v53 = vmul.f32 %v2778_v59, %v5897_v27 }
 0x2a7   : > { %v6503_v31 = vpop.eup %4574  ;;  %v6509_v38 = vmul.f32 %v2779_v29, %v5899_v1  ;;  %vm6519_vm7 = vcmp.eq.f32.partialorder %v2014_v40, 8.507059e+37  ;;  %v2017_v58 = vor.u32 1.1754944e-38, %v2016_v49  ;;  %v2780_v32 = vmul.f32 %v1973_v54, %v6167_v17 }
 0x2a8   : > { %v4577_v27 = vpop.eup %4576  ;;  %v1988_v1 = vsel %vm6457_vm0, %v1987_v57, %v1983_v7  ;;  %v1998_v28 = vsel %vm6515_vm6, %v6363_v44, %v1994_v39  ;;  %vm2026_vm9 = vweird.f32 %v6394_v41  ;;  %v2013_v0 = vsel %vm6533_vm8, %v6369_v34, %v2009_v35 }
 0x2a9   : > { %v2024_v17 = vadd.f32 %v6394_v41, %v2023_v18  ;;  %v6542_v25 = vadd.f32 1.0, %v4573_v22  ;;  %4582 = vpow2.f32 %v3972_v23  ;;  %v2038_v44 = vmul.f32 %v6441_v3, %v2037_v13 }
 0x2aa   : > { %v4579_v57 = vpop.eup %4578  ;;  %v2051_v9 = vmul.f32 %v6503_v31, %v6431_v19  ;;  %4584 = vrcp.f32 %v6501_v11  ;;  %v3973_v40 = vmul.f32 -1.442695, %v6523_v43  ;;  %vm2025_vm10 = vweird.f32 %v6348_v56 }
 0x2ab   : > { %v4581_v49 = vpop.eup %4580  ;;  %v2029_v34 = vand.u32 2147483647, %v6348_v56  ;;  %v2031_v2 = vand.u32 2147483648, %v6348_v56  ;;  %v6552_v8 = vadd.f32 1.0, %v4577_v27  ;;  %v6555_v59 = vmul.f32 %v2780_v32, %v5909_v61  ;;  %vm6564_vm11 = vmor %vm2025_vm10, %vm2026_vm9 }
 0x2ac   : > { %v2781_v29 = vmul.f32 %v1988_v1, %v6261_v12  ;;  %v2003_v54 = vsel %vm6488_vm3, %v2002_v45, %v1998_v28  ;;  %v2018_v16 = vsel %vm6519_vm7, %v2017_v58, %v2013_v0  ;;  %v2028_v56 = vsel %vm6564_vm11, %v6394_v41, %v2024_v17 }
 0x2ad   : > { %vm2041_vm12 = vweird.f32 %v6441_v3  ;;  %4586 = vrcp.f32 %v6542_v25  ;;  %v6573_v61 = vadd.f32 1.0, %v4579_v57  ;;  %v2039_v12 = vadd.f32 %v6441_v3, %v2038_v44 }
 0x2ae   : > { %v2052_v60 = vsub.f32 1.0, %v2051_v9  ;;  %v6576_v39 = vadd.f32 1.0, %v4581_v49  ;;  %4588 = vpow2.f32 %v3973_v40  ;;  %v2782_v18 = vmul.f32 %v2003_v54, %v6280_v55  ;;  %v6625_v40 = vpop.f32.mrf.mxu0 }
 0x2af   : > { %v4583_v35 = vpop.eup %4582  ;;  %v2032_v23 = vor.u32 1.1754944e-38, %v2031_v2  ;;  %v2046_v22 = vand.u32 2147483648, %v6367_v20  ;;  %4590 = vrcp.f32 %v6552_v8  ;;  %v2783_v45 = vmul.f32 %v2018_v16, %v6283_v36  ;;  %v6636_v16 = vpop.f32.mrf.mxu1 }
 0x2b0   : > { %v6581_v41 = vpop.eup %4584  ;;  %vm2030_vm13 = vcmp.eq.f32.partialorder %v2029_v34, 8.507059e+37  ;;  %vm2040_vm14 = vweird.f32 %v6367_v20  ;;  %v2044_v13 = vand.u32 2147483647, %v6367_v20  ;;  %v6587_v26 = vmul.f32 %v2781_v29, %v5911_v37 }
 0x2b1   : > { %v2033_v33 = vsel %vm2030_vm13, %v2032_v23, %v2028_v56  ;;  %vm6591_vm15 = vmor %vm2040_vm14, %vm2041_vm12  ;;  %v2059_v58 = vand.u32 2147483647, %v6431_v19  ;;  %4592 = vrcp.f32 %v6573_v61  ;;  %v2053_v20 = vmul.f32 %v6503_v31, %v2052_v60 }
 0x2b2   : > { %v2043_v36 = vsel %vm6591_vm15, %v6441_v3, %v2039_v12  ;;  %4594 = vrcp.f32 %v6576_v39  ;;  %v6602_v37 = vadd.f32 1.0, %v4583_v35  ;;  %v6607_v32 = vmul.f32 %v2782_v18, %v5913_v46 }
 0x2b3   : > { %v6604_v27 = vpop.eup %4586  ;;  %v2047_v1 = vor.u32 1.1754944e-38, %v2046_v22  ;;  %v2061_v28 = vand.u32 2147483648, %v6431_v19  ;;  %v2066_v14 = vmul.f32 %v6581_v41, %v6501_v11  ;;  %v6613_v3 = vmul.f32 %v2783_v45, %v5915_v62  ;;  %v6661_v45 = vpop.f32.mrf.mxu2 }
 0x2b4   : > { %v4589_v0 = vpop.eup %4588  ;;  %v2784_v17 = vmul.f32 %v2033_v33, %v6306_v5  ;;  %vm2045_vm0 = vcmp.eq.f32.partialorder %v2044_v13, 8.507059e+37  ;;  %vm2055_vm1 = vweird.f32 %v6431_v19  ;;  %vm2056_vm2 = vweird.f32 %v6503_v31 }
 0x2b5   : > { %v6617_v57 = vpop.eup %4590  ;;  %v2048_v44 = vsel %vm2045_vm0, %v2047_v1, %v2043_v36  ;;  %vm6620_vm3 = vcmp.eq.f32.partialorder %v2059_v58, 8.507059e+37  ;;  %v2076_v9 = vand.u32 2147483648, %v6501_v11  ;;  %v2054_v62 = vadd.f32 %v6503_v31, %v2053_v20  ;;  %vm6652_vm5 = vmor %vm2055_vm1, %vm2056_vm2 }
 0x2b6   : > { %v2081_v5 = vmul.f32 %v6604_v27, %v6542_v25  ;;  %v2091_v49 = vand.u32 2147483648, %v6542_v25  ;;  %4596 = vrcp.f32 %v6602_v37  ;;  %v2062_v2 = vor.u32 1.1754944e-38, %v2061_v28  ;;  %v6697_v18 = vpop.f32.mrf.mxu0 }
 0x2b7   : > { %v6632_v34 = vpop.eup %4592  ;;  %v2067_v29 = vsub.f32 1.0, %v2066_v14  ;;  %vm2070_vm4 = vweird.f32 %v6501_v11  ;;  %v2074_v54 = vand.u32 2147483647, %v6501_v11  ;;  %v6641_v56 = vmul.f32 %v2784_v17, %v5917_v63 }
 0x2b8   : > { %v6638_v7 = vpop.eup %4594  ;;  %v2785_v12 = vmul.f32 %v2048_v44, %v6319_v50  ;;  %v2096_v60 = vmul.f32 %v6617_v57, %v6552_v8  ;;  %v6646_v35 = vadd.f32 1.0, %v4589_v0  ;;  %v6656_v23 = vor.u32 1.1754944e-38, %v2076_v9 }
 0x2b9   : > { %v2089_v63 = vand.u32 2147483647, %v6542_v25  ;;  %v2106_v22 = vand.u32 2147483648, %v6552_v8  ;;  %v3974_v50 = vmul.f32 -1.442695, %v6625_v40  ;;  %v2058_v13 = vsel %vm6652_vm5, %v6503_v31, %v2054_v62 }
 0x2ba   : > { %v2082_v33 = vsub.f32 1.0, %v2081_v5  ;;  %v6666_v19 = vor.u32 1.1754944e-38, %v2091_v49  ;;  %v2111_v55 = vmul.f32 %v6632_v34, %v6573_v61  ;;  %v2068_v58 = vmul.f32 %v6581_v41, %v2067_v29  ;;  %v6691_v49 = vpop.f32.mrf.mxu3 }
 0x2bb   : > { %v2126_v36 = vmul.f32 %v6638_v7, %v6576_v39  ;;  %4598 = vrcp.f32 %v6646_v35  ;;  %v3975_v20 = vmul.f32 -1.442695, %v6636_v16  ;;  %v6678_v28 = vmul.f32 %v2785_v12, %v5919_v48 }
 0x2bc   : > { %v6675_v1 = vpop.eup %4596  ;;  %vm2071_vm6 = vweird.f32 %v6581_v41  ;;  %vm2085_vm7 = vweird.f32 %v6542_v25  ;;  %v2097_v31 = vsub.f32 1.0, %v2096_v60  ;;  %v2104_v14 = vand.u32 2147483647, %v6552_v8 }
 0x2bd   : > { %v6683_v0 = vor.u32 1.1754944e-38, %v2106_v22  ;;  %v2119_v17 = vand.u32 2147483647, %v6573_v61  ;;  %4600 = vpow2.f32 %v3974_v50  ;;  %v3976_v44 = vmul.f32 -1.442695, %v6661_v45  ;;  %vm6727_vm14 = vmor %vm2070_vm4, %vm2071_vm6 }
 0x2be   : > { %v2063_v9 = vsel %vm6620_vm3, %v2062_v2, %v2058_v13  ;;  %v2083_v48 = vmul.f32 %v6604_v27, %v2082_v33  ;;  %v2112_v62 = vsub.f32 1.0, %v2111_v55  ;;  %v2121_v5 = vand.u32 2147483648, %v6573_v61  ;;  %v6719_v55 = vpop.f32.mrf.mxu1 }
 0x2bf   : > { %v2069_v29 = vadd.f32 %v6581_v41, %v2068_v58  ;;  %vm2100_vm8 = vweird.f32 %v6552_v8  ;;  %v2127_v12 = vsub.f32 1.0, %v2126_v36  ;;  %v2141_v60 = vmul.f32 %v6675_v1, %v6602_v37 }
 0x2c0   : > { %4602 = vpow2.f32 %v3975_v20  ;;  %vm6699_vm9 = vcmp.eq.f32.partialorder %v2074_v54, 8.507059e+37  ;;  %vm2086_vm10 = vweird.f32 %v6604_v27  ;;  %v2098_v2 = vmul.f32 %v6617_v57, %v2097_v31 }
 0x2c1   : > { %vm2101_vm11 = vweird.f32 %v6617_v57  ;;  %vm2115_vm12 = vweird.f32 %v6573_v61  ;;  %v2918_v22 = vpack.c.bf16 %v6607_v32, %v6506_v53  ;;  %v6709_v50 = vpop.eup %4598  ;;  %v6712_v13 = vmul.f32 %v2063_v9, %v6340_v52  ;;  %vm6758_vm3 = vmor %vm2085_vm7, %vm2086_vm10 }
 0x2c2   : > { %vm6714_vm13 = vcmp.eq.f32.partialorder %v2089_v63, 8.507059e+37  ;;  %4604 = vpow2.f32 %v3976_v44  ;;  %v3977_v33 = vmul.f32 -1.442695, %v6691_v49  ;;  %v2919_v58 = vpack.c.bf16 %v6613_v3, %v6509_v38  ;;  %v6743_v44 = vpop.f32.mrf.mxu2  ;;  %vm6782_vm5 = vmor %vm2100_vm8, %vm2101_vm11 }
 0x2c3   : > { %v2084_v52 = vadd.f32 %v6604_v27, %v2083_v48  ;;  %v2113_v32 = vmul.f32 %v6632_v34, %v2112_v62  ;;  %v2122_v63 = vor.u32 1.1754944e-38, %v2121_v5  ;;  %v3978_v36 = vmul.f32 -1.442695, %v6697_v18  ;;  %3215 = vmatmul.bf16.gmra.mxu0 %v2918_v22  ;;  %v4601_v20 = vpop.eup %4600 }
 0x2c4   : > { %v2073_v38 = vsel %vm6727_vm14, %v6581_v41, %v2069_v29  ;;  %vm6737_vm15 = vcmp.eq.f32.partialorder %v2104_v14, 8.507059e+37  ;;  %v2128_v11 = vmul.f32 %v6638_v7, %v2127_v12  ;;  %vm2130_vm0 = vweird.f32 %v6576_v39  ;;  %3264 = vmatmul.bf16.gmra.mxu1 %v2919_v58 }
 0x2c5   : > { %v2142_v31 = vsub.f32 1.0, %v2141_v60  ;;  %v2099_v9 = vadd.f32 %v6617_v57, %v2098_v2  ;;  %vm2116_vm1 = vweird.f32 %v6632_v34  ;;  %vm6747_vm2 = vcmp.eq.f32.partialorder %v2119_v17, 8.507059e+37 }
 0x2c6   : > { %v2156_v41 = vmul.f32 %v6709_v50, %v6646_v35  ;;  %v3979_v14 = vmul.f32 -1.442695, %v6719_v55  ;;  %v4603_v62 = vpop.eup %4602  ;;  %v6762_v29 = vadd.f32 1.0, %v4601_v20  ;;  %4606 = vpow2.f32 %v3977_v33  ;;  %vm6798_vm6 = vmor %vm2115_vm12, %vm2116_vm1 }
 0x2c7   : > { %v2920_v17 = vpack.c.bf16 %v6641_v56, %v6555_v59  ;;  %v2921_v12 = vpack.c.bf16 %v6678_v28, %v6587_v26  ;;  %v2088_v60 = vsel %vm6758_vm3, %v6604_v27, %v2084_v52  ;;  %v2114_v2 = vadd.f32 %v6632_v34, %v2113_v32 }
 0x2c8   : > { %4608 = vpow2.f32 %v3978_v36  ;;  %v3980_v25 = vmul.f32 -1.442695, %v6743_v44  ;;  %v4605_v22 = vpop.eup %4604  ;;  %v2129_v58 = vadd.f32 %v6638_v7, %v2128_v11  ;;  %vm2131_vm4 = vweird.f32 %v6638_v7 }
 0x2c9   : > { %v2143_v33 = vmul.f32 %v6675_v1, %v2142_v31  ;;  %v6776_v59 = vadd.f32 1.0, %v4603_v62  ;;  %3313 = vmatmul.bf16.gmra.mxu2 %v2920_v17  ;;  %3362 = vmatmul.bf16.gmra.mxu3 %v2921_v12  ;;  %v2134_v27 = vand.u32 2147483647, %v6576_v39  ;;  %v2136_v56 = vand.u32 2147483648, %v6576_v39  ;;  %vm6814_vm7 = vmor %vm2130_vm0, %vm2131_vm4 }
 0x2ca   : > { %v2157_v28 = vsub.f32 1.0, %v2156_v41  ;;  %4610 = vpow2.f32 %v3979_v14  ;;  %v2078_v53 = vsel %vm6699_vm9, %v6656_v23, %v2073_v38  ;;  %v2103_v52 = vsel %vm6782_vm5, %v6617_v57, %v2099_v9 }
 0x2cb   : > { %v2149_v32 = vand.u32 2147483647, %v6602_v37  ;;  %4612 = vrcp.f32 %v6762_v29  ;;  %v2093_v23 = vsel %vm6714_vm13, %v6666_v19, %v2088_v60  ;;  %v2118_v57 = vsel %vm6798_vm6, %v6632_v34, %v2114_v2 }
 0x2cc   : > { %v6818_v46 = vadd.f32 1.0, %v4605_v22  ;;  %4614 = vpow2.f32 %v3980_v25  ;;  %v4607_v36 = vpop.eup %4606  ;;  %v2133_v19 = vsel %vm6814_vm7, %v6638_v7, %v2129_v58  ;;  %v2144_v54 = vadd.f32 %v6675_v1, %v2143_v33 }
 0x2cd   : > { %vm2146_vm8 = vweird.f32 %v6675_v1  ;;  %4616 = vrcp.f32 %v6776_v59  ;;  %v2108_v39 = vsel %vm6737_vm15, %v6683_v0, %v2103_v52  ;;  %v2137_v20 = vor.u32 1.1754944e-38, %v2136_v56 }
 0x2ce   : > { %v4609_v34 = vpop.eup %4608  ;;  %v2151_v38 = vand.u32 2147483648, %v6602_v37  ;;  %v2158_v11 = vmul.f32 %v6709_v50, %v2157_v28  ;;  %v2787_v31 = vmul.f32 %v2078_v53, %v6350_v21  ;;  %v2123_v7 = vsel %vm6747_vm2, %v2122_v63, %v2118_v57  ;;  %v8508_v28 = vld [vmem:[#allocation36_spill] sm:$0xff]  ;;  %v6904_v57 = vpop.f32.mrf.mxu1 }
 0x2cf   : > { %vm2135_vm9 = vcmp.eq.f32.partialorder %v2134_v27, 8.507059e+37  ;;  %vm2145_vm10 = vweird.f32 %v6602_v37  ;;  %v2788_v41 = vmul.f32 %v2093_v23, %v6388_v30  ;;  %4618 = vrcp.f32 %v6818_v46  ;;  %v6851_v30 = vpop.f32.mrf.mxu3 }
 0x2d0   : > { %v4611_v9 = vpop.eup %4610  ;;  %v2138_v14 = vsel %vm2135_vm9, %v2137_v20, %v2133_v19  ;;  %vm6836_vm11 = vmor %vm2145_vm10, %vm2146_vm8  ;;  %v6841_v0 = vadd.f32 1.0, %v4607_v36  ;;  %v2789_v21 = vmul.f32 %v2108_v39, %v6422_v10  ;;  %vm2150_vm12 = vcmp.eq.f32.partialorder %v2149_v32, 8.507059e+37  ;;  %v8509_v32 = vld [vmem:[#allocation37_spill] sm:$0xff]  ;;  %v6915_v39 = vpop.f32.mrf.mxu2 }
 0x2d1   : > { %v6843_v62 = vpop.eup %4612  ;;  %v2148_v37 = vsel %vm6836_vm11, %v6675_v1, %v2144_v54  ;;  %v6849_v63 = vadd.f32 1.0, %v4609_v34  ;;  %v2790_v5 = vmul.f32 %v2123_v7, %v6433_v42  ;;  %v2152_v17 = vor.u32 1.1754944e-38, %v2151_v38  ;;  %v8510_v38 = vld [vmem:[#allocation38_spill] sm:$0xff] }
 0x2d2   : > { %v4615_v48 = vpop.eup %4614  ;;  %v2159_v12 = vadd.f32 %v6709_v50, %v2158_v11  ;;  %vm2161_vm13 = vweird.f32 %v6709_v50  ;;  %v2791_v10 = vmul.f32 %v2138_v14, %v6439_v51  ;;  %vm2160_vm14 = vweird.f32 %v6646_v35 }
 0x2d3   : > { %v6856_v60 = vpop.eup %4616  ;;  %v2164_v1 = vand.u32 2147483647, %v6646_v35  ;;  %v2166_v2 = vand.u32 2147483648, %v6646_v35  ;;  %v2153_v25 = vsel %vm2150_vm12, %v2152_v17, %v2148_v37  ;;  %v2171_v22 = vmul.f32 %v6843_v62, %v6762_v29  ;;  %vm6873_vm15 = vmor %vm2160_vm14, %vm2161_vm13 }
 0x2d4   : > { %4620 = vrcp.f32 %v6841_v0  ;;  %v3981_v42 = vmul.f32 -1.442695, %v6851_v30  ;;  %v6868_v58 = vmul.f32 %v6712_v13, %v5921_v4  ;;  %v6871_v51 = vmul.f32 %v2787_v31, %v5923_v47 }
 0x2d5   : > { %4622 = vrcp.f32 %v6849_v63  ;;  %v6878_v35 = vadd.f32 1.0, %v4611_v9  ;;  %v6880_v26 = vpop.eup %4618  ;;  %v6883_v27 = vmul.f32 %v2788_v41, %v5933_v15  ;;  %v2163_v4 = vsel %vm6873_vm15, %v6709_v50, %v2159_v12  ;;  %v6899_v15 = vpop.f32.mrf.mxu0 }
 0x2d6   : > { %v2186_v47 = vmul.f32 %v6856_v60, %v6776_v59  ;;  %v6890_v13 = vadd.f32 1.0, %v4615_v48  ;;  %v6893_v56 = vmul.f32 %v2789_v21, %v5935_v24  ;;  %v6896_v53 = vmul.f32 %v2790_v5, %v8508_v28  ;;  %v7030_v12 = vpop.f32.mrf.mxu1 }
 0x2d7   : > { %v2792_v52 = vmul.f32 %v2153_v25, %v6473_v6  ;;  %v2167_v8 = vor.u32 1.1754944e-38, %v2166_v2  ;;  %v6902_v23 = vmul.f32 %v2791_v10, %v8509_v32  ;;  %vm2165_vm0 = vcmp.eq.f32.partialorder %v2164_v1, 8.507059e+37 }
 0x2d8   : > { %v2172_v50 = vsub.f32 1.0, %v2171_v22  ;;  %4624 = vpow2.f32 %v3981_v42  ;;  %v2181_v24 = vand.u32 2147483648, %v6762_v29  ;;  %v2201_v36 = vmul.f32 %v6880_v26, %v6818_v46 }
 0x2d9   : > { %v2168_v61 = vsel %vm2165_vm0, %v2167_v8, %v2163_v4  ;;  %4626 = vrcp.f32 %v6878_v35  ;;  %v2179_v19 = vand.u32 2147483647, %v6762_v29  ;;  %v2187_v54 = vsub.f32 1.0, %v2186_v47  ;;  %v8513_v4 = vld [vmem:[#allocation39_spill] sm:$0xff] }
 0x2da   : > { %v6910_v6 = vpop.eup %4620  ;;  %4628 = vrcp.f32 %v6890_v13  ;;  %v3982_v34 = vmul.f32 -1.442695, %v6899_v15  ;;  %v6920_v11 = vmul.f32 %v2792_v52, %v8510_v38  ;;  %v2196_v31 = vand.u32 2147483648, %v6776_v59  ;;  %v6967_v38 = vpop.f32.mrf.mxu3 }
 0x2db   : > { %v6917_v20 = vpop.eup %4622  ;;  %v2211_v7 = vand.u32 2147483648, %v6818_v46  ;;  %v3983_v9 = vmul.f32 -1.442695, %v6904_v57  ;;  %v2793_v41 = vmul.f32 %v2168_v61, %v6523_v43  ;;  %v2173_v14 = vmul.f32 %v6843_v62, %v2172_v50 }
 0x2dc   : > { %vm2175_vm1 = vweird.f32 %v6762_v29  ;;  %v2194_v3 = vand.u32 2147483647, %v6776_v59  ;;  %v2182_v21 = vor.u32 1.1754944e-38, %v2181_v24  ;;  %v2202_v37 = vsub.f32 1.0, %v2201_v36 }
 0x2dd   : > { %v2216_v48 = vmul.f32 %v6910_v6, %v6841_v0  ;;  %v3984_v5 = vmul.f32 -1.442695, %v6915_v39  ;;  %vm6932_vm2 = vcmp.eq.f32.partialorder %v2179_v19, 8.507059e+37  ;;  %v2188_v43 = vmul.f32 %v6856_v60, %v2187_v54 }
 0x2de   : > { %v4625_v17 = vpop.eup %4624  ;;  %vm2190_vm3 = vweird.f32 %v6776_v59  ;;  %v2209_v10 = vand.u32 2147483647, %v6818_v46  ;;  %v2231_v1 = vmul.f32 %v6917_v20, %v6849_v63  ;;  %vm2176_vm4 = vweird.f32 %v6843_v62 }
 0x2df   : > { %v6941_v2 = vpop.eup %4626  ;;  %v2197_v25 = vor.u32 1.1754944e-38, %v2196_v31  ;;  %vm2205_vm5 = vweird.f32 %v6818_v46  ;;  %v6945_v22 = vor.u32 1.1754944e-38, %v2211_v7  ;;  %v2226_v42 = vand.u32 2147483648, %v6841_v0  ;;  %vm6973_vm8 = vmor %vm2175_vm1, %vm2176_vm4 }
 0x2e0   : > { %v6948_v33 = vpop.eup %4628  ;;  %v6951_v47 = vmul.f32 %v2793_v41, %v8513_v4  ;;  %v2174_v28 = vadd.f32 %v6843_v62, %v2173_v14  ;;  %vm2191_vm6 = vweird.f32 %v6856_v60  ;;  %vm6955_vm7 = vcmp.eq.f32.partialorder %v2194_v3, 8.507059e+37  ;;  %v7074_v3 = vpop.f32.mrf.mxu2 }
 0x2e1   : > { %v2224_v8 = vand.u32 2147483647, %v6841_v0  ;;  %v2203_v32 = vmul.f32 %v6880_v26, %v2202_v37  ;;  %v2217_v50 = vsub.f32 1.0, %v2216_v48  ;;  %v2241_v61 = vand.u32 2147483648, %v6849_v63  ;;  %vm6998_vm14 = vmor %vm2190_vm3, %vm2191_vm6 }
 0x2e2   : > { %v6962_v24 = vadd.f32 1.0, %v4625_v17  ;;  %v2189_v36 = vadd.f32 %v6856_v60, %v2188_v43  ;;  %v2232_v19 = vsub.f32 1.0, %v2231_v1  ;;  %v2246_v54 = vmul.f32 %v6941_v2, %v6878_v35  ;;  %v7005_v17 = vpop.f32.mrf.mxu0 }
 0x2e3   : > { %4630 = vpow2.f32 %v3982_v34  ;;  %vm2206_vm9 = vweird.f32 %v6880_v26  ;;  %vm2220_vm10 = vweird.f32 %v6841_v0  ;;  %v6979_v7 = vor.u32 1.1754944e-38, %v2226_v42 }
 0x2e4   : > { %v2261_v41 = vmul.f32 %v6948_v33, %v6890_v13  ;;  %4632 = vrcp.f32 %v6962_v24  ;;  %v2178_v34 = vsel %vm6973_vm8, %v6843_v62, %v2174_v28  ;;  %vm6987_vm11 = vcmp.eq.f32.partialorder %v2209_v10, 8.507059e+37  ;;  %vm7024_vm0 = vmor %vm2205_vm5, %vm2206_vm9 }
 0x2e5   : > { %vm2221_vm12 = vweird.f32 %v6910_v6  ;;  %vm2235_vm13 = vweird.f32 %v6849_v63  ;;  %v2239_v14 = vand.u32 2147483647, %v6849_v63  ;;  %v2204_v62 = vadd.f32 %v6880_v26, %v2203_v32 }
 0x2e6   : > { %v2218_v37 = vmul.f32 %v6910_v6, %v2217_v50  ;;  %4634 = vpow2.f32 %v3983_v9  ;;  %v3985_v48 = vmul.f32 -1.442695, %v6967_v38  ;;  %v2193_v43 = vsel %vm6998_vm14, %v6856_v60, %v2189_v36  ;;  %vm7064_vm4 = vmor %vm2220_vm10, %vm2221_vm12 }
 0x2e7   : > { %v2233_v10 = vmul.f32 %v6917_v20, %v2232_v19  ;;  %v7011_v59 = vor.u32 1.1754944e-38, %v2241_v61  ;;  %v2247_v1 = vsub.f32 1.0, %v2246_v54  ;;  %v2183_v42 = vsel %vm6932_vm2, %v2182_v21, %v2178_v34 }
 0x2e8   : > { %vm7015_vm15 = vcmp.eq.f32.partialorder %v2224_v8, 8.507059e+37  ;;  %v2254_v9 = vand.u32 2147483647, %v6878_v35  ;;  %v2262_v28 = vsub.f32 1.0, %v2261_v41  ;;  %4636 = vpow2.f32 %v3984_v5 }
 0x2e9   : > { %v4631_v32 = vpop.eup %4630  ;;  %vm2250_vm1 = vweird.f32 %v6878_v35  ;;  %4638 = vpow2.f32 %v3985_v48  ;;  %v3986_v21 = vmul.f32 -1.442695, %v7005_v17  ;;  %v2922_v8 = vpack.c.bf16 %v6896_v53, %v6868_v58 }
 0x2ea   : > { %v2923_v5 = vpack.c.bf16 %v6902_v23, %v6871_v51  ;;  %v7036_v50 = vpop.eup %4632  ;;  %v2198_v46 = vsel %vm6955_vm7, %v2197_v25, %v2193_v43  ;;  %v2208_v61 = vsel %vm7024_vm0, %v6880_v26, %v2204_v62  ;;  %v2219_v36 = vadd.f32 %v6910_v6, %v2218_v37 }
 0x2eb   : > { %vm7044_vm2 = vcmp.eq.f32.partialorder %v2239_v14, 8.507059e+37  ;;  %v7048_v54 = vadd.f32 1.0, %v4631_v32  ;;  %v2234_v58 = vadd.f32 %v6917_v20, %v2233_v10  ;;  %vm2236_vm3 = vweird.f32 %v6917_v20  ;;  %3220 = vmatmul.bf16.gmra.mxu0 %v2922_v8 }
 0x2ec   : > { %v2248_v51 = vmul.f32 %v6941_v2, %v2247_v1  ;;  %v2276_v53 = vmul.f32 %v7036_v50, %v6962_v24  ;;  %3269 = vmatmul.bf16.gmra.mxu1 %v2923_v5  ;;  %v4635_v26 = vpop.eup %4634  ;;  %v2256_v23 = vand.u32 2147483648, %v6878_v35  ;;  %v2263_v25 = vmul.f32 %v6948_v33, %v2262_v28  ;;  %vm7087_vm6 = vmor %vm2235_vm13, %vm2236_vm3 }
 0x2ed   : > { %4640 = vrcp.f32 %v7048_v54  ;;  %v3987_v52 = vmul.f32 -1.442695, %v7030_v12  ;;  %v2794_v31 = vmul.f32 %v2183_v42, %v6625_v40  ;;  %vm7068_vm5 = vcmp.eq.f32.partialorder %v2254_v9, 8.507059e+37 }
 0x2ee   : > { %v7072_v14 = vadd.f32 1.0, %v4635_v26  ;;  %4642 = vpow2.f32 %v3986_v21  ;;  %v4637_v62 = vpop.eup %4636  ;;  %v2795_v40 = vmul.f32 %v2198_v46, %v6636_v16  ;;  %v2213_v0 = vsel %vm6987_vm11, %v6945_v22, %v2208_v61  ;;  %v8538_v46 = vld [vmem:[#allocation40_spill] sm:$0xff] }
 0x2ef   : > { %v2223_v37 = vsel %vm7064_vm4, %v6910_v6, %v2219_v36  ;;  %vm2251_vm7 = vweird.f32 %v6941_v2  ;;  %v4639_v43 = vpop.eup %4638  ;;  %v2238_v16 = vsel %vm7087_vm6, %v6917_v20, %v2234_v58  ;;  %v2249_v22 = vadd.f32 %v6941_v2, %v2248_v51  ;;  %v8539_v36 = vld [vmem:[#allocation41_spill] sm:$0xff] }
 0x2f0   : > { %vm2266_vm8 = vweird.f32 %v6948_v33  ;;  %v2277_v6 = vsub.f32 1.0, %v2276_v53  ;;  %v2264_v29 = vadd.f32 %v6948_v33, %v2263_v25  ;;  %v7098_v10 = vadd.f32 1.0, %v4637_v62  ;;  %vm7114_vm9 = vmor %vm2250_vm1, %vm2251_vm7 }
 0x2f1   : > { %4644 = vpow2.f32 %v3987_v52  ;;  %v3988_v63 = vmul.f32 -1.442695, %v7074_v3  ;;  %v2228_v1 = vsel %vm7015_vm15, %v6979_v7, %v2223_v37  ;;  %v2269_v42 = vand.u32 2147483647, %v6890_v13 }
 0x2f2   : > { %v2271_v20 = vand.u32 2147483648, %v6890_v13  ;;  %4646 = vrcp.f32 %v7072_v14  ;;  %v2796_v28 = vmul.f32 %v2213_v0, %v6661_v45  ;;  %v2257_v4 = vor.u32 1.1754944e-38, %v2256_v23 }
 0x2f3   : > { %v7107_v9 = vpop.eup %4640  ;;  %vm2265_vm10 = vweird.f32 %v6890_v13  ;;  %v7119_v7 = vadd.f32 1.0, %v4639_v43  ;;  %v2243_v21 = vsel %vm7044_vm2, %v7011_v59, %v2238_v16  ;;  %v2253_v45 = vsel %vm7114_vm9, %v6941_v2, %v2249_v22  ;;  %v7141_v2 = vpop.f32.mrf.mxu3  ;;  %v8542_v22 = vld [vmem:[#allocation44_spill] sm:$0xff] }
 0x2f4   : > { %v4643_v60 = vpop.eup %4642  ;;  %vm7129_vm11 = vmor %vm2265_vm10, %vm2266_vm8  ;;  %v2278_v8 = vmul.f32 %v7036_v50, %v2277_v6  ;;  %4648 = vrcp.f32 %v7098_v10  ;;  %v2797_v13 = vmul.f32 %v2228_v1, %v6691_v49  ;;  %v2291_v5 = vmul.f32 %v7107_v9, %v7048_v54 }
 0x2f5   : > { %v2268_v59 = vsel %vm7129_vm11, %v6948_v33, %v2264_v29  ;;  %4650 = vpow2.f32 %v3988_v63  ;;  %v7144_v61 = vmul.f32 %v2794_v31, %v8538_v46  ;;  %v7147_v19 = vmul.f32 %v2795_v40, %v8539_v36  ;;  %v8540_v31 = vld [vmem:[#allocation42_spill] sm:$0xff]  ;;  %v7242_v63 = vpop.f32.mrf.mxu1 }
 0x2f6   : > { %vm2270_vm12 = vcmp.eq.f32.partialorder %v2269_v42, 8.507059e+37  ;;  %v2272_v58 = vor.u32 1.1754944e-38, %v2271_v20  ;;  %v2798_v49 = vmul.f32 %v2243_v21, %v6697_v18  ;;  %v2258_v33 = vsel %vm7068_vm5, %v2257_v4, %v2253_v45  ;;  %v8541_v18 = vld [vmem:[#allocation43_spill] sm:$0xff]  ;;  %v8545_v4 = vld [vmem:[#allocation45_spill] sm:$0xff]  ;;  %v7202_v21 = vpop.f32.mrf.mxu0  ;;  %v8546_v45 = vld [vmem:[#allocation46_spill] sm:$0xff] }
 0x2f7   : > { %v4645_v51 = vpop.eup %4644  ;;  %4652 = vrcp.f32 %v7119_v7  ;;  %v7153_v53 = vadd.f32 1.0, %v4643_v60  ;;  %v2279_v25 = vadd.f32 %v7036_v50, %v2278_v8  ;;  %vm2281_vm13 = vweird.f32 %v7036_v50 }
 0x2f8   : > { %v7155_v26 = vpop.eup %4646  ;;  %v2273_v23 = vsel %vm2270_vm12, %v2272_v58, %v2268_v59  ;;  %v3989_v52 = vmul.f32 -1.442695, %v7141_v2  ;;  %v7161_v41 = vmul.f32 %v2796_v28, %v8540_v31  ;;  %v7164_v62 = vmul.f32 %v2797_v13, %v8541_v18 }
 0x2f9   : > { %v2286_v34 = vand.u32 2147483648, %v6962_v24  ;;  %v2292_v40 = vsub.f32 1.0, %v2291_v5  ;;  %v2799_v37 = vmul.f32 %v2258_v33, %v6719_v55  ;;  %vm2280_vm14 = vweird.f32 %v6962_v24 }
 0x2fa   : > { %v7167_v0 = vpop.eup %4648  ;;  %v2284_v48 = vand.u32 2147483647, %v6962_v24  ;;  %v7172_v43 = vadd.f32 1.0, %v4645_v51  ;;  %v7175_v6 = vmul.f32 %v2798_v49, %v8542_v22  ;;  %v2800_v29 = vmul.f32 %v2273_v23, %v6743_v44  ;;  %vm7178_vm15 = vmor %vm2280_vm14, %vm2281_vm13 }
 0x2fb   : > { %v4651_v16 = vpop.eup %4650  ;;  %v2306_v1 = vmul.f32 %v7155_v26, %v7072_v14  ;;  %4654 = vrcp.f32 %v7153_v53  ;;  %v2283_v55 = vsel %vm7178_vm15, %v7036_v50, %v2279_v25  ;;  %v2299_v24 = vand.u32 2147483647, %v7048_v54 }
 0x2fc   : > { %v2301_v42 = vand.u32 2147483648, %v7048_v54  ;;  %4656 = vpow2.f32 %v3989_v52  ;;  %v2287_v44 = vor.u32 1.1754944e-38, %v2286_v34  ;;  %v2293_v28 = vmul.f32 %v7107_v9, %v2292_v40 }
 0x2fd   : > { %v7190_v20 = vpop.eup %4652  ;;  %v2321_v32 = vmul.f32 %v7167_v0, %v7098_v10  ;;  %4658 = vrcp.f32 %v7172_v43  ;;  %v7197_v60 = vmul.f32 %v2799_v37, %v8545_v4  ;;  %vm2285_vm0 = vcmp.eq.f32.partialorder %v2284_v48, 8.507059e+37 }
 0x2fe   : > { %vm2295_vm1 = vweird.f32 %v7048_v54  ;;  %v7200_v50 = vadd.f32 1.0, %v4651_v16  ;;  %v7205_v35 = vmul.f32 %v2800_v29, %v8546_v45  ;;  %v2288_v8 = vsel %vm2285_vm0, %v2287_v44, %v2283_v55 }
 0x2ff   : > { %v2307_v13 = vsub.f32 1.0, %v2306_v1  ;;  %v2316_v59 = vand.u32 2147483648, %v7072_v14  ;;  %vm7208_vm2 = vcmp.eq.f32.partialorder %v2299_v24, 8.507059e+37  ;;  %v2302_v46 = vor.u32 1.1754944e-38, %v2301_v42  ;;  %v8551_v42 = vld [vmem:[#allocation47_spill] sm:$0xff] }
 0x300   : > { %v2331_v36 = vand.u32 2147483648, %v7098_v10  ;;  %v2336_v58 = vmul.f32 %v7190_v20, %v7119_v7  ;;  %v2294_v49 = vadd.f32 %v7107_v9, %v2293_v28  ;;  %vm2296_vm3 = vweird.f32 %v7107_v9 }
 0x301   : > { %v7215_v51 = vpop.eup %4654  ;;  %v2322_v33 = vsub.f32 1.0, %v2321_v32  ;;  %v3990_v23 = vmul.f32 -1.442695, %v7202_v21  ;;  %v2801_v52 = vmul.f32 %v2288_v8, %v6851_v30  ;;  %vm2310_vm4 = vweird.f32 %v7072_v14  ;;  %vm7233_vm5 = vmor %vm2295_vm1, %vm2296_vm3 }
 0x302   : > { %v4657_v25 = vpop.eup %4656  ;;  %v2314_v31 = vand.u32 2147483647, %v7072_v14  ;;  %4660 = vrcp.f32 %v7200_v50  ;;  %v2308_v34 = vmul.f32 %v7155_v26, %v2307_v13  ;;  %v7227_v40 = vor.u32 1.1754944e-38, %v2316_v59 }
 0x303   : > { %v7224_v18 = vpop.eup %4658  ;;  %v2329_v37 = vand.u32 2147483647, %v7098_v10  ;;  %v2346_v48 = vand.u32 2147483648, %v7119_v7  ;;  %vm2325_vm6 = vweird.f32 %v7098_v10  ;;  %v7238_v16 = vor.u32 1.1754944e-38, %v2331_v36 }
 0x304   : > { %v2337_v22 = vsub.f32 1.0, %v2336_v58  ;;  %v2351_v29 = vmul.f32 %v7215_v51, %v7153_v53  ;;  %v2298_v1 = vsel %vm7233_vm5, %v7107_v9, %v2294_v49  ;;  %v2323_v54 = vmul.f32 %v7167_v0, %v2322_v33 }
 0x305   : > { %v2344_v55 = vand.u32 2147483647, %v7119_v7  ;;  %v2366_v24 = vmul.f32 %v7224_v18, %v7172_v43  ;;  %v7252_v44 = vmul.f32 %v2801_v52, %v8551_v42  ;;  %vm2311_vm7 = vweird.f32 %v7155_v26 }
 0x306   : > { %vm7255_vm8 = vcmp.eq.f32.partialorder %v2314_v31, 8.507059e+37  ;;  %vm2340_vm9 = vweird.f32 %v7119_v7  ;;  %v2361_v9 = vand.u32 2147483648, %v7153_v53  ;;  %v7261_v32 = vadd.f32 1.0, %v4657_v25  ;;  %vm7286_vm12 = vmor %vm2310_vm4, %vm2311_vm7 }
 0x307   : > { %v2309_v4 = vadd.f32 %v7155_v26, %v2308_v34  ;;  %vm7264_vm10 = vcmp.eq.f32.partialorder %v2329_v37, 8.507059e+37  ;;  %v7268_v8 = vor.u32 1.1754944e-38, %v2346_v48  ;;  %4662 = vpow2.f32 %v3990_v23  ;;  %v7280_v23 = vpop.f32.mrf.mxu2  ;;  %v7296_v34 = vpop.f32.mrf.mxu3 }
 0x308   : > { %v3991_v13 = vmul.f32 -1.442695, %v7242_v63  ;;  %v7271_v59 = vpop.eup %4660  ;;  %v2303_v36 = vsel %vm7208_vm2, %v2302_v46, %v2298_v1  ;;  %v2338_v58 = vmul.f32 %v7190_v20, %v2337_v22  ;;  %v2352_v49 = vsub.f32 1.0, %v2351_v29  ;;  %v7310_v29 = vpop.f32.mrf.mxu0 }
 0x309   : > { %v2359_v33 = vand.u32 2147483647, %v7153_v53  ;;  %v2324_v25 = vadd.f32 %v7167_v0, %v2323_v54  ;;  %vm2326_vm11 = vweird.f32 %v7167_v0  ;;  %v2367_v52 = vsub.f32 1.0, %v2366_v24 }
 0x30a   : > { %4664 = vrcp.f32 %v7261_v32  ;;  %vm2341_vm13 = vweird.f32 %v7190_v20  ;;  %vm2355_vm14 = vweird.f32 %v7153_v53  ;;  %v7292_v46 = vor.u32 1.1754944e-38, %v2361_v9  ;;  %vm7316_vm0 = vmor %vm2325_vm6, %vm2326_vm11  ;;  %v7334_v9 = vpop.f32.mrf.mxu1 }
 0x30b   : > { %v2381_v31 = vmul.f32 %v7271_v59, %v7200_v50  ;;  %4666 = vpow2.f32 %v3991_v13  ;;  %v2802_v37 = vmul.f32 %v2303_v36, %v6899_v15  ;;  %v2313_v14 = vsel %vm7286_vm12, %v7155_v26, %v2309_v4  ;;  %v8562_v13 = vld [vmem:[#allocation48_spill] sm:$0xff]  ;;  %vm7348_vm3 = vmor %vm2340_vm9, %vm2341_vm13 }
 0x30c   : > { %vm7302_vm15 = vcmp.eq.f32.partialorder %v2344_v55, 8.507059e+37  ;;  %v2924_v30 = vpack.c.bf16 %v6920_v11, %v6883_v27  ;;  %v2925_v22 = vpack.c.bf16 %v6951_v47, %v6893_v56  ;;  %v2339_v26 = vadd.f32 %v7190_v20, %v2338_v58 }
 0x30d   : > { %v2353_v1 = vmul.f32 %v7215_v51, %v2352_v49  ;;  %vm2356_vm1 = vweird.f32 %v7215_v51  ;;  %vm2370_vm2 = vweird.f32 %v7172_v43  ;;  %v3992_v27 = vmul.f32 -1.442695, %v7280_v23  ;;  %v4663_v56 = vpop.eup %4662 }
 0x30e   : > { %v2328_v11 = vsel %vm7316_vm0, %v7167_v0, %v2324_v25  ;;  %v2368_v47 = vmul.f32 %v7224_v18, %v2367_v52  ;;  %v2374_v10 = vand.u32 2147483647, %v7172_v43  ;;  %3318 = vmatmul.bf16.gmra.mxu2 %v2924_v30  ;;  %3367 = vmatmul.bf16.gmra.mxu3 %v2925_v22  ;;  %v3993_v54 = vmul.f32 -1.442695, %v7296_v34  ;;  %vm7380_vm6 = vmor %vm2355_vm14, %vm2356_vm1 }
 0x30f   : > { %v2382_v55 = vsub.f32 1.0, %v2381_v31  ;;  %v7331_v24 = vadd.f32 1.0, %v4663_v56  ;;  %4668 = vpow2.f32 %v3992_v27  ;;  %v3994_v42 = vmul.f32 -1.442695, %v7310_v29 }
 0x310   : > { %v7336_v4 = vpop.eup %4664  ;;  %v7339_v0 = vmul.f32 %v2802_v37, %v8562_v13  ;;  %v2318_v36 = vsel %vm7255_vm8, %v7227_v40, %v2313_v14  ;;  %vm7352_vm4 = vcmp.eq.f32.partialorder %v2359_v33, 8.507059e+37  ;;  %v2376_v25 = vand.u32 2147483648, %v7172_v43  ;;  %v8574_v13 = vld [vmem:[#allocation50_spill] sm:$0xff] }
 0x311   : > { %4670 = vpow2.f32 %v3993_v54  ;;  %v4667_v52 = vpop.eup %4666  ;;  %v2333_v40 = vsel %vm7264_vm10, %v7238_v16, %v2328_v11  ;;  %v2343_v7 = vsel %vm7348_vm3, %v7190_v20, %v2339_v26  ;;  %v2354_v28 = vadd.f32 %v7215_v51, %v2353_v1 }
 0x312   : > { %4672 = vrcp.f32 %v7331_v24  ;;  %v2369_v33 = vadd.f32 %v7224_v18, %v2368_v47  ;;  %vm2371_vm5 = vweird.f32 %v7224_v18  ;;  %v7367_v5 = vadd.f32 1.0, %v4667_v52 }
 0x313   : > { %v3995_v31 = vmul.f32 -1.442695, %v7334_v9  ;;  %v2383_v37 = vmul.f32 %v7271_v59, %v2382_v55  ;;  %v2396_v16 = vmul.f32 %v7336_v4, %v7261_v32  ;;  %4674 = vpow2.f32 %v3994_v42  ;;  %vm7402_vm8 = vmor %vm2370_vm2, %vm2371_vm5 }
 0x314   : > { %v2926_v20 = vpack.c.bf16 %v7175_v6, %v7144_v61  ;;  %v2803_v45 = vmul.f32 %v2318_v36, %v6904_v57  ;;  %vm7384_vm7 = vcmp.eq.f32.partialorder %v2374_v10, 8.507059e+37  ;;  %v2389_v22 = vand.u32 2147483647, %v7200_v50 }
 0x315   : > { %4676 = vrcp.f32 %v7367_v5  ;;  %v4669_v15 = vpop.eup %4668  ;;  %v2804_v61 = vmul.f32 %v2333_v40, %v6915_v39  ;;  %v2348_v57 = vsel %vm7302_vm15, %v7268_v8, %v2343_v7  ;;  %v2358_v53 = vsel %vm7380_vm6, %v7215_v51, %v2354_v28  ;;  %v7411_v8 = vpop.f32.mrf.mxu2  ;;  %v8579_v28 = vld [vmem:[#allocation51_spill] sm:$0xff] }
 0x316   : > { %v2391_v6 = vand.u32 2147483648, %v7200_v50  ;;  %3225 = vmatmul.bf16.gmra.mxu0 %v2926_v20  ;;  %vm2386_vm9 = vweird.f32 %v7271_v59  ;;  %v7407_v39 = vadd.f32 1.0, %v4669_v15  ;;  %4678 = vpow2.f32 %v3995_v31 }
 0x317   : > { %v4671_v26 = vpop.eup %4670  ;;  %v2927_v51 = vpack.c.bf16 %v7197_v60, %v7147_v19  ;;  %v2373_v43 = vsel %vm7402_vm8, %v7224_v18, %v2369_v33  ;;  %v2384_v27 = vadd.f32 %v7271_v59, %v2383_v37  ;;  %v2397_v56 = vsub.f32 1.0, %v2396_v16  ;;  %v8573_v60 = vld [vmem:[#allocation49_spill] sm:$0xff] }
 0x318   : > { %v7413_v48 = vpop.eup %4672  ;;  %v7419_v11 = vadd.f32 1.0, %v4671_v26  ;;  %v2805_v47 = vmul.f32 %v2348_v57, %v6967_v38  ;;  %v2377_v10 = vor.u32 1.1754944e-38, %v2376_v25  ;;  %4680 = vrcp.f32 %v7407_v39  ;;  %v8580_v57 = vld [vmem:[#allocation52_spill] sm:$0xff] }
 0x319   : > { %v2411_v54 = vmul.f32 %v7413_v48, %v7331_v24  ;;  %3274 = vmatmul.bf16.gmra.mxu1 %v2927_v51  ;;  %v4675_v19 = vpop.eup %4674  ;;  %v7426_v55 = vmul.f32 %v2803_v45, %v8573_v60  ;;  %v2363_v18 = vsel %vm7352_vm4, %v7292_v46, %v2358_v53  ;;  %vm2385_vm10 = vweird.f32 %v7200_v50 }
 0x31a   : > { %v3996_v42 = vmul.f32 -1.442695, %v7411_v8  ;;  %v7436_v36 = vmul.f32 %v2804_v61, %v8574_v13  ;;  %v2378_v58 = vsel %vm7384_vm7, %v2377_v10, %v2373_v43  ;;  %vm7442_vm11 = vmor %vm2385_vm10, %vm2386_vm9  ;;  %vm7446_vm12 = vcmp.eq.f32.partialorder %v2389_v22, 8.507059e+37  ;;  %v7512_v13 = vpop.f32.mrf.mxu3 }
 0x31b   : > { %v7433_v38 = vpop.eup %4676  ;;  %v2392_v50 = vor.u32 1.1754944e-38, %v2391_v6  ;;  %v2388_v49 = vsel %vm7442_vm11, %v7271_v59, %v2384_v27  ;;  %v2398_v52 = vmul.f32 %v7336_v4, %v2397_v56  ;;  %4682 = vrcp.f32 %v7419_v11 }
 0x31c   : > { %v2426_v40 = vmul.f32 %v7433_v38, %v7367_v5  ;;  %v4679_v7 = vpop.eup %4678  ;;  %v7458_v33 = vmul.f32 %v2805_v47, %v8579_v28  ;;  %v2806_v31 = vmul.f32 %v2363_v18, %v7005_v17  ;;  %v2404_v37 = vand.u32 2147483647, %v7261_v32  ;;  %v8583_v47 = vld [vmem:[#allocation53_spill] sm:$0xff] }
 0x31d   : > { %v2412_v16 = vsub.f32 1.0, %v2411_v54  ;;  %v2807_v20 = vmul.f32 %v2378_v58, %v7030_v12  ;;  %v2406_v59 = vand.u32 2147483648, %v7261_v32  ;;  %v7464_v45 = vadd.f32 1.0, %v4675_v19 }
 0x31e   : > { %4684 = vpow2.f32 %v3996_v42  ;;  %v7466_v14 = vpop.eup %4680  ;;  %v2393_v30 = vsel %vm7446_vm12, %v2392_v50, %v2388_v49  ;;  %vm2401_vm13 = vweird.f32 %v7336_v4  ;;  %v2419_v22 = vand.u32 2147483647, %v7331_v24  ;;  %v8588_v49 = vld [vmem:[#allocation54_spill] sm:$0xff] }
 0x31f   : > { %v2421_v17 = vand.u32 2147483648, %v7331_v24  ;;  %v2399_v15 = vadd.f32 %v7336_v4, %v2398_v52  ;;  %v2427_v61 = vsub.f32 1.0, %v2426_v40  ;;  %4686 = vrcp.f32 %v7464_v45 }
 0x320   : > { %v7475_v12 = vadd.f32 1.0, %v4679_v7  ;;  %v7478_v53 = vmul.f32 %v2806_v31, %v8580_v57  ;;  %vm2400_vm14 = vweird.f32 %v7261_v32  ;;  %v2413_v6 = vmul.f32 %v7413_v48, %v2412_v16  ;;  %v7525_v7 = vpop.f32.mrf.mxu0 }
 0x321   : > { %v2441_v26 = vmul.f32 %v7466_v14, %v7407_v39  ;;  %v7484_v1 = vpop.eup %4682  ;;  %v2808_v51 = vmul.f32 %v2393_v30, %v7074_v3  ;;  %vm7487_vm15 = vcmp.eq.f32.partialorder %v2404_v37, 8.507059e+37  ;;  %v2407_v27 = vor.u32 1.1754944e-38, %v2406_v59  ;;  %vm7497_vm0 = vmor %vm2400_vm14, %vm2401_vm13 }
 0x322   : > { %v2436_v56 = vand.u32 2147483648, %v7367_v5  ;;  %v7493_v10 = vmul.f32 %v2807_v20, %v8583_v47  ;;  %vm2415_vm1 = vweird.f32 %v7331_v24  ;;  %vm7502_vm2 = vcmp.eq.f32.partialorder %v2419_v22, 8.507059e+37  ;;  %v7533_v20 = vpop.f32.mrf.mxu1 }
 0x323   : > { %v2422_v54 = vor.u32 1.1754944e-38, %v2421_v17  ;;  %v2403_v60 = vsel %vm7497_vm0, %v7336_v4, %v2399_v15  ;;  %v2428_v18 = vmul.f32 %v7433_v38, %v2427_v61  ;;  %v2434_v42 = vand.u32 2147483647, %v7367_v5 }
 0x324   : > { %v4685_v19 = vpop.eup %4684  ;;  %4688 = vrcp.f32 %v7475_v12  ;;  %v2414_v58 = vadd.f32 %v7413_v48, %v2413_v6  ;;  %vm2416_vm3 = vweird.f32 %v7413_v48  ;;  %v2442_v25 = vsub.f32 1.0, %v2441_v26 }
 0x325   : > { %v2456_v46 = vmul.f32 %v7484_v1, %v7419_v11  ;;  %v7518_v50 = vpop.eup %4686  ;;  %v7521_v4 = vmul.f32 %v2808_v51, %v8588_v49  ;;  %vm2430_vm4 = vweird.f32 %v7367_v5  ;;  %v2437_v52 = vor.u32 1.1754944e-38, %v2436_v56  ;;  %vm7537_vm5 = vmor %vm2415_vm1, %vm2416_vm3  ;;  %v7596_v49 = vpop.f32.mrf.mxu3 }
 0x326   : > { %v2451_v40 = vand.u32 2147483648, %v7407_v39  ;;  %v2408_v28 = vsel %vm7487_vm15, %v2407_v27, %v2403_v60  ;;  %v2449_v31 = vand.u32 2147483647, %v7407_v39  ;;  %v2466_v37 = vand.u32 2147483648, %v7419_v11 }
 0x327   : > { %v7531_v16 = vadd.f32 1.0, %v4685_v19  ;;  %v2429_v30 = vadd.f32 %v7433_v38, %v2428_v18  ;;  %vm2431_vm6 = vweird.f32 %v7433_v38  ;;  %vm7543_vm7 = vcmp.eq.f32.partialorder %v2434_v42, 8.507059e+37  ;;  %v7585_v18 = vpop.f32.mrf.mxu2 }
 0x328   : > { %v2471_v17 = vmul.f32 %v7518_v50, %v7464_v45  ;;  %v3997_v15 = vmul.f32 -1.442695, %v7512_v13  ;;  %v2418_v24 = vsel %vm7537_vm5, %v7413_v48, %v2414_v58  ;;  %v2443_v61 = vmul.f32 %v7466_v14, %v2442_v25  ;;  %vm7564_vm9 = vmor %vm2430_vm4, %vm2431_vm6 }
 0x329   : > { %v2457_v57 = vsub.f32 1.0, %v2456_v46  ;;  %4690 = vrcp.f32 %v7531_v16  ;;  %v7558_v26 = vmul.f32 %v2408_v28, %v7141_v2  ;;  %vm2445_vm8 = vweird.f32 %v7407_v39 }
 0x32a   : > { %v7555_v6 = vpop.eup %4688  ;;  %v2452_v51 = vor.u32 1.1754944e-38, %v2451_v40  ;;  %v2464_v43 = vand.u32 2147483647, %v7419_v11  ;;  %vm2446_vm10 = vweird.f32 %v7466_v14  ;;  %vm2460_vm11 = vweird.f32 %v7419_v11 }
 0x32b   : > { %v7570_v48 = vor.u32 1.1754944e-38, %v2466_v37  ;;  %v2479_v2 = vand.u32 2147483647, %v7464_v45  ;;  %v2486_v56 = vmul.f32 %v7555_v6, %v7475_v12  ;;  %v2423_v47 = vsel %vm7502_vm2, %v2422_v54, %v2418_v24  ;;  %vm7620_vm0 = vmor %vm2445_vm8, %vm2446_vm10 }
 0x32c   : > { %v2433_v5 = vsel %vm7564_vm9, %v7433_v38, %v2429_v30  ;;  %vm7580_vm12 = vcmp.eq.f32.partialorder %v2449_v31, 8.507059e+37  ;;  %v2472_v19 = vsub.f32 1.0, %v2471_v17  ;;  %v2481_v60 = vand.u32 2147483648, %v7464_v45 }
 0x32d   : > { %v2444_v42 = vadd.f32 %v7466_v14, %v2443_v61  ;;  %v2458_v58 = vmul.f32 %v7484_v1, %v2457_v57  ;;  %4692 = vpow2.f32 %v3997_v15  ;;  %v3998_v3 = vmul.f32 -1.442695, %v7525_v7  ;;  %v7626_v15 = vpop.f32.mrf.mxu1 }
 0x32e   : > { %vm2475_vm13 = vweird.f32 %v7464_v45  ;;  %v2487_v54 = vsub.f32 1.0, %v2486_v56  ;;  %v3999_v38 = vmul.f32 -1.442695, %v7533_v20  ;;  %v2928_v25 = vpack.c.bf16 %v7205_v35, %v7161_v41 }
 0x32f   : > { %v2929_v46 = vpack.c.bf16 %v7252_v44, %v7164_v62  ;;  %v7598_v40 = vpop.eup %4690  ;;  %v7601_v28 = vmul.f32 %v2423_v47, %v7202_v21  ;;  %vm2461_vm14 = vweird.f32 %v7484_v1  ;;  %vm7604_vm15 = vcmp.eq.f32.partialorder %v2464_v43, 8.507059e+37  ;;  %v7612_v21 = vpop.f32.mrf.mxu0 }
 0x330   : > { %4694 = vpow2.f32 %v3998_v3  ;;  %v4000_v37 = vmul.f32 -1.442695, %v7585_v18  ;;  %v2473_v41 = vmul.f32 %v7518_v50, %v2472_v19  ;;  %v2482_v35 = vor.u32 1.1754944e-38, %v2481_v60  ;;  %3323 = vmatmul.bf16.gmra.mxu2 %v2928_v25  ;;  %vm7647_vm3 = vmor %vm2460_vm11, %vm2461_vm14 }
 0x331   : > { %v2501_v62 = vmul.f32 %v7598_v40, %v7531_v16  ;;  %4696 = vpow2.f32 %v3999_v38  ;;  %3372 = vmatmul.bf16.gmra.mxu3 %v2929_v46  ;;  %v2438_v44 = vsel %vm7543_vm7, %v2437_v52, %v2433_v5  ;;  %v2459_v30 = vadd.f32 %v7484_v1, %v2458_v58 }
 0x332   : > { %4698 = vpow2.f32 %v4000_v37  ;;  %v4001_v17 = vmul.f32 -1.442695, %v7596_v49  ;;  %v2448_v22 = vsel %vm7620_vm0, %v7466_v14, %v2444_v42  ;;  %vm7631_vm1 = vcmp.eq.f32.partialorder %v2479_v2, 8.507059e+37 }
 0x333   : > { %v2488_v39 = vmul.f32 %v7555_v6, %v2487_v54  ;;  %v2502_v24 = vsub.f32 1.0, %v2501_v62  ;;  %v2930_v61 = vpack.c.bf16 %v7478_v53, %v7339_v0  ;;  %v4693_v57 = vpop.eup %4692  ;;  %vm2490_vm2 = vweird.f32 %v7475_v12 }
 0x334   : > { %v2494_v43 = vand.u32 2147483647, %v7475_v12  ;;  %v4002_v27 = vmul.f32 -1.442695, %v7612_v21  ;;  %v2931_v14 = vpack.c.bf16 %v7493_v10, %v7426_v55  ;;  %v2474_v0 = vadd.f32 %v7518_v50, %v2473_v41 }
 0x335   : > { %vm2476_vm4 = vweird.f32 %v7518_v50  ;;  %v7653_v53 = vadd.f32 1.0, %v4693_v57  ;;  %v4003_v56 = vmul.f32 -1.442695, %v7626_v15  ;;  %3230 = vmatmul.bf16.gmra.mxu0 %v2930_v61  ;;  %v2453_v55 = vsel %vm7580_vm12, %v2452_v51, %v2448_v22 }
 0x336   : > { %v4695_v47 = vpop.eup %4694  ;;  %v2463_v11 = vsel %vm7647_vm3, %v7484_v1, %v2459_v30  ;;  %v2496_v10 = vand.u32 2147483648, %v7475_v12  ;;  %4700 = vpow2.f32 %v4001_v17  ;;  %3279 = vmatmul.bf16.gmra.mxu1 %v2931_v14  ;;  %v2489_v19 = vadd.f32 %v7555_v6, %v2488_v39  ;;  %vm7671_vm6 = vmor %vm2475_vm13, %vm2476_vm4  ;;  %v8615_v14 = vld [vmem:[#allocation59_spill] sm:$0xff] }
 0x337   : > { %v4697_v5 = vpop.eup %4696  ;;  %vm2491_vm5 = vweird.f32 %v7555_v6  ;;  %v2503_v60 = vmul.f32 %v7598_v40, %v2502_v24  ;;  %4702 = vrcp.f32 %v7653_v53  ;;  %v2811_v51 = vmul.f32 %v2438_v44, %v7242_v63  ;;  %v8609_v44 = vld [vmem:[#allocation55_spill] sm:$0xff]  ;;  %v8614_v24 = vld [vmem:[#allocation58_spill] sm:$0xff] }
 0x338   : > { %v4699_v42 = vpop.eup %4698  ;;  %v7675_v32 = vadd.f32 1.0, %v4695_v47  ;;  %v7677_v58 = vadd.f32 1.0, %v4697_v5  ;;  %4704 = vpow2.f32 %v4002_v27  ;;  %v2468_v3 = vsel %vm7604_vm15, %v7570_v48, %v2463_v11  ;;  %vm7690_vm7 = vmor %vm2490_vm2, %vm2491_vm5  ;;  %v7696_v48 = vpop.f32.mrf.mxu2 }
 0x339   : > { %v2478_v63 = vsel %vm7671_vm6, %v7518_v50, %v2474_v0  ;;  %v7685_v54 = vadd.f32 1.0, %v4699_v42  ;;  %4706 = vpow2.f32 %v4003_v56  ;;  %v2812_v45 = vmul.f32 %v2453_v55, %v7280_v23  ;;  %v8616_v42 = vld [vmem:[#allocation60_spill] sm:$0xff] }
 0x33a   : > { %v2497_v25 = vor.u32 1.1754944e-38, %v2496_v10  ;;  %v2509_v46 = vand.u32 2147483647, %v7531_v16  ;;  %4708 = vrcp.f32 %v7675_v32  ;;  %v2493_v50 = vsel %vm7690_vm7, %v7555_v6, %v2489_v19 }
 0x33b   : > { %v2504_v31 = vadd.f32 %v7598_v40, %v2503_v60  ;;  %vm2506_vm8 = vweird.f32 %v7598_v40  ;;  %4710 = vrcp.f32 %v7677_v58  ;;  %v2813_v12 = vmul.f32 %v2468_v3, %v7296_v34  ;;  %v8610_v34 = vld [vmem:[#allocation56_spill] sm:$0xff] }
 0x33c   : > { %v4701_v23 = vpop.eup %4700  ;;  %v2483_v37 = vsel %vm7631_vm1, %v2482_v35, %v2478_v63  ;;  %v2511_v41 = vand.u32 2147483648, %v7531_v16  ;;  %4712 = vrcp.f32 %v7685_v54  ;;  %v7713_v6 = vmul.f32 %v7558_v26, %v8609_v44  ;;  %v8611_v35 = vld [vmem:[#allocation57_spill] sm:$0xff] }
 0x33d   : > { %v7709_v62 = vpop.eup %4702  ;;  %vm2495_vm9 = vcmp.eq.f32.partialorder %v2494_v43, 8.507059e+37  ;;  %vm2505_vm10 = vweird.f32 %v7531_v16  ;;  %v4004_v59 = vmul.f32 -1.442695, %v7696_v48  ;;  %v7719_v17 = vmul.f32 %v7601_v28, %v8610_v34 }
 0x33e   : > { %v4705_v30 = vpop.eup %4704  ;;  %v7722_v22 = vmul.f32 %v2811_v51, %v8611_v35  ;;  %v2498_v52 = vsel %vm2495_vm9, %v2497_v25, %v2493_v50  ;;  %vm7726_vm11 = vmor %vm2505_vm10, %vm2506_vm8  ;;  %v2516_v16 = vmul.f32 %v7709_v62, %v7653_v53  ;;  %v7733_v61 = vmul.f32 %v2812_v45, %v8614_v24 }
 0x33f   : > { %v4707_v26 = vpop.eup %4706  ;;  %v2814_v28 = vmul.f32 %v2483_v37, %v7310_v29  ;;  %v2508_v57 = vsel %vm7726_vm11, %v7598_v40, %v2504_v31  ;;  %v7739_v43 = vadd.f32 1.0, %v4701_v23  ;;  %v7744_v2 = vmul.f32 %v2813_v12, %v8615_v14  ;;  %v7753_v40 = vpop.f32.mrf.mxu3  ;;  %v8617_v31 = vld [vmem:[#allocation61_spill] sm:$0xff] }
 0x340   : > { %v7741_v27 = vpop.eup %4708  ;;  %vm2510_vm12 = vcmp.eq.f32.partialorder %v2509_v46, 8.507059e+37  ;;  %v2512_v0 = vor.u32 1.1754944e-38, %v2511_v41  ;;  %v2517_v56 = vsub.f32 1.0, %v2516_v16  ;;  %v2815_v55 = vmul.f32 %v2498_v52, %v7334_v9  ;;  %v8620_v52 = vld [vmem:[#allocation62_spill] sm:$0xff] }
 0x341   : > { %v7746_v47 = vpop.eup %4710  ;;  %v2531_v29 = vmul.f32 %v7741_v27, %v7675_v32  ;;  %v7751_v11 = vadd.f32 1.0, %v4705_v30  ;;  %4714 = vpow2.f32 %v4004_v59  ;;  %v2524_v19 = vand.u32 2147483647, %v7653_v53 }
 0x342   : > { %v7755_v10 = vpop.eup %4712  ;;  %v2513_v5 = vsel %vm2510_vm12, %v2512_v0, %v2508_v57  ;;  %v2546_v60 = vmul.f32 %v7746_v47, %v7677_v58  ;;  %4716 = vrcp.f32 %v7739_v43  ;;  %v7762_v9 = vmul.f32 %v2814_v28, %v8616_v42 }
 0x343   : > { %v2518_v51 = vmul.f32 %v7709_v62, %v2517_v56  ;;  %v2526_v1 = vand.u32 2147483648, %v7653_v53  ;;  %v2561_v3 = vmul.f32 %v7755_v10, %v7685_v54  ;;  %v2532_v63 = vsub.f32 1.0, %v2531_v29 }
 0x344   : > { %v2547_v45 = vsub.f32 1.0, %v2546_v60  ;;  %v7768_v38 = vadd.f32 1.0, %v4707_v26  ;;  %v4005_v25 = vmul.f32 -1.442695, %v7753_v40  ;;  %v2816_v46 = vmul.f32 %v2513_v5, %v7411_v8 }
 0x345   : > { %vm2520_vm13 = vweird.f32 %v7653_v53  ;;  %v2562_v50 = vsub.f32 1.0, %v2561_v3  ;;  %4718 = vrcp.f32 %v7751_v11  ;;  %v7775_v23 = vmul.f32 %v2815_v55, %v8617_v31  ;;  %v7845_v31 = vpop.f32.mrf.mxu1 }
 0x346   : > { %vm7777_vm14 = vcmp.eq.f32.partialorder %v2524_v19, 8.507059e+37  ;;  %v2539_v37 = vand.u32 2147483647, %v7675_v32  ;;  %v2541_v41 = vand.u32 2147483648, %v7675_v32  ;;  %v2519_v59 = vadd.f32 %v7709_v62, %v2518_v51 }
 0x347   : > { %v4715_v44 = vpop.eup %4714  ;;  %vm2521_vm15 = vweird.f32 %v7709_v62  ;;  %v2527_v8 = vor.u32 1.1754944e-38, %v2526_v1  ;;  %vm2535_vm0 = vweird.f32 %v7675_v32  ;;  %v2533_v34 = vmul.f32 %v7741_v27, %v2532_v63  ;;  %v7832_v1 = vpop.f32.mrf.mxu0 }
 0x348   : > { %v7786_v30 = vpop.eup %4716  ;;  %v2548_v35 = vmul.f32 %v7746_v47, %v2547_v45  ;;  %vm2550_vm1 = vweird.f32 %v7677_v58  ;;  %4720 = vrcp.f32 %v7768_v38  ;;  %v7793_v39 = vmul.f32 %v2816_v46, %v8620_v52  ;;  %vm7800_vm2 = vmor %vm2520_vm13, %vm2521_vm15 }
 0x349   : > { %v2554_v16 = vand.u32 2147483647, %v7677_v58  ;;  %v2556_v26 = vand.u32 2147483648, %v7677_v58  ;;  %v2563_v24 = vmul.f32 %v7755_v10, %v2562_v50  ;;  %vm7804_vm3 = vcmp.eq.f32.partialorder %v2539_v37, 8.507059e+37  ;;  %v7921_v37 = vpop.f32.mrf.mxu2 }
 0x34a   : > { %v2542_v14 = vor.u32 1.1754944e-38, %v2541_v41  ;;  %v2569_v0 = vand.u32 2147483647, %v7685_v54  ;;  %v2571_v56 = vand.u32 2147483648, %v7685_v54  ;;  %4722 = vpow2.f32 %v4005_v25 }
 0x34b   : > { %v7810_v55 = vpop.eup %4718  ;;  %v2523_v53 = vsel %vm7800_vm2, %v7709_v62, %v2519_v59  ;;  %vm2536_vm4 = vweird.f32 %v7741_v27  ;;  %v2576_v29 = vmul.f32 %v7786_v30, %v7739_v43  ;;  %v7818_v5 = vadd.f32 1.0, %v4715_v44 }
 0x34c   : > { %v2534_v19 = vadd.f32 %v7741_v27, %v2533_v34  ;;  %v2549_v60 = vadd.f32 %v7746_v47, %v2548_v35  ;;  %vm2551_vm5 = vweird.f32 %v7746_v47  ;;  %v2591_v42 = vmul.f32 %v7810_v55, %v7751_v11  ;;  %vm7840_vm9 = vmor %vm2535_vm0, %vm2536_vm4 }
 0x34d   : > { %vm7825_vm6 = vcmp.eq.f32.partialorder %v2554_v16, 8.507059e+37  ;;  %v2564_v62 = vadd.f32 %v7755_v10, %v2563_v24  ;;  %vm2565_vm7 = vweird.f32 %v7685_v54  ;;  %vm2566_vm8 = vweird.f32 %v7755_v10  ;;  %vm7849_vm10 = vmor %vm2550_vm1, %vm2551_vm5  ;;  %v7929_v12 = vpop.f32.mrf.mxu1 }
 0x34e   : > { %v7834_v3 = vpop.eup %4720  ;;  %v2528_v63 = vsel %vm7777_vm14, %v2527_v8, %v2523_v53  ;;  %v2557_v25 = vor.u32 1.1754944e-38, %v2556_v26  ;;  %v2586_v46 = vand.u32 2147483648, %v7739_v43  ;;  %v2592_v50 = vsub.f32 1.0, %v2591_v42  ;;  %vm7869_vm12 = vmor %vm2565_vm7, %vm2566_vm8 }
 0x34f   : > { %vm7853_vm11 = vcmp.eq.f32.partialorder %v2569_v0, 8.507059e+37  ;;  %v2572_v32 = vor.u32 1.1754944e-38, %v2571_v56  ;;  %v2577_v41 = vsub.f32 1.0, %v2576_v29  ;;  %v2606_v44 = vmul.f32 %v7834_v3, %v7768_v38 }
 0x350   : > { %v4723_v59 = vpop.eup %4722  ;;  %v2538_v8 = vsel %vm7840_vm9, %v7741_v27, %v2534_v19  ;;  %v2553_v58 = vsel %vm7849_vm10, %v7746_v47, %v2549_v60  ;;  %v2584_v35 = vand.u32 2147483647, %v7739_v43  ;;  %4724 = vrcp.f32 %v7818_v5  ;;  %v8635_v19 = vld [vmem:[#allocation63_spill] sm:$0xff] }
 0x351   : > { %v2817_v52 = vmul.f32 %v2528_v63, %v7512_v13  ;;  %v2568_v27 = vsel %vm7869_vm12, %v7755_v10, %v2564_v62  ;;  %vm2580_vm13 = vweird.f32 %v7739_v43  ;;  %v2599_v47 = vand.u32 2147483647, %v7751_v11 }
 0x352   : > { %v2607_v16 = vsub.f32 1.0, %v2606_v44  ;;  %v7881_v54 = vor.u32 1.1754944e-38, %v2586_v46  ;;  %v2593_v26 = vmul.f32 %v7810_v55, %v2592_v50  ;;  %vm2595_vm14 = vweird.f32 %v7751_v11 }
 0x353   : > { %v2601_v24 = vand.u32 2147483648, %v7751_v11  ;;  %v2543_v13 = vsel %vm7804_vm3, %v2542_v14, %v2538_v8  ;;  %v2558_v28 = vsel %vm7825_vm6, %v2557_v25, %v2553_v58  ;;  %v2578_v10 = vmul.f32 %v7786_v30, %v2577_v41 }
 0x354   : > { %v7891_v0 = vadd.f32 1.0, %v4723_v59  ;;  %v2573_v56 = vsel %vm7853_vm11, %v2572_v32, %v2568_v27  ;;  %vm2581_vm15 = vweird.f32 %v7786_v30  ;;  %v2608_v53 = vmul.f32 %v7834_v3, %v2607_v16 }
 0x355   : > { %v4006_v29 = vmul.f32 -1.442695, %v7832_v1  ;;  %v7899_v60 = vmul.f32 %v2817_v52, %v8635_v19  ;;  %vm7901_vm0 = vcmp.eq.f32.partialorder %v2599_v47, 8.507059e+37  ;;  %v4007_v14 = vmul.f32 -1.442695, %v7845_v31  ;;  %vm7944_vm6 = vmor %vm2580_vm13, %vm2581_vm15 }
 0x356   : > { %4726 = vrcp.f32 %v7891_v0  ;;  %v7907_v42 = vpop.eup %4724  ;;  %v2818_v51 = vmul.f32 %v2543_v13, %v7525_v7  ;;  %v2819_v62 = vmul.f32 %v2558_v28, %v7533_v20  ;;  %v2594_v63 = vadd.f32 %v7810_v55, %v2593_v26  ;;  %v7923_v7 = vpop.f32.mrf.mxu0  ;;  %v8646_v28 = vld [vmem:[#allocation64_spill] sm:$0xff] }
 0x357   : > { %vm2596_vm1 = vweird.f32 %v7810_v55  ;;  %v2820_v45 = vmul.f32 %v2573_v56, %v7585_v18  ;;  %v2579_v25 = vadd.f32 %v7786_v30, %v2578_v10  ;;  %vm7915_vm2 = vcmp.eq.f32.partialorder %v2584_v35, 8.507059e+37  ;;  %v7954_v35 = vpop.f32.mrf.mxu3 }
 0x358   : > { %v2621_v50 = vmul.f32 %v7907_v42, %v7818_v5  ;;  %4728 = vpow2.f32 %v4006_v29  ;;  %v2609_v20 = vadd.f32 %v7834_v3, %v2608_v53  ;;  %vm2610_vm3 = vweird.f32 %v7768_v38  ;;  %vm7933_vm5 = vmor %vm2595_vm14, %vm2596_vm1 }
 0x359   : > { %vm2611_vm4 = vweird.f32 %v7834_v3  ;;  %v2614_v18 = vand.u32 2147483647, %v7768_v38  ;;  %v2616_v41 = vand.u32 2147483648, %v7768_v38  ;;  %4730 = vpow2.f32 %v4007_v14 }
 0x35a   : > { %v2622_v44 = vsub.f32 1.0, %v2621_v50  ;;  %v2932_v59 = vpack.c.bf16 %v7521_v4, %v7436_v36  ;;  %v2598_v11 = vsel %vm7933_vm5, %v7810_v55, %v2594_v63  ;;  %v2933_v58 = vpack.c.bf16 %v7713_v6, %v7458_v33  ;;  %vm7966_vm7 = vmor %vm2610_vm3, %vm2611_vm4  ;;  %v8648_v63 = vld [vmem:[#allocation66_spill] sm:$0xff] }
 0x35b   : > { %v4008_v34 = vmul.f32 -1.442695, %v7921_v37  ;;  %v4010_v36 = vmul.f32 -1.442695, %v7923_v7  ;;  %v2583_v43 = vsel %vm7944_vm6, %v7786_v30, %v2579_v25  ;;  %v2602_v52 = vor.u32 1.1754944e-38, %v2601_v24 }
 0x35c   : > { %v7957_v4 = vpop.eup %4726  ;;  %3328 = vmatmul.bf16.gmra.mxu2 %v2932_v59  ;;  %v4011_v33 = vmul.f32 -1.442695, %v7929_v12  ;;  %v2934_v6 = vpack.c.bf16 %v7762_v9, %v7719_v17  ;;  %v2613_v27 = vsel %vm7966_vm7, %v7834_v3, %v2609_v20  ;;  %3377 = vmatmul.bf16.gmra.mxu3 %v2933_v58  ;;  %v2935_v38 = vpack.c.bf16 %v7775_v23, %v7722_v22  ;;  %v8647_v22 = vld [vmem:[#allocation65_spill] sm:$0xff] }
 0x35d   : > { %v2636_v30 = vmul.f32 %v7957_v4, %v7891_v0  ;;  %4732 = vpow2.f32 %v4008_v34  ;;  %v2603_v16 = vsel %vm7901_vm0, %v2602_v52, %v2598_v11  ;;  %v2617_v26 = vor.u32 1.1754944e-38, %v2616_v41  ;;  %v8651_v41 = vld [vmem:[#allocation68_spill] sm:$0xff]  ;;  %v8652_v58 = vld [vmem:[#allocation69_spill] sm:$0xff] }
 0x35e   : > { %v4729_v47 = vpop.eup %4728  ;;  %v2623_v24 = vmul.f32 %v7907_v42, %v2622_v44  ;;  %v4009_v17 = vmul.f32 -1.442695, %v7954_v35  ;;  %3235 = vmatmul.bf16.gmra.mxu0 %v2934_v6  ;;  %vm2615_vm8 = vcmp.eq.f32.partialorder %v2614_v18, 8.507059e+37  ;;  %4734 = vpow2.f32 %v4010_v36  ;;  %3284 = vmatmul.bf16.gmra.mxu1 %v2935_v38 }
 0x35f   : > { %v2637_v9 = vsub.f32 1.0, %v2636_v30  ;;  %v7984_v3 = vadd.f32 1.0, %v4729_v47  ;;  %v4731_v13 = vpop.eup %4730  ;;  %v7987_v10 = vmul.f32 %v2818_v51, %v8646_v28  ;;  %v7990_v23 = vmul.f32 %v2819_v62, %v8647_v22  ;;  %v8002_v51 = vpop.f32.mrf.mxu2 }
 0x360   : > { %v2618_v56 = vsel %vm2615_vm8, %v2617_v26, %v2613_v27  ;;  %4736 = vpow2.f32 %v4011_v33  ;;  %v2588_v53 = vsel %vm7915_vm2, %v7881_v54, %v2583_v43  ;;  %v2822_v29 = vmul.f32 %v2603_v16, %v7612_v21 }
 0x361   : > { %v2638_v19 = vmul.f32 %v7957_v4, %v2637_v9  ;;  %4738 = vrcp.f32 %v7984_v3  ;;  %v2624_v57 = vadd.f32 %v7907_v42, %v2623_v24  ;;  %vm2626_vm9 = vweird.f32 %v7907_v42 }
 0x362   : > { %v8000_v14 = vadd.f32 1.0, %v4731_v13  ;;  %4740 = vpow2.f32 %v4009_v17  ;;  %v8005_v25 = vmul.f32 %v2820_v45, %v8648_v63  ;;  %v2823_v54 = vmul.f32 %v2618_v56, %v7626_v15 }
 0x363   : > { %v4733_v62 = vpop.eup %4732  ;;  %v2629_v21 = vand.u32 2147483647, %v7818_v5  ;;  %v2631_v46 = vand.u32 2147483648, %v7818_v5  ;;  %vm2625_vm10 = vweird.f32 %v7818_v5  ;;  %v2639_v50 = vadd.f32 %v7957_v4, %v2638_v19 }
 0x364   : > { %vm2641_vm11 = vweird.f32 %v7957_v4  ;;  %4742 = vrcp.f32 %v8000_v14  ;;  %v4735_v20 = vpop.eup %4734  ;;  %v2821_v18 = vmul.f32 %v2588_v53, %v7596_v49  ;;  %vm8017_vm12 = vmor %vm2625_vm10, %vm2626_vm9  ;;  %vm2640_vm13 = vweird.f32 %v7891_v0 }
 0x365   : > { %v2646_v15 = vand.u32 2147483648, %v7891_v0  ;;  %v4012_v5 = vmul.f32 -1.442695, %v8002_v51  ;;  %v2886_v44 = vmul.f32 %v2822_v29, %v8651_v41  ;;  %v2628_v59 = vsel %vm8017_vm12, %v7907_v42, %v2624_v57  ;;  %vm8036_vm15 = vmor %vm2640_vm13, %vm2641_vm11  ;;  %v8655_v57 = vld [vmem:[#allocation67_spill] sm:$0xff] }
 0x366   : > { %v4737_v32 = vpop.eup %4736  ;;  %v2644_v49 = vand.u32 2147483647, %v7891_v0  ;;  %v8029_v8 = vadd.f32 1.0, %v4733_v62  ;;  %v2887_v34 = vmul.f32 %v2823_v54, %v8652_v58  ;;  %vm2630_vm14 = vcmp.eq.f32.partialorder %v2629_v21, 8.507059e+37  ;;  %v8656_v62 = vld [vmem:[#allocation70_spill] sm:$0xff]  ;;  %v8663_v41 = vld [vmem:[#allocation71_spill] sm:$0xff] }
 0x367   : > { %v8031_v11 = vpop.eup %4738  ;;  %v2632_v36 = vor.u32 1.1754944e-38, %v2631_v46  ;;  %v2936_v52 = vpack.c.bf16 %v7793_v39, %v7733_v61  ;;  %v2643_v0 = vsel %vm8036_vm15, %v7957_v4, %v2639_v50  ;;  %v8048_v33 = vadd.f32 1.0, %v4735_v20 }
 0x368   : > { %v4741_v42 = vpop.eup %4740  ;;  %v2651_v55 = vmul.f32 %v8031_v11, %v7984_v3  ;;  %4744 = vrcp.f32 %v8029_v8  ;;  %v2647_v27 = vor.u32 1.1754944e-38, %v2646_v15  ;;  %v2937_v30 = vpack.c.bf16 %v7899_v60, %v7744_v2 }
 0x369   : > { %v2633_v6 = vsel %vm2630_vm14, %v2632_v36, %v2628_v59  ;;  %4746 = vpow2.f32 %v4012_v5  ;;  %vm2645_vm0 = vcmp.eq.f32.partialorder %v2644_v49, 8.507059e+37  ;;  %v8054_v39 = vadd.f32 1.0, %v4737_v32 }
 0x36a   : > { %v8052_v38 = vpop.eup %4742  ;;  %v2652_v61 = vsub.f32 1.0, %v2651_v55  ;;  %v2938_v4 = vpack.c.bf16 %v2886_v44, %v7987_v10  ;;  %v2648_v47 = vsel %vm2645_vm0, %v2647_v27, %v2643_v0  ;;  %v8059_v26 = vadd.f32 1.0, %v4741_v42  ;;  %v8069_v10 = vpop.f32.mrf.mxu3 }
 0x36b   : > { %v2666_v16 = vmul.f32 %v8052_v38, %v8000_v14  ;;  %v2939_v24 = vpack.c.bf16 %v2887_v34, %v7990_v23  ;;  %v2824_v17 = vmul.f32 %v2633_v6, %v7696_v48  ;;  %vm2655_vm1 = vweird.f32 %v7984_v3 }
 0x36c   : > { %v2653_v2 = vmul.f32 %v8031_v11, %v2652_v61  ;;  %4748 = vrcp.f32 %v8048_v33  ;;  %3333 = vmatmul.bf16.gmra.mxu2 %v2936_v52  ;;  %v2659_v60 = vand.u32 2147483647, %v7984_v3  ;;  %v2661_v9 = vand.u32 2147483648, %v7984_v3  ;;  %3382 = vmatmul.bf16.gmra.mxu3 %v2937_v30 }
 0x36d   : > { %v2667_v13 = vsub.f32 1.0, %v2666_v16  ;;  %v2674_v28 = vand.u32 2147483647, %v8000_v14  ;;  %v2825_v48 = vmul.f32 %v2648_v47, %v7753_v40  ;;  %vm2656_vm2 = vweird.f32 %v8031_v11 }
 0x36e   : > { %v8071_v22 = vpop.eup %4744  ;;  %v2676_v23 = vand.u32 2147483648, %v8000_v14  ;;  %4750 = vrcp.f32 %v8054_v39  ;;  %3240 = vmatmul.bf16.gmra.mxu0 %v2938_v4  ;;  %v2654_v53 = vadd.f32 %v8031_v11, %v2653_v2  ;;  %3289 = vmatmul.bf16.gmra.mxu1 %v2939_v24  ;;  %v8083_v40 = vmul.f32 %v2821_v18, %v8655_v57  ;;  %vm8103_vm6 = vmor %vm2655_vm1, %vm2656_vm2 }
 0x36f   : > { %v4747_v56 = vpop.eup %4746  ;;  %v2668_v29 = vmul.f32 %v8052_v38, %v2667_v13  ;;  %v2681_v19 = vmul.f32 %v8071_v22, %v8029_v8  ;;  %4752 = vrcp.f32 %v8059_v26  ;;  %v8086_v63 = vmul.f32 %v2824_v17, %v8656_v62 }
 0x370   : > { %v2691_v54 = vand.u32 2147483648, %v8029_v8  ;;  %v4013_v21 = vmul.f32 -1.442695, %v8069_v10  ;;  %vm8090_vm3 = vcmp.eq.f32.partialorder %v2659_v60, 8.507059e+37  ;;  %v2662_v50 = vor.u32 1.1754944e-38, %v2661_v9 }
 0x371   : > { %vm2670_vm4 = vweird.f32 %v8000_v14  ;;  %vm8095_vm5 = vcmp.eq.f32.partialorder %v2674_v28, 8.507059e+37  ;;  %v2669_v15 = vadd.f32 %v8052_v38, %v2668_v29  ;;  %vm2671_vm7 = vweird.f32 %v8052_v38 }
 0x372   : > { %v4749_v18 = vpop.eup %4748  ;;  %v2677_v5 = vor.u32 1.1754944e-38, %v2676_v23  ;;  %v8109_v32 = vadd.f32 1.0, %v4747_v56  ;;  %v2889_v44 = vmul.f32 %v2825_v48, %v8663_v41  ;;  %v2658_v59 = vsel %vm8103_vm6, %v8031_v11, %v2654_v53  ;;  %vm8125_vm9 = vmor %vm2670_vm4, %vm2671_vm7  ;;  %v3211_v48 = vpop.f32.mrf.mxu0  ;;  %v8675_v41 = vld [vmem:[#allocation76_spill] sm:$0xff] }
 0x373   : > { %v2682_v49 = vsub.f32 1.0, %v2681_v19  ;;  %v2711_v3 = vmul.f32 %v4749_v18, %v8048_v33  ;;  %v2689_v34 = vand.u32 2147483647, %v8029_v8  ;;  %v8117_v36 = vor.u32 1.1754944e-38, %v2691_v54  ;;  %v3260_v23 = vpop.f32.mrf.mxu1  ;;  %v3309_v19 = vpop.f32.mrf.mxu2 }
 0x374   : > { %v4751_v58 = vpop.eup %4750  ;;  %vm2715_vm8 = vweird.f32 %v8048_v33  ;;  %v2719_v43 = vand.u32 2147483647, %v8048_v33  ;;  %vm2685_vm10 = vweird.f32 %v8029_v8  ;;  %v2721_v0 = vand.u32 2147483648, %v8048_v33  ;;  %v3358_v57 = vpop.f32.mrf.mxu3 }
 0x375   : > { %v8121_v52 = vpop.eup %4752  ;;  %v2712_v11 = vsub.f32 1.0, %v2711_v3  ;;  %v2726_v55 = vmul.f32 %v4751_v58, %v8054_v39  ;;  %vm2730_vm11 = vweird.f32 %v8054_v39  ;;  %v2663_v6 = vsel %vm8090_vm3, %v2662_v50, %v2658_v59 }
 0x376   : > { %v2673_v14 = vsel %vm8125_vm9, %v8052_v38, %v2669_v15  ;;  %v2734_v27 = vand.u32 2147483647, %v8054_v39  ;;  %4754 = vrcp.f32 %v8109_v32  ;;  %v2683_v30 = vmul.f32 %v8071_v22, %v2682_v49  ;;  %v2898_v49 = vld [vmem:[#allocation3] sm:$0xff] }
 0x377   : > { %v2713_v61 = vmul.f32 %v4749_v18, %v2712_v11  ;;  %vm2716_vm12 = vweird.f32 %v4749_v18  ;;  %v2727_v4 = vsub.f32 1.0, %v2726_v55  ;;  %vm2686_vm13 = vweird.f32 %v8071_v22 }
 0x378   : > { %v8144_v47 = vmul.f32 %v8121_v52, %v8059_v26  ;;  %vm8146_vm14 = vcmp.eq.f32.partialorder %v2719_v43, 8.507059e+37  ;;  %v2736_v38 = vand.u32 2147483648, %v8054_v39  ;;  %vm8151_vm15 = vcmp.eq.f32.partialorder %v2689_v34, 8.507059e+37  ;;  %vm2717_vm1 = vmor %vm2715_vm8, %vm2716_vm12  ;;  %v8676_v43 = vld [vmem:[#allocation77_spill] sm:$0xff] }
 0x379   : > { %v2714_v17 = vadd.f32 %v4749_v18, %v2713_v61  ;;  %v2722_v2 = vor.u32 1.1754944e-38, %v2721_v0  ;;  %v2728_v60 = vmul.f32 %v4751_v58, %v2727_v4  ;;  %vm2731_vm0 = vweird.f32 %v4751_v58  ;;  %vm8182_vm4 = vmor %vm2685_vm10, %vm2686_vm13 }
 0x37a   : > { %v2826_v9 = vmul.f32 %v2663_v6, %v7832_v1  ;;  %v2678_v13 = vsel %vm8095_vm5, %v2677_v5, %v2673_v14  ;;  %vm8160_vm2 = vcmp.eq.f32.partialorder %v2734_v27, 8.507059e+37  ;;  %4756 = vpow2.f32 %v4013_v21  ;;  %vm2732_vm3 = vmor %vm2730_vm11, %vm2731_vm0  ;;  %v3213_v14 = vpop.f32.mrf.mxu0 }
 0x37b   : > { %v2684_v56 = vadd.f32 %v8071_v22, %v2683_v30  ;;  %v2718_v53 = vsel %vm2717_vm1, %v4749_v18, %v2714_v17  ;;  %v2729_v29 = vadd.f32 %v4751_v58, %v2728_v60  ;;  %v2940_v1 = vpack.c.bf16 %v8086_v63, %v8005_v25  ;;  %v8672_v63 = vld [vmem:[#allocation72_spill] sm:$0xff]  ;;  %v3262_v27 = vpop.f32.mrf.mxu1  ;;  %v3311_v4 = vpop.f32.mrf.mxu2 }
 0x37c   : > { %v4755_v62 = vpop.eup %4754  ;;  %v2723_v33 = vsel %vm8146_vm14, %v2722_v2, %v2718_v53  ;;  %v2737_v54 = vor.u32 1.1754944e-38, %v2736_v38  ;;  %v2941_v21 = vpack.c.bf16 %v2889_v44, %v8083_v40  ;;  %v3261_v46 = vadd.f32 %v3260_v23, %v3211_v48 }
 0x37d   : > { %v2697_v50 = vsub.f32 1.0, %v8144_v47  ;;  %v2830_v20 = vmul.f32 %v2723_v33, %v7923_v7  ;;  %v2733_v18 = vsel %vm2732_vm3, %v4751_v58, %v2729_v29  ;;  %v2741_v25 = vmul.f32 %v4755_v62, %v8109_v32  ;;  %3338 = vmatmul.bf16.gmra.mxu2 %v2940_v1  ;;  %v3360_v47 = vpop.f32.mrf.mxu3  ;;  %v8679_v1 = vld [vmem:[#allocation78_spill] sm:$0xff] }
 0x37e   : > { %v2890_v45 = vmul.f32 %v2826_v9, %v8672_v63  ;;  %v2827_v15 = vmul.f32 %v2678_v13, %v7845_v31  ;;  %v2738_v40 = vsel %vm8160_vm2, %v2737_v54, %v2733_v18  ;;  %3387 = vmatmul.bf16.gmra.mxu3 %v2941_v21  ;;  %v3310_v7 = vadd.f32 %v3309_v19, %v3261_v46  ;;  %v2899_v13 = vld [vmem:[#allocation3 + $0x18] sm:$0xff] }
 0x37f   : > { %v2688_v5 = vsel %vm8182_vm4, %v8071_v22, %v2684_v56  ;;  %v2894_v44 = vmul.f32 %v2830_v20, %v8675_v41  ;;  %v2831_v31 = vmul.f32 %v2738_v40, %v7929_v12  ;;  %v2742_v59 = vsub.f32 1.0, %v2741_v25  ;;  %v8677_v22 = vld [vmem:[#allocation73_spill] sm:$0xff]  ;;  %v8678_v56 = vld [vmem:[#allocation74_spill] sm:$0xff] }
 0x380   : > { %v4757_v8 = vpop.eup %4756  ;;  %vm2746_vm5 = vweird.f32 %v4755_v62  ;;  %v2749_v3 = vand.u32 2147483647, %v8109_v32  ;;  %v2751_v58 = vand.u32 2147483648, %v8109_v32  ;;  %v3359_v34 = vadd.f32 %v3358_v57, %v3310_v7  ;;  %v2900_v40 = vld [vmem:[#allocation3 + $0x50] sm:$0xff] }
 0x381   : > { %v2895_v42 = vmul.f32 %v2831_v31, %v8676_v43  ;;  %v2743_v11 = vmul.f32 %v4755_v62, %v2742_v59  ;;  %v8196_v0 = vadd.f32 1.0, %v4757_v8  ;;  %v2942_v55 = vpack.c.bf16 %v2894_v44, %v2890_v45 }
 0x382   : > { %v2891_v6 = vmul.f32 %v2827_v15, %v8677_v22  ;;  %v2693_v12 = vsel %vm8151_vm15, %v8117_v36, %v2688_v5  ;;  %v3398_v30 = vadd.f32 %v3359_v34, %v2898_v49  ;;  %vm2745_vm6 = vweird.f32 %v8109_v32 }
 0x383   : > { %v2744_v61 = vadd.f32 %v4755_v62, %v2743_v11  ;;  %4758 = vrcp.f32 %v8196_v0  ;;  %3245 = vmatmul.bf16.gmra.mxu0 %v2942_v55  ;;  %v2698_v16 = vmul.f32 %v8121_v52, %v2697_v50  ;;  %vm2747_vm7 = vmor %vm2745_vm6, %vm2746_vm5  ;;  %v2752_v38 = vor.u32 1.1754944e-38, %v2751_v58  ;;  %v3314_v50 = vpop.f32.mrf.mxu2  ;;  %v8682_v55 = vld [vmem:[#allocation75_spill] sm:$0xff] }
 0x384   : > { %v2943_v17 = vpack.c.bf16 %v2895_v42, %v2891_v6  ;;  %v3263_v2 = vadd.f32 %v3262_v27, %v3213_v14  ;;  %3414 = vst [vmem:[#allocation3] sm:$0xff] %v3398_v30  ;;  %v2828_v36 = vmul.f32 %v2693_v12, %v7921_v37  ;;  %vm2750_vm8 = vcmp.eq.f32.partialorder %v2749_v3, 8.507059e+37  ;;  %v2901_v12 = vld [vmem:[#allocation3 + $0x60] sm:$0xff] }
 0x385   : > { %v2748_v24 = vsel %vm2747_vm7, %v4755_v62, %v2744_v61  ;;  %v2699_v28 = vadd.f32 %v8121_v52, %v2698_v16  ;;  %vm2701_vm9 = vweird.f32 %v8121_v52  ;;  %v2706_v29 = vand.u32 2147483648, %v8059_v26  ;;  %v3265_v62 = vpop.f32.mrf.mxu1  ;;  %v3363_v20 = vpop.f32.mrf.mxu3 }
 0x386   : > { %v2753_v60 = vsel %vm2750_vm8, %v2752_v38, %v2748_v24  ;;  %3294 = vmatmul.bf16.gmra.mxu1 %v2943_v17  ;;  %v3312_v32 = vadd.f32 %v3311_v4, %v3263_v2  ;;  %v2892_v53 = vmul.f32 %v2828_v36, %v8678_v56  ;;  %vm2700_vm10 = vweird.f32 %v8059_v26  ;;  %v2902_v17 = vld [vmem:[#allocation3 + $0x68] sm:$0xff] }
 0x387   : > { %v2832_v9 = vmul.f32 %v2753_v60, %v8002_v51  ;;  %v2704_v19 = vand.u32 2147483647, %v8059_v26  ;;  %v3216_v51 = vpop.f32.mrf.mxu0  ;;  %vm8216_vm11 = vmor %vm2700_vm10, %vm2701_vm9  ;;  %v2707_v26 = vor.u32 1.1754944e-38, %v2706_v29  ;;  %v2766_v63 = vand.u32 2147483648, %v8196_v0 }
 0x388   : > { %v3361_v48 = vadd.f32 %v3360_v47, %v3312_v32  ;;  %v3266_v46 = vadd.f32 %v3265_v62, %v3216_v51  ;;  %v2703_v18 = vsel %vm8216_vm11, %v8121_v52, %v2699_v28  ;;  %v2764_v39 = vand.u32 2147483647, %v8196_v0 }
 0x389   : > { %v4759_v23 = vpop.eup %4758  ;;  %v2896_v37 = vmul.f32 %v2832_v9, %v8679_v1  ;;  %vm2705_vm12 = vcmp.eq.f32.partialorder %v2704_v19, 8.507059e+37  ;;  %vm2760_vm14 = vweird.f32 %v8196_v0  ;;  %v2767_v52 = vor.u32 1.1754944e-38, %v2766_v63 }
 0x38a   : > { %v2756_v57 = vmul.f32 %v4759_v23, %v8196_v0  ;;  %v3399_v33 = vadd.f32 %v3361_v48, %v2899_v13  ;;  %v3315_v45 = vadd.f32 %v3314_v50, %v3266_v46  ;;  %vm2761_vm13 = vweird.f32 %v4759_v23  ;;  %v8683_v0 = vld [vmem:[#allocation79_spill] sm:$0xff] }
 0x38b   : > { %v2944_v21 = vpack.c.bf16 %v2896_v37, %v2892_v53  ;;  %v2708_v7 = vsel %vm2705_vm12, %v2707_v26, %v2703_v18  ;;  %vm2762_vm15 = vmor %vm2760_vm14, %vm2761_vm13  ;;  %vm2765_vm0 = vcmp.eq.f32.partialorder %v2764_v39, 8.507059e+37  ;;  %v3316_v34 = vpop.f32.mrf.mxu2  ;;  %v2903_v13 = vld [vmem:[#allocation3 + $0x20] sm:$0xff] }
 0x38c   : > { %v2757_v25 = vsub.f32 1.0, %v2756_v57  ;;  %3415 = vst [vmem:[#allocation3 + $0x18] sm:$0xff] %v3399_v33  ;;  %v3364_v5 = vadd.f32 %v3363_v20, %v3315_v45  ;;  %v2829_v31 = vmul.f32 %v2708_v7, %v7954_v35  ;;  %v2904_v57 = vld [vmem:[#allocation3 + $0x70] sm:$0xff] }
 0x38d   : > { %3343 = vmatmul.bf16.gmra.mxu2 %v2944_v21  ;;  %v3267_v8 = vpop.f32.mrf.mxu1  ;;  %v3365_v43 = vpop.f32.mrf.mxu3  ;;  %v2905_v20 = vld [vmem:[#allocation3 + $0x10] sm:$0xff] }
 0x38e   : > { %v2758_v15 = vmul.f32 %v4759_v23, %v2757_v25  ;;  %v3400_v44 = vadd.f32 %v3364_v5, %v2900_v40  ;;  %v2893_v22 = vmul.f32 %v2829_v31, %v8682_v55 }
 0x38f   : > { %v3218_v49 = vpop.f32.mrf.mxu0 }
 0x390   : > { %v2759_v41 = vadd.f32 %v4759_v23, %v2758_v15  ;;  %v3268_v58 = vadd.f32 %v3267_v8, %v3218_v49  ;;  %3416 = vst [vmem:[#allocation3 + $0x50] sm:$0xff] %v3400_v44 }
 0x392   : > { %v2763_v59 = vsel %vm2762_vm15, %v4759_v23, %v2759_v41  ;;  %v3317_v11 = vadd.f32 %v3316_v34, %v3268_v58 }
 0x393   : > { %v2768_v3 = vsel %vm2765_vm0, %v2767_v52, %v2763_v59  ;;  %v3319_v47 = vpop.f32.mrf.mxu2  ;;  %v2906_v52 = vld [vmem:[#allocation3 + $0x28] sm:$0xff] }
 0x394   : > { %v2833_v42 = vmul.f32 %v2768_v3, %v8069_v10  ;;  %v3366_v14 = vadd.f32 %v3365_v43, %v3317_v11  ;;  %v2907_v43 = vld [vmem:[#allocation3 + $0x40] sm:$0xff] }
 0x395   : > { %v3270_v61 = vpop.f32.mrf.mxu1  ;;  %v3368_v16 = vpop.f32.mrf.mxu3 }
 0x396   : > { %v2897_v6 = vmul.f32 %v2833_v42, %v8683_v0  ;;  %v3401_v35 = vadd.f32 %v3366_v14, %v2901_v12 }
 0x397   : > { %v3221_v30 = vpop.f32.mrf.mxu0 }
 0x398   : > { %v2945_v27 = vpack.c.bf16 %v2897_v6, %v2893_v22  ;;  %v3271_v4 = vadd.f32 %v3270_v61, %v3221_v30  ;;  %3417 = vst [vmem:[#allocation3 + $0x60] sm:$0xff] %v3401_v35 }
 0x39a   : > { %3392 = vmatmul.bf16.gmra.mxu3 %v2945_v27  ;;  %v3320_v38 = vadd.f32 %v3319_v47, %v3271_v4  ;;  %v2908_v27 = vld [vmem:[#allocation3 + $0x38] sm:$0xff] }
 0x39b   : > { %v3321_v32 = vpop.f32.mrf.mxu2 }
 0x39c   : > { %v3369_v2 = vadd.f32 %v3368_v16, %v3320_v38  ;;  %v2909_v38 = vld [vmem:[#allocation3 + $0x8] sm:$0xff] }
 0x39d   : > { %v3272_v24 = vpop.f32.mrf.mxu1  ;;  %v3370_v28 = vpop.f32.mrf.mxu3 }
 0x39e   : > { %v3402_v10 = vadd.f32 %v3369_v2, %v2902_v17 }
 0x39f   : > { %v3223_v36 = vpop.f32.mrf.mxu0 }
 0x3a0   : > { %v3273_v60 = vadd.f32 %v3272_v24, %v3223_v36  ;;  %3418 = vst [vmem:[#allocation3 + $0x68] sm:$0xff] %v3402_v10 }
 0x3a2   : > { %v3322_v9 = vadd.f32 %v3321_v32, %v3273_v60 }
 0x3a4   : > { %v3371_v48 = vadd.f32 %v3370_v28, %v3322_v9 }
 0x3a5   : > { %v3275_v53 = vpop.f32.mrf.mxu1 }
 0x3a6   : > { %v3403_v23 = vadd.f32 %v3371_v48, %v2903_v13  ;;  %v2910_v13 = vld [vmem:[#allocation3 + $0x58] sm:$0xff] }
 0x3a7   : > { %v3226_v56 = vpop.f32.mrf.mxu0 }
 0x3a8   : > { %3419 = vst [vmem:[#allocation3 + $0x20] sm:$0xff] %v3403_v23  ;;  %v3276_v29 = vadd.f32 %v3275_v53, %v3226_v56 }
 0x3ad   : > { %v3277_v33 = vpop.f32.mrf.mxu1 }
 0x3af   : > { %v3228_v62 = vpop.f32.mrf.mxu0 }
 0x3b0   : > { %v3278_v21 = vadd.f32 %v3277_v33, %v3228_v62 }
 0x3b3   : > { %v3324_v1 = vpop.f32.mrf.mxu2 }
 0x3b4   : > { %v3373_v37 = vpop.f32.mrf.mxu3  ;;  %v3325_v19 = vadd.f32 %v3324_v1, %v3276_v29 }
 0x3b5   : > { %v3280_v45 = vpop.f32.mrf.mxu1 }
 0x3b6   : > { %v3374_v51 = vadd.f32 %v3373_v37, %v3325_v19  ;;  %v2911_v37 = vld [vmem:[#allocation3 + $0x48] sm:$0xff] }
 0x3b7   : > { %v3231_v63 = vpop.f32.mrf.mxu0 }
 0x3b8   : > { %v3404_v54 = vadd.f32 %v3374_v51, %v2904_v57  ;;  %v3281_v40 = vadd.f32 %v3280_v45, %v3231_v63 }
 0x3ba   : > { %3420 = vst [vmem:[#allocation3 + $0x70] sm:$0xff] %v3404_v54 }
 0x3bb   : > { %v3326_v46 = vpop.f32.mrf.mxu2 }
 0x3bc   : > { %v3327_v50 = vadd.f32 %v3326_v46, %v3278_v21  ;;  %v3375_v18 = vpop.f32.mrf.mxu3 }
 0x3bd   : > { %v3282_v39 = vpop.f32.mrf.mxu1 }
 0x3be   : > { %v3376_v25 = vadd.f32 %v3375_v18, %v3327_v50  ;;  %v2912_v18 = vld [vmem:[#allocation3 + $0x78] sm:$0xff] }
 0x3bf   : > { %v3233_v15 = vpop.f32.mrf.mxu0 }
 0x3c0   : > { %v3405_v26 = vadd.f32 %v3376_v25, %v2905_v20  ;;  %v3283_v49 = vadd.f32 %v3282_v39, %v3233_v15 }
 0x3c2   : > { %3421 = vst [vmem:[#allocation3 + $0x10] sm:$0xff] %v3405_v26 }
 0x3db   : > { %v3236_v59 = vpop.f32.mrf.mxu0  ;;  %v3285_v8 = vpop.f32.mrf.mxu1 }
 0x3dc   : > { %v3286_v55 = vadd.f32 %v3285_v8, %v3236_v59 }
 0x3df   : > { %v3329_v7 = vpop.f32.mrf.mxu2  ;;  %v3378_v41 = vpop.f32.mrf.mxu3 }
 0x3e0   : > { %v3330_v5 = vadd.f32 %v3329_v7, %v3281_v40  ;;  %v2913_v40 = vld [vmem:[#allocation3 + $0x30] sm:$0xff] }
 0x3e2   : > { %v3379_v44 = vadd.f32 %v3378_v41, %v3330_v5 }
 0x3e3   : > { %v3238_v22 = vpop.f32.mrf.mxu0  ;;  %v3287_v6 = vpop.f32.mrf.mxu1 }
 0x3e4   : > { %v3406_v31 = vadd.f32 %v3379_v44, %v2906_v52  ;;  %v3288_v61 = vadd.f32 %v3287_v6, %v3238_v22 }
 0x3e6   : > { %3422 = vst [vmem:[#allocation3 + $0x28] sm:$0xff] %v3406_v31 }
 0x3e7   : > { %v3331_v3 = vpop.f32.mrf.mxu2  ;;  %v3380_v34 = vpop.f32.mrf.mxu3 }
 0x3e8   : > { %v3332_v58 = vadd.f32 %v3331_v3, %v3283_v49 }
 0x3ea   : > { %v3381_v42 = vadd.f32 %v3380_v34, %v3332_v58 }
 0x3eb   : > { %v3241_v17 = vpop.f32.mrf.mxu0  ;;  %v3290_v2 = vpop.f32.mrf.mxu1 }
 0x3ec   : > { %v3407_v11 = vadd.f32 %v3381_v42, %v2907_v43  ;;  %v3291_v24 = vadd.f32 %v3290_v2, %v3241_v17 }
 0x3ee   : > { %3423 = vst [vmem:[#allocation3 + $0x40] sm:$0xff] %v3407_v11 }
 0x3ef   : > { %v3334_v0 = vpop.f32.mrf.mxu2  ;;  %v3383_v14 = vpop.f32.mrf.mxu3 }
 0x3f0   : > { %v3335_v12 = vadd.f32 %v3334_v0, %v3286_v55 }
 0x3f2   : > { %v3384_v35 = vadd.f32 %v3383_v14, %v3335_v12 }
 0x3f3   : > { %v3243_v48 = vpop.f32.mrf.mxu0  ;;  %v3292_v23 = vpop.f32.mrf.mxu1 }
 0x3f4   : > { %v3408_v30 = vadd.f32 %v3384_v35, %v2908_v27  ;;  %v3293_v53 = vadd.f32 %v3292_v23, %v3243_v48 }
 0x3f6   : > { %3424 = vst [vmem:[#allocation3 + $0x38] sm:$0xff] %v3408_v30 }
 0x3f7   : > { %v3336_v4 = vpop.f32.mrf.mxu2  ;;  %v3385_v16 = vpop.f32.mrf.mxu3 }
 0x3f8   : > { %v3337_v47 = vadd.f32 %v3336_v4, %v3288_v61 }
 0x3fa   : > { %v3386_v10 = vadd.f32 %v3385_v16, %v3337_v47 }
 0x3fc   : > { %v3409_v36 = vadd.f32 %v3386_v10, %v2909_v38 }
 0x3fe   : > { %3425 = vst [vmem:[#allocation3 + $0x8] sm:$0xff] %v3409_v36 }
 0x400   : > { %v3339_v60 = vpop.f32.mrf.mxu2  ;;  %v3246_v62 = vpop.f32.mrf.mxu0 }
 0x401   : > { %v3340_v32 = vadd.f32 %v3339_v60, %v3291_v24  ;;  %v3388_v9 = vpop.f32.mrf.mxu3 }
 0x403   : > { %v3389_v28 = vadd.f32 %v3388_v9, %v3340_v32  ;;  %v3295_v33 = vpop.f32.mrf.mxu1 }
 0x404   : > { %v3296_v21 = vadd.f32 %v3295_v33, %v3246_v62 }
 0x405   : > { %v3410_v56 = vadd.f32 %v3389_v28, %v2910_v13 }
 0x407   : > { %3426 = vst [vmem:[#allocation3 + $0x58] sm:$0xff] %v3410_v56 }
 0x408   : > { %v3341_v29 = vpop.f32.mrf.mxu2  ;;  %v3248_v50 = vpop.f32.mrf.mxu0 }
 0x409   : > { %v3342_v1 = vadd.f32 %v3341_v29, %v3293_v53  ;;  %v3390_v19 = vpop.f32.mrf.mxu3 }
 0x40b   : > { %v3391_v57 = vadd.f32 %v3390_v19, %v3342_v1  ;;  %v3297_v20 = vpop.f32.mrf.mxu1 }
 0x40c   : > { %v3298_v45 = vadd.f32 %v3297_v20, %v3248_v50 }
 0x40d   : > { %v3411_v51 = vadd.f32 %v3391_v57, %v2911_v37 }
 0x40f   : > { %3427 = vst [vmem:[#allocation3 + $0x48] sm:$0xff] %v3411_v51 }
 0x410   : > { %v3344_v54 = vpop.f32.mrf.mxu2 }
 0x411   : > { %v3345_v46 = vadd.f32 %v3344_v54, %v3296_v21 }
 0x418   : > { %v3346_v63 = vpop.f32.mrf.mxu2 }
 0x419   : > { %v3347_v39 = vadd.f32 %v3346_v63, %v3298_v45 }
 0x41d   : > { %v3393_v25 = vpop.f32.mrf.mxu3 }
 0x41e   : > { %v3394_v26 = vadd.f32 %v3393_v25, %v3345_v46 }
 0x420   : > { %v3412_v15 = vadd.f32 %v3394_v26, %v2912_v18 }
 0x422   : > { %3428 = vst [vmem:[#allocation3 + $0x78] sm:$0xff] %v3412_v15 }
 0x425   : > { %v3395_v7 = vpop.f32.mrf.mxu3 }
 0x426   : > { %v3396_v5 = vadd.f32 %v3395_v7, %v3347_v39  ;;  %3433 = sbr.rel (%p4142_p8) target bundleno = 1084 (0x43c), region = 60 }
 0x428   : > { %v3413_v41 = vadd.f32 %v3396_v5, %v2913_v40 }
 0x42a   : > { %3429 = vst [vmem:[#allocation3 + $0x30] sm:$0xff] %v3413_v41 }
 0x42b   : > { %v3434_v52 = vld [vmem:[#allocation3] sm:$0xff]  ;;  %v3435_v44 = vld [vmem:[#allocation3 + $0x18] sm:$0xff]  ;;  %v3436_v31 = vld [vmem:[#allocation3 + $0x50] sm:$0xff] }
 0x42c   : > { %3450 = vst [vmem:[%s5355_s13] sm:$0xff] %v3434_v52  ;;  %v3437_v59 = vld [vmem:[#allocation3 + $0x60] sm:$0xff]  ;;  %v3438_v49 = vld [vmem:[#allocation3 + $0x68] sm:$0xff]  ;;  %v3440_v3 = vld [vmem:[#allocation3 + $0x70] sm:$0xff] }
 0x42d   : > { %3451 = vst [vmem:[%s5355_s13 + $0x8] sm:$0xff] %v3435_v44  ;;  %v3439_v8 = vld [vmem:[#allocation3 + $0x20] sm:$0xff]  ;;  %v3441_v58 = vld [vmem:[#allocation3 + $0x10] sm:$0xff]  ;;  %v3442_v34 = vld [vmem:[#allocation3 + $0x28] sm:$0xff] }
 0x42e   : > { %3452 = vst [vmem:[%s5355_s13 + $0x10] sm:$0xff] %v3436_v31  ;;  %v3443_v43 = vld [vmem:[#allocation3 + $0x40] sm:$0xff]  ;;  %v3444_v42 = vld [vmem:[#allocation3 + $0x38] sm:$0xff]  ;;  %v3445_v11 = vld [vmem:[#allocation3 + $0x8] sm:$0xff] }
 0x42f   : > { %3453 = vst [vmem:[%s5355_s13 + $0x18] sm:$0xff] %v3437_v59  ;;  %v3446_v55 = vld [vmem:[#allocation3 + $0x58] sm:$0xff]  ;;  %v3447_v22 = vld [vmem:[#allocation3 + $0x48] sm:$0xff] }
 0x430   : > { %3454 = vst [vmem:[%s5355_s13 + $0x20] sm:$0xff] %v3438_v49  ;;  %v3448_v0 = vld [vmem:[#allocation3 + $0x78] sm:$0xff] }
 0x431   : > { %3455 = vst [vmem:[%s5355_s13 + $0x28] sm:$0xff] %v3439_v8  ;;  %v3449_v6 = vld [vmem:[#allocation3 + $0x30] sm:$0xff] }
 0x432   : > { %3456 = vst [vmem:[%s5355_s13 + $0x30] sm:$0xff] %v3440_v3 }
 0x433   : > { %3457 = vst [vmem:[%s5355_s13 + $0x38] sm:$0xff] %v3441_v58 }
 0x434   : > { %3458 = vst [vmem:[%s5355_s13 + $0x40] sm:$0xff] %v3442_v34 }
 0x435   : > { %3459 = vst [vmem:[%s5355_s13 + $0x48] sm:$0xff] %v3443_v43 }
 0x436   : > { %3460 = vst [vmem:[%s5355_s13 + $0x50] sm:$0xff] %v3444_v42 }
 0x437   : > { %3461 = vst [vmem:[%s5355_s13 + $0x58] sm:$0xff] %v3445_v11 }
 0x438   : > { %3462 = vst [vmem:[%s5355_s13 + $0x60] sm:$0xff] %v3446_v55 }
 0x439   : > { %3463 = vst [vmem:[%s5355_s13 + $0x68] sm:$0xff] %v3447_v22 }
 0x43a   : > { %3464 = vst [vmem:[%s5355_s13 + $0x70] sm:$0xff] %v3448_v0 }
 0x43b   : > { %3465 = vst [vmem:[%s5355_s13 + $0x78] sm:$0xff] %v3449_v6 }
 0x43c PF: > { %s8685_s18 = sld [smem:[#allocation23_spill]]  ;;  %s3481_s28 = sshll.u32 %s5355_s13, 4  ;;  %s3482_s28 = int_to_ptr.vmem [resolvable:$true] %s3481_s28 }
 0x43d   : > { %s8686_s24 = sld [smem:[#allocation24_spill]]  ;;  %s3467_s4 = scalar_lea.sflag [#allocation6], %s5324_s0 }
 0x43e   : > { %s8688_s9 = sld [smem:[#allocation82_spill]] }
 0x442   : > { %s4144_s25 = sshll.u32 %s8685_s18, 4 }
 0x443   : > { %s4145_s11 = sshll.u32 %s8686_s24, 5 }
 0x444   : > { %s3478_s26 = sadd.s32 %s4145_s11, %s4144_s25  ;;  %s4900_s10 = scalar_lea.hbm %s8688_s9, 512 }
 0x445   : > { %s4146_s23 = sshll.u32 %s3478_s26, 3 }
 0x446   : > { %s3480_s14 = scalar_lea.hbm %s8688_s9, %s4146_s23 }
 0x447   : > { %s3483_s16 = sshll.u32 %s3480_s14, 4  ;;  %s3484_s16 = int_to_ptr.hbm [resolvable:$true] %s3483_s16 }
 0x448   : > { %s4894_s15 = sshra.s32 %s3484_s16, 4  ;;  %s4895_s15 = int_to_ptr.hbm [resolvable:$true] %s4894_s15 }
 0x449   : > { %s4896_s21 = scalar_lea.hbm %s4895_s15, 128  ;;  %p4901_p6 = scmp.lt.s32.totalorder %s4895_s15, %s8688_s9 }
 0x44a   : > { %p4897_p4 = scmp.ne.s32.totalorder %s4895_s15, %s4896_s21  ;;  %p4902_p13 = scmp.lt.s32.totalorder %s4900_s10, %s4896_s21 }
 0x44c   : > { %p4898_p7 = pnand %p4897_p4, %p5284_p10  ;;  %p4903_p0 = por %p4902_p13, %p4901_p6 }
 0x44e   : > { %p4899_p11 = pneg %p4898_p7 }
 0x450   : > { %p4904_p5 = pnand %p4903_p0, %p4899_p11 }
 0x452   : > { %4907 = shalt.err (!%p4904_p5)
}
 0x453   : > { %s5064_s0 = smov 128   ;;  %s5065_s1 = smov 8  }
 0x454   : > { %4310 = dma.vmem_to_hbm [thread:$0]  (%p5284_p10), %s3482_s28, 2048, %s3484_s16, %s3467_s4, %s5064_s0, %s5064_s0, %s5065_s1  }
 0x455 PF: > { %s8689_s20 = sld [smem:[#allocation20_spill]]  ;;  %p4330_p9 = scmp.ge.s32.totalorder %s5054_s30, 2 }
 0x457   : > { %p4326_p1 = pnand %p4330_p9, %p5288_p12 }
 0x459   : > { %p4327_p3 = pneg %p4326_p1 }
 0x45b   : > { %s3498_s24 = sand.u32 1, %s8689_s20  }
 0x45c   : > { %s3499_s25 = scalar_lea.sflag [#allocation6], %s3498_s24 }
 0x45d   : > { %4989 = dma.done.wait (%p4327_p3), %s3499_s25, 2048  }
 0x45e   : > { %4991 = vsyncadd (%p4327_p3), %s3499_s25, 4294965248  ;;  %s26_s30 = sadd.s32 1, %s5054_s30   ;;  %s8692_s15 = sld [smem:[#allocation18_spill]] }
 0x45f   : > { %p8269_p2 = scmp.ge.s32.totalorder %s26_s30, 10   ;;  %s8693_s7 = sld [smem:[#allocation30_spill]] }
 0x460   : > { %s8694_s28 = sld [smem:[#allocation19_spill]]  ;;  %s8703_s16 = smov %s5002_s17 }
 0x461   : > { %s8695_s20 = sld [smem:[#allocation31_spill]]  ;;  %s8705_s18 = smov %s5010_s19 }
 0x462   : > { %s8696_s26 = sld [smem:[#allocation21_spill]]  ;;  %s8707_s21 = smov %s5022_s22 }
 0x463   : > { %s8697_s23 = sld [smem:[#allocation33_spill]]  ;;  %s8709_s24 = smov %s5042_s27 }
 0x464   : > { %s8698_s25 = sld [smem:[#allocation25_spill]] }
 0x465   : > { %s8699_s8 = sld [smem:[#allocation26_spill]]  ;;  %s8704_s17 = smov %s8693_s7 }
 0x466   : > { %s8700_s12 = sld [smem:[#allocation27_spill]]  ;;  %s8706_s19 = smov %s8694_s28 }
 0x467   : > { %s8701_s14 = sld [smem:[#allocation28_spill]] }
 0x468   : > { %s8702_s29 = sld [smem:[#allocation29_spill]]  ;;  %s8708_s22 = smov %s8696_s26 }
 0x469   :  { %25 = sbr.rel (!%p8269_p2) target bundleno = 19 (0x13), region = 126 }
 0x46b   : > { %s8710_s26 = smov %s8699_s8 }
 0x46c   : > { %s8711_s27 = smov %s8700_s12 }
 0x46d   : > { %s8712_s28 = smov %s8701_s14 }
 0x46e   :  { %3505 = vsyncpa [#allocation5], 1 }
 0x46f   :  { %3507 = vsyncpa [#allocation5 + $0x1], 1 }
 0x470   :  { %3508 = vsyncpa [#allocation8], 1 }
 0x471   :  { %3510 = vsyncpa [#allocation8 + $0x1], 1 }
 0x472   :  { %3511 = vsyncpa [#allocation11], 1 }
 0x473   :  { %3513 = vsyncpa [#allocation11 + $0x1], 1 }
 0x474   :  { %3514 = vsyncpa [#allocation6], 1 }
 0x475   :  { %3516 = vsyncpa [#allocation6 + $0x1], 1 }

</bundles_post_ra>
